<compile_context>
chip_gen: v7x
topology: tpu7x:2x2x1
jax: 0.10.0
libtpu: 0.0.40
codegen_flags: <defaults>
</compile_context>

<pallas_src>
import jax
import jax.numpy as jnp
from jax.experimental import pallas as pl
from jax.experimental.pallas import tpu as pltpu

# ----------------------------- hyper-params (small) -------------------------
SRC_VOCAB = 64
TGT_VOCAB = 128          # "len(english.vocab)"
EMB = 32
HID = 32
NUM_LAYERS = 2
BATCH = 8
SRC_LEN = 8
TGT_LEN = 6
TEACHER_FORCE_RATIO = 0.5

_VMEM = pl.BlockSpec(memory_space=pltpu.MemorySpace.VMEM)


# ----------------------------- fused kernel ---------------------------------
def _lstm_cell(x, h_prev, c_prev, w, b):
    """Merged-matmul LSTM cell.  x:[B,E] h,c:[B,H] w:[E+H,4H] b:[1,4H].
    PyTorch gate order along 4H: i, f, g, o."""
    H = c_prev.shape[1]
    xh = jnp.concatenate([x, h_prev], axis=1)                       # [B, E+H]
    gates = jnp.dot(xh, w, preferred_element_type=jnp.float32) + b  # [B, 4H]
    # Full-width transcendentals (EUP) + lane mask instead of 4 narrow slices.
    lane = jax.lax.broadcasted_iota(jnp.int32, gates.shape, 1)
    act = jnp.where((lane >= 2 * H) & (lane < 3 * H),
                    jnp.tanh(gates), jax.nn.sigmoid(gates))         # [B, 4H]
    i_g = act[:, 0:H]
    f_g = act[:, H:2 * H]
    g_g = act[:, 2 * H:3 * H]
    o_g = act[:, 3 * H:4 * H]
    c_new = f_g * c_prev + i_g * g_g
    h_new = o_g * jnp.tanh(c_new)
    return h_new, c_new


def _seq2seq_kernel(src_ref, tgt_ref, tf_ref,
                    enc_emb_ref, dec_emb_ref,
                    enc_w_ref, enc_b_ref,
                    dec_w_ref, dec_b_ref,
                    fc_w_ref, fc_b_ref,
                    out_ref):
    S = src_ref.shape[0]
    T, B, _ = tgt_ref.shape
    V = out_ref.shape[2]
    L = enc_w_ref.shape[0]

    # Weights / tables: read once, VMEM/vreg resident for the whole recurrence.
    enc_emb = enc_emb_ref[...]                                      # [Vs, E]
    dec_emb = dec_emb_ref[...]                                      # [Vt, E]
    fc_w = fc_w_ref[...]                                            # [H, Vt]
    fc_b = fc_b_ref[...]                                            # [1, Vt]

    src_iota = jax.lax.broadcasted_iota(jnp.int32, (B, enc_emb.shape[0]), 1)
    tgt_iota = jax.lax.broadcasted_iota(jnp.int32, (B, dec_emb.shape[0]), 1)

    # Recurrent state stays in vregs (no per-step HBM stores).
    h = [jnp.zeros((B, HID), jnp.float32) for _ in range(L)]
    c = [jnp.zeros((B, HID), jnp.float32) for _ in range(L)]

    # ---------------- encoder ----------------
    for t in range(S):
        tok = src_ref[t]                                            # [B,1] int32
        one_hot = (src_iota == tok).astype(jnp.float32)             # [B, Vs]
        x = jnp.dot(one_hot, enc_emb, preferred_element_type=jnp.float32)  # [B,E]
        for l in range(L):
            h[l], c[l] = _lstm_cell(x, h[l], c[l], enc_w_ref[l], enc_b_ref[l])
            x = h[l]

    # ---------------- decoder ----------------
    out_ref[0] = jnp.zeros((B, V), jnp.float32)                     # outputs[0] = 0
    x_tok = tgt_ref[0]                                              # <sos>, [B,1]
    for t in range(1, T):
        one_hot = (tgt_iota == x_tok).astype(jnp.float32)           # [B, Vt]
        x = jnp.dot(one_hot, dec_emb, preferred_element_type=jnp.float32)  # [B,E]
        for l in range(L):
            h[l], c[l] = _lstm_cell(x, h[l], c[l], dec_w_ref[l], dec_b_ref[l])
            x = h[l]
        logits = jnp.dot(h[-1], fc_w, preferred_element_type=jnp.float32) + fc_b
        out_ref[t] = logits                                         # [B, Vt]

        # First-occurrence argmax over the vocab lanes (matches jnp/torch argmax).
        m = jnp.max(logits, axis=1, keepdims=True)                  # [B,1]
        vlane = jax.lax.broadcasted_iota(jnp.int32, logits.shape, 1)
        best = jnp.min(jnp.where(logits == m, vlane, V), axis=1, keepdims=True)
        # Teacher-force select (flag precomputed on host, broadcast [1,1] -> [B,1]).
        x_tok = jnp.where(tf_ref[t] != 0, tgt_ref[t], best)


# ----------------------------- parameters -----------------------------------
def init_params(key):
    assert EMB == HID, "merged [W_ih; W_hh] stacking assumes EMB == HID"
    scale = 1.0 / jnp.sqrt(jnp.float32(HID))
    keys = iter(jax.random.split(key, 64))

    def unif(shape):
        return jax.random.uniform(next(keys), shape, jnp.float32, -scale, scale)

    enc_w, enc_b, dec_w, dec_b = [], [], [], []
    for l in range(NUM_LAYERS):
        in_dim = EMB if l == 0 else HID
        # merged weight: rows [0:in_dim] = W_ih, rows [in_dim:] = W_hh  -> [E+H, 4H]
        enc_w.append(jnp.concatenate([unif((in_dim, 4 * HID)), unif((HID, 4 * HID))], axis=0))
        enc_b.append(unif((1, 4 * HID)) + unif((1, 4 * HID)))       # b_ih + b_hh
        dec_w.append(jnp.concatenate([unif((in_dim, 4 * HID)), unif((HID, 4 * HID))], axis=0))
        dec_b.append(unif((1, 4 * HID)) + unif((1, 4 * HID)))

    return {
        "enc_emb": jax.random.normal(next(keys), (SRC_VOCAB, EMB), jnp.float32),
        "dec_emb": jax.random.normal(next(keys), (TGT_VOCAB, EMB), jnp.float32),
        "enc_w": jnp.stack(enc_w),          # [L, E+H, 4H]
        "enc_b": jnp.stack(enc_b),          # [L, 1, 4H]
        "dec_w": jnp.stack(dec_w),
        "dec_b": jnp.stack(dec_b),
        "fc_w": unif((HID, TGT_VOCAB)),
        "fc_b": unif((1, TGT_VOCAB)),
    }


# ----------------------------- forward (single pallas_call) -----------------
@jax.jit
def seq2seq_forward(params, source, target, tf_draws,
                    teacher_force_ratio=TEACHER_FORCE_RATIO):
    """source:[S,B] int32, target:[T,B] int32, tf_draws:[T] float32 in [0,1)."""
    S, B = source.shape
    T = target.shape[0]
    src_in = source.astype(jnp.int32)[:, :, None]                      # [S,B,1]
    tgt_in = target.astype(jnp.int32)[:, :, None]                      # [T,B,1]
    tf_in = (tf_draws < teacher_force_ratio).astype(jnp.int32)[:, None, None]  # [T,1,1]

    return pl.pallas_call(
        _seq2seq_kernel,
        out_shape=jax.ShapeDtypeStruct((T, B, TGT_VOCAB), jnp.float32),
        in_specs=[_VMEM] * 11,
        out_specs=_VMEM,
    )(src_in, tgt_in, tf_in,
      params["enc_emb"], params["dec_emb"],
      params["enc_w"], params["enc_b"],
      params["dec_w"], params["dec_b"],
      params["fc_w"], params["fc_b"])


# ----------------------------- pure-JAX reference ---------------------------
def seq2seq_reference(params, source, target, tf_draws,
                      teacher_force_ratio=TEACHER_FORCE_RATIO):
    hp = jax.lax.Precision.HIGHEST
    B = source.shape[1]
    T = target.shape[0]
    h = [jnp.zeros((B, HID), jnp.float32) for _ in range(NUM_LAYERS)]
    c = [jnp.zeros((B, HID), jnp.float32) for _ in range(NUM_LAYERS)]

    def cell(x, h_l, c_l, w, b):
        gates = jnp.dot(jnp.concatenate([x, h_l], axis=1), w, precision=hp) + b
        i = jax.nn.sigmoid(gates[:, 0:HID])
        f = jax.nn.sigmoid(gates[:, HID:2 * HID])
        g = jnp.tanh(gates[:, 2 * HID:3 * HID])
        o = jax.nn.sigmoid(gates[:, 3 * HID:4 * HID])
        c_new = f * c_l + i * g
        return o * jnp.tanh(c_new), c_new

    for t in range(source.shape[0]):
        x = params["enc_emb"][source[t]]
        for l in range(NUM_LAYERS):
            h[l], c[l] = cell(x, h[l], c[l], params["enc_w"][l], params["enc_b"][l])
            x = h[l]

    outputs = [jnp.zeros((B, TGT_VOCAB), jnp.float32)]
    x_tok = target[0]
    for t in range(1, T):
        x = params["dec_emb"][x_tok]
        for l in range(NUM_LAYERS):
            h[l], c[l] = cell(x, h[l], c[l], params["dec_w"][l], params["dec_b"][l])
            x = h[l]
        logits = jnp.dot(h[-1], params["fc_w"], precision=hp) + params["fc_b"]
        outputs.append(logits)
        best = jnp.argmax(logits, axis=1).astype(target.dtype)
        x_tok = jnp.where(tf_draws[t] < teacher_force_ratio, target[t], best)
    return jnp.stack(outputs, axis=0)


# ----------------------------- main ------------------------------------------
if __name__ == "__main__":
    key = jax.random.PRNGKey(0)
    k_param, k_src, k_tgt, k_tf = jax.random.split(key, 4)

    params = init_params(k_param)
    source = jax.random.randint(k_src, (SRC_LEN, BATCH), 0, SRC_VOCAB, jnp.int32)
    target = jax.random.randint(k_tgt, (TGT_LEN, BATCH), 0, TGT_VOCAB, jnp.int32)
    tf_draws = jax.random.uniform(k_tf, (TGT_LEN,), jnp.float32)

    outputs = jax.block_until_ready(seq2seq_forward(params, source, target, tf_draws))
    ref = jax.block_until_ready(seq2seq_reference(params, source, target, tf_draws))

    assert outputs.shape == (TGT_LEN, BATCH, TGT_VOCAB)
    assert outputs.dtype == jnp.float32
    assert bool(jnp.all(outputs[0] == 0.0))            # row 0 untouched, like torch.zeros
    assert bool(jnp.allclose(outputs, ref, atol=1e-3, rtol=1e-3))
    print("KERNEL_OK")
</pallas_src>

<mosaic_0001>
module attributes {stable_mosaic.version = 11 : i64} {
  func.func @_seq2seq_kernel(%arg0: memref<8x8x1xi32, #tpu.memory_space<vmem>>, %arg1: memref<6x8x1xi32, #tpu.memory_space<vmem>>, %arg2: memref<6x1x1xi32, #tpu.memory_space<vmem>>, %arg3: memref<64x32xf32, #tpu.memory_space<vmem>>, %arg4: memref<128x32xf32, #tpu.memory_space<vmem>>, %arg5: memref<2x64x128xf32, #tpu.memory_space<vmem>>, %arg6: memref<2x1x128xf32, #tpu.memory_space<vmem>>, %arg7: memref<2x64x128xf32, #tpu.memory_space<vmem>>, %arg8: memref<2x1x128xf32, #tpu.memory_space<vmem>>, %arg9: memref<32x128xf32, #tpu.memory_space<vmem>>, %arg10: memref<1x128xf32, #tpu.memory_space<vmem>>, %arg11: memref<6x8x128xf32, #tpu.memory_space<vmem>>) attributes {dimension_semantics = [], scalar_prefetch = 0 : i64, scratch_operands = 0 : i64, tpu.core_type = #tpu.core_type<tc>} {
    %c0 = arith.constant 0 : index
    %c0_0 = arith.constant 0 : index
    %0 = vector.load %arg3[%c0, %c0_0] : memref<64x32xf32, #tpu.memory_space<vmem>>, vector<64x32xf32>
    %c0_1 = arith.constant 0 : index
    %c0_2 = arith.constant 0 : index
    %1 = vector.load %arg4[%c0_1, %c0_2] : memref<128x32xf32, #tpu.memory_space<vmem>>, vector<128x32xf32>
    %c0_3 = arith.constant 0 : index
    %c0_4 = arith.constant 0 : index
    %2 = vector.load %arg9[%c0_3, %c0_4] : memref<32x128xf32, #tpu.memory_space<vmem>>, vector<32x128xf32>
    %c0_5 = arith.constant 0 : index
    %c0_6 = arith.constant 0 : index
    %3 = vector.load %arg10[%c0_5, %c0_6] : memref<1x128xf32, #tpu.memory_space<vmem>>, vector<1x128xf32>
    %4 = tpu.iota {dimensions = array<i32: 1>} : vector<8x64xi32>
    %5 = tpu.iota {dimensions = array<i32: 1>} : vector<8x128xi32>
    %cst = arith.constant 0.000000e+00 : f32
    %6 = vector.broadcast %cst : f32 to vector<8x32xf32>
    %cst_7 = arith.constant 0.000000e+00 : f32
    %7 = vector.broadcast %cst_7 : f32 to vector<8x32xf32>
    %cst_8 = arith.constant 0.000000e+00 : f32
    %8 = vector.broadcast %cst_8 : f32 to vector<8x32xf32>
    %cst_9 = arith.constant 0.000000e+00 : f32
    %9 = vector.broadcast %cst_9 : f32 to vector<8x32xf32>
    %c0_10 = arith.constant 0 : index
    %c0_11 = arith.constant 0 : index
    %c0_12 = arith.constant 0 : index
    %10 = vector.load %arg0[%c0_10, %c0_11, %c0_12] : memref<8x8x1xi32, #tpu.memory_space<vmem>>, vector<1x8x1xi32>
    %11 = vector.shape_cast %10 : vector<1x8x1xi32> to vector<8x1xi32>
    %12 = vector.broadcast %11 : vector<8x1xi32> to vector<8x64xi32>
    %13 = arith.cmpi eq, %4, %12 : vector<8x64xi32>
    %14 = arith.extui %13 : vector<8x64xi1> to vector<8x64xi32>
    %15 = arith.sitofp %14 : vector<8x64xi32> to vector<8x64xf32>
    %cst_13 = arith.constant dense<0.000000e+00> : vector<8x32xf32>
    %16 = tpu.matmul %15, %0, %cst_13 {dimension_numbers = #tpu.dot_dimension_numbers<[1], [0], [0], [1], [0, 0, 1, 1], [], []>} : vector<8x64xf32>, vector<64x32xf32>, vector<8x32xf32> -> vector<8x32xf32>
    %c0_14 = arith.constant 0 : index
    %c0_15 = arith.constant 0 : index
    %c0_16 = arith.constant 0 : index
    %17 = vector.load %arg5[%c0_14, %c0_15, %c0_16] : memref<2x64x128xf32, #tpu.memory_space<vmem>>, vector<1x64x128xf32>
    %18 = vector.shape_cast %17 : vector<1x64x128xf32> to vector<64x128xf32>
    %c0_17 = arith.constant 0 : index
    %c0_18 = arith.constant 0 : index
    %c0_19 = arith.constant 0 : index
    %19 = vector.load %arg6[%c0_17, %c0_18, %c0_19] : memref<2x1x128xf32, #tpu.memory_space<vmem>>, vector<1x1x128xf32>
    %20 = vector.shape_cast %19 : vector<1x1x128xf32> to vector<1x128xf32>
    %21 = tpu.concatenate %16, %6 in 1 : vector<8x32xf32>, vector<8x32xf32> -> vector<8x64xf32>
    %cst_20 = arith.constant dense<0.000000e+00> : vector<8x128xf32>
    %22 = tpu.matmul %21, %18, %cst_20 {dimension_numbers = #tpu.dot_dimension_numbers<[1], [0], [0], [1], [0, 0, 1, 1], [], []>} : vector<8x64xf32>, vector<64x128xf32>, vector<8x128xf32> -> vector<8x128xf32>
    %23 = vector.broadcast %20 : vector<1x128xf32> to vector<8x128xf32>
    %24 = arith.addf %22, %23 : vector<8x128xf32>
    %25 = tpu.iota {dimensions = array<i32: 1>} : vector<8x128xi32>
    %c64_i32 = arith.constant 64 : i32
    %26 = vector.broadcast %c64_i32 : i32 to vector<8x128xi32>
    %27 = arith.cmpi sge, %25, %26 : vector<8x128xi32>
    %c96_i32 = arith.constant 96 : i32
    %28 = vector.broadcast %c96_i32 : i32 to vector<8x128xi32>
    %29 = arith.cmpi slt, %25, %28 : vector<8x128xi32>
    %30 = arith.andi %27, %29 : vector<8x128xi1>
    %31 = math.tanh %24 : vector<8x128xf32>
    %32 = arith.negf %24 : vector<8x128xf32>
    %33 = math.exp %32 : vector<8x128xf32>
    %cst_21 = arith.constant 1.000000e+00 : f32
    %34 = vector.broadcast %cst_21 : f32 to vector<8x128xf32>
    %35 = arith.addf %34, %33 : vector<8x128xf32>
    %36 = arith.divf %34, %35 : vector<8x128xf32>
    %37 = arith.select %30, %31, %36 : vector<8x128xi1>, vector<8x128xf32>
    %38 = vector.extract_strided_slice %37 {offsets = [0, 0], sizes = [8, 32], strides = [1, 1]} : vector<8x128xf32> to vector<8x32xf32>
    %39 = vector.extract_strided_slice %37 {offsets = [0, 32], sizes = [8, 32], strides = [1, 1]} : vector<8x128xf32> to vector<8x32xf32>
    %40 = vector.extract_strided_slice %37 {offsets = [0, 64], sizes = [8, 32], strides = [1, 1]} : vector<8x128xf32> to vector<8x32xf32>
    %41 = vector.extract_strided_slice %37 {offsets = [0, 96], sizes = [8, 32], strides = [1, 1]} : vector<8x128xf32> to vector<8x32xf32>
    %42 = arith.mulf %39, %8 : vector<8x32xf32>
    %43 = arith.mulf %38, %40 : vector<8x32xf32>
    %44 = arith.addf %42, %43 : vector<8x32xf32>
    %45 = math.tanh %44 : vector<8x32xf32>
    %46 = arith.mulf %41, %45 : vector<8x32xf32>
    %c1 = arith.constant 1 : index
    %c0_22 = arith.constant 0 : index
    %c0_23 = arith.constant 0 : index
    %47 = vector.load %arg5[%c1, %c0_22, %c0_23] : memref<2x64x128xf32, #tpu.memory_space<vmem>>, vector<1x64x128xf32>
    %48 = vector.shape_cast %47 : vector<1x64x128xf32> to vector<64x128xf32>
    %c1_24 = arith.constant 1 : index
    %c0_25 = arith.constant 0 : index
    %c0_26 = arith.constant 0 : index
    %49 = vector.load %arg6[%c1_24, %c0_25, %c0_26] : memref<2x1x128xf32, #tpu.memory_space<vmem>>, vector<1x1x128xf32>
    %50 = vector.shape_cast %49 : vector<1x1x128xf32> to vector<1x128xf32>
    %51 = tpu.concatenate %46, %7 in 1 : vector<8x32xf32>, vector<8x32xf32> -> vector<8x64xf32>
    %cst_27 = arith.constant dense<0.000000e+00> : vector<8x128xf32>
    %52 = tpu.matmul %51, %48, %cst_27 {dimension_numbers = #tpu.dot_dimension_numbers<[1], [0], [0], [1], [0, 0, 1, 1], [], []>} : vector<8x64xf32>, vector<64x128xf32>, vector<8x128xf32> -> vector<8x128xf32>
    %53 = vector.broadcast %50 : vector<1x128xf32> to vector<8x128xf32>
    %54 = arith.addf %52, %53 : vector<8x128xf32>
    %55 = tpu.iota {dimensions = array<i32: 1>} : vector<8x128xi32>
    %c64_i32_28 = arith.constant 64 : i32
    %56 = vector.broadcast %c64_i32_28 : i32 to vector<8x128xi32>
    %57 = arith.cmpi sge, %55, %56 : vector<8x128xi32>
    %c96_i32_29 = arith.constant 96 : i32
    %58 = vector.broadcast %c96_i32_29 : i32 to vector<8x128xi32>
    %59 = arith.cmpi slt, %55, %58 : vector<8x128xi32>
    %60 = arith.andi %57, %59 : vector<8x128xi1>
    %61 = math.tanh %54 : vector<8x128xf32>
    %62 = arith.negf %54 : vector<8x128xf32>
    %63 = math.exp %62 : vector<8x128xf32>
    %cst_30 = arith.constant 1.000000e+00 : f32
    %64 = vector.broadcast %cst_30 : f32 to vector<8x128xf32>
    %65 = arith.addf %64, %63 : vector<8x128xf32>
    %66 = arith.divf %64, %65 : vector<8x128xf32>
    %67 = arith.select %60, %61, %66 : vector<8x128xi1>, vector<8x128xf32>
    %68 = vector.extract_strided_slice %67 {offsets = [0, 0], sizes = [8, 32], strides = [1, 1]} : vector<8x128xf32> to vector<8x32xf32>
    %69 = vector.extract_strided_slice %67 {offsets = [0, 32], sizes = [8, 32], strides = [1, 1]} : vector<8x128xf32> to vector<8x32xf32>
    %70 = vector.extract_strided_slice %67 {offsets = [0, 64], sizes = [8, 32], strides = [1, 1]} : vector<8x128xf32> to vector<8x32xf32>
    %71 = vector.extract_strided_slice %67 {offsets = [0, 96], sizes = [8, 32], strides = [1, 1]} : vector<8x128xf32> to vector<8x32xf32>
    %72 = arith.mulf %69, %9 : vector<8x32xf32>
    %73 = arith.mulf %68, %70 : vector<8x32xf32>
    %74 = arith.addf %72, %73 : vector<8x32xf32>
    %75 = math.tanh %74 : vector<8x32xf32>
    %76 = arith.mulf %71, %75 : vector<8x32xf32>
    %c1_31 = arith.constant 1 : index
    %c0_32 = arith.constant 0 : index
    %c0_33 = arith.constant 0 : index
    %77 = vector.load %arg0[%c1_31, %c0_32, %c0_33] : memref<8x8x1xi32, #tpu.memory_space<vmem>>, vector<1x8x1xi32>
    %78 = vector.shape_cast %77 : vector<1x8x1xi32> to vector<8x1xi32>
    %79 = vector.broadcast %78 : vector<8x1xi32> to vector<8x64xi32>
    %80 = arith.cmpi eq, %4, %79 : vector<8x64xi32>
    %81 = arith.extui %80 : vector<8x64xi1> to vector<8x64xi32>
    %82 = arith.sitofp %81 : vector<8x64xi32> to vector<8x64xf32>
    %cst_34 = arith.constant dense<0.000000e+00> : vector<8x32xf32>
    %83 = tpu.matmul %82, %0, %cst_34 {dimension_numbers = #tpu.dot_dimension_numbers<[1], [0], [0], [1], [0, 0, 1, 1], [], []>} : vector<8x64xf32>, vector<64x32xf32>, vector<8x32xf32> -> vector<8x32xf32>
    %c0_35 = arith.constant 0 : index
    %c0_36 = arith.constant 0 : index
    %c0_37 = arith.constant 0 : index
    %84 = vector.load %arg5[%c0_35, %c0_36, %c0_37] : memref<2x64x128xf32, #tpu.memory_space<vmem>>, vector<1x64x128xf32>
    %85 = vector.shape_cast %84 : vector<1x64x128xf32> to vector<64x128xf32>
    %c0_38 = arith.constant 0 : index
    %c0_39 = arith.constant 0 : index
    %c0_40 = arith.constant 0 : index
    %86 = vector.load %arg6[%c0_38, %c0_39, %c0_40] : memref<2x1x128xf32, #tpu.memory_space<vmem>>, vector<1x1x128xf32>
    %87 = vector.shape_cast %86 : vector<1x1x128xf32> to vector<1x128xf32>
    %88 = tpu.concatenate %83, %46 in 1 : vector<8x32xf32>, vector<8x32xf32> -> vector<8x64xf32>
    %cst_41 = arith.constant dense<0.000000e+00> : vector<8x128xf32>
    %89 = tpu.matmul %88, %85, %cst_41 {dimension_numbers = #tpu.dot_dimension_numbers<[1], [0], [0], [1], [0, 0, 1, 1], [], []>} : vector<8x64xf32>, vector<64x128xf32>, vector<8x128xf32> -> vector<8x128xf32>
    %90 = vector.broadcast %87 : vector<1x128xf32> to vector<8x128xf32>
    %91 = arith.addf %89, %90 : vector<8x128xf32>
    %92 = tpu.iota {dimensions = array<i32: 1>} : vector<8x128xi32>
    %c64_i32_42 = arith.constant 64 : i32
    %93 = vector.broadcast %c64_i32_42 : i32 to vector<8x128xi32>
    %94 = arith.cmpi sge, %92, %93 : vector<8x128xi32>
    %c96_i32_43 = arith.constant 96 : i32
    %95 = vector.broadcast %c96_i32_43 : i32 to vector<8x128xi32>
    %96 = arith.cmpi slt, %92, %95 : vector<8x128xi32>
    %97 = arith.andi %94, %96 : vector<8x128xi1>
    %98 = math.tanh %91 : vector<8x128xf32>
    %99 = arith.negf %91 : vector<8x128xf32>
    %100 = math.exp %99 : vector<8x128xf32>
    %cst_44 = arith.constant 1.000000e+00 : f32
    %101 = vector.broadcast %cst_44 : f32 to vector<8x128xf32>
    %102 = arith.addf %101, %100 : vector<8x128xf32>
    %103 = arith.divf %101, %102 : vector<8x128xf32>
    %104 = arith.select %97, %98, %103 : vector<8x128xi1>, vector<8x128xf32>
    %105 = vector.extract_strided_slice %104 {offsets = [0, 0], sizes = [8, 32], strides = [1, 1]} : vector<8x128xf32> to vector<8x32xf32>
    %106 = vector.extract_strided_slice %104 {offsets = [0, 32], sizes = [8, 32], strides = [1, 1]} : vector<8x128xf32> to vector<8x32xf32>
    %107 = vector.extract_strided_slice %104 {offsets = [0, 64], sizes = [8, 32], strides = [1, 1]} : vector<8x128xf32> to vector<8x32xf32>
    %108 = vector.extract_strided_slice %104 {offsets = [0, 96], sizes = [8, 32], strides = [1, 1]} : vector<8x128xf32> to vector<8x32xf32>
    %109 = arith.mulf %106, %44 : vector<8x32xf32>
    %110 = arith.mulf %105, %107 : vector<8x32xf32>
    %111 = arith.addf %109, %110 : vector<8x32xf32>
    %112 = math.tanh %111 : vector<8x32xf32>
    %113 = arith.mulf %108, %112 : vector<8x32xf32>
    %c1_45 = arith.constant 1 : index
    %c0_46 = arith.constant 0 : index
    %c0_47 = arith.constant 0 : index
    %114 = vector.load %arg5[%c1_45, %c0_46, %c0_47] : memref<2x64x128xf32, #tpu.memory_space<vmem>>, vector<1x64x128xf32>
    %115 = vector.shape_cast %114 : vector<1x64x128xf32> to vector<64x128xf32>
    %c1_48 = arith.constant 1 : index
    %c0_49 = arith.constant 0 : index
    %c0_50 = arith.constant 0 : index
    %116 = vector.load %arg6[%c1_48, %c0_49, %c0_50] : memref<2x1x128xf32, #tpu.memory_space<vmem>>, vector<1x1x128xf32>
    %117 = vector.shape_cast %116 : vector<1x1x128xf32> to vector<1x128xf32>
    %118 = tpu.concatenate %113, %76 in 1 : vector<8x32xf32>, vector<8x32xf32> -> vector<8x64xf32>
    %cst_51 = arith.constant dense<0.000000e+00> : vector<8x128xf32>
    %119 = tpu.matmul %118, %115, %cst_51 {dimension_numbers = #tpu.dot_dimension_numbers<[1], [0], [0], [1], [0, 0, 1, 1], [], []>} : vector<8x64xf32>, vector<64x128xf32>, vector<8x128xf32> -> vector<8x128xf32>
    %120 = vector.broadcast %117 : vector<1x128xf32> to vector<8x128xf32>
    %121 = arith.addf %119, %120 : vector<8x128xf32>
    %122 = tpu.iota {dimensions = array<i32: 1>} : vector<8x128xi32>
    %c64_i32_52 = arith.constant 64 : i32
    %123 = vector.broadcast %c64_i32_52 : i32 to vector<8x128xi32>
    %124 = arith.cmpi sge, %122, %123 : vector<8x128xi32>
    %c96_i32_53 = arith.constant 96 : i32
    %125 = vector.broadcast %c96_i32_53 : i32 to vector<8x128xi32>
    %126 = arith.cmpi slt, %122, %125 : vector<8x128xi32>
    %127 = arith.andi %124, %126 : vector<8x128xi1>
    %128 = math.tanh %121 : vector<8x128xf32>
    %129 = arith.negf %121 : vector<8x128xf32>
    %130 = math.exp %129 : vector<8x128xf32>
    %cst_54 = arith.constant 1.000000e+00 : f32
    %131 = vector.broadcast %cst_54 : f32 to vector<8x128xf32>
    %132 = arith.addf %131, %130 : vector<8x128xf32>
    %133 = arith.divf %131, %132 : vector<8x128xf32>
    %134 = arith.select %127, %128, %133 : vector<8x128xi1>, vector<8x128xf32>
    %135 = vector.extract_strided_slice %134 {offsets = [0, 0], sizes = [8, 32], strides = [1, 1]} : vector<8x128xf32> to vector<8x32xf32>
    %136 = vector.extract_strided_slice %134 {offsets = [0, 32], sizes = [8, 32], strides = [1, 1]} : vector<8x128xf32> to vector<8x32xf32>
    %137 = vector.extract_strided_slice %134 {offsets = [0, 64], sizes = [8, 32], strides = [1, 1]} : vector<8x128xf32> to vector<8x32xf32>
    %138 = vector.extract_strided_slice %134 {offsets = [0, 96], sizes = [8, 32], strides = [1, 1]} : vector<8x128xf32> to vector<8x32xf32>
    %139 = arith.mulf %136, %74 : vector<8x32xf32>
    %140 = arith.mulf %135, %137 : vector<8x32xf32>
    %141 = arith.addf %139, %140 : vector<8x32xf32>
    %142 = math.tanh %141 : vector<8x32xf32>
    %143 = arith.mulf %138, %142 : vector<8x32xf32>
    %c2 = arith.constant 2 : index
    %c0_55 = arith.constant 0 : index
    %c0_56 = arith.constant 0 : index
    %144 = vector.load %arg0[%c2, %c0_55, %c0_56] : memref<8x8x1xi32, #tpu.memory_space<vmem>>, vector<1x8x1xi32>
    %145 = vector.shape_cast %144 : vector<1x8x1xi32> to vector<8x1xi32>
    %146 = vector.broadcast %145 : vector<8x1xi32> to vector<8x64xi32>
    %147 = arith.cmpi eq, %4, %146 : vector<8x64xi32>
    %148 = arith.extui %147 : vector<8x64xi1> to vector<8x64xi32>
    %149 = arith.sitofp %148 : vector<8x64xi32> to vector<8x64xf32>
    %cst_57 = arith.constant dense<0.000000e+00> : vector<8x32xf32>
    %150 = tpu.matmul %149, %0, %cst_57 {dimension_numbers = #tpu.dot_dimension_numbers<[1], [0], [0], [1], [0, 0, 1, 1], [], []>} : vector<8x64xf32>, vector<64x32xf32>, vector<8x32xf32> -> vector<8x32xf32>
    %c0_58 = arith.constant 0 : index
    %c0_59 = arith.constant 0 : index
    %c0_60 = arith.constant 0 : index
    %151 = vector.load %arg5[%c0_58, %c0_59, %c0_60] : memref<2x64x128xf32, #tpu.memory_space<vmem>>, vector<1x64x128xf32>
    %152 = vector.shape_cast %151 : vector<1x64x128xf32> to vector<64x128xf32>
    %c0_61 = arith.constant 0 : index
    %c0_62 = arith.constant 0 : index
    %c0_63 = arith.constant 0 : index
    %153 = vector.load %arg6[%c0_61, %c0_62, %c0_63] : memref<2x1x128xf32, #tpu.memory_space<vmem>>, vector<1x1x128xf32>
    %154 = vector.shape_cast %153 : vector<1x1x128xf32> to vector<1x128xf32>
    %155 = tpu.concatenate %150, %113 in 1 : vector<8x32xf32>, vector<8x32xf32> -> vector<8x64xf32>
    %cst_64 = arith.constant dense<0.000000e+00> : vector<8x128xf32>
    %156 = tpu.matmul %155, %152, %cst_64 {dimension_numbers = #tpu.dot_dimension_numbers<[1], [0], [0], [1], [0, 0, 1, 1], [], []>} : vector<8x64xf32>, vector<64x128xf32>, vector<8x128xf32> -> vector<8x128xf32>
    %157 = vector.broadcast %154 : vector<1x128xf32> to vector<8x128xf32>
    %158 = arith.addf %156, %157 : vector<8x128xf32>
    %159 = tpu.iota {dimensions = array<i32: 1>} : vector<8x128xi32>
    %c64_i32_65 = arith.constant 64 : i32
    %160 = vector.broadcast %c64_i32_65 : i32 to vector<8x128xi32>
    %161 = arith.cmpi sge, %159, %160 : vector<8x128xi32>
    %c96_i32_66 = arith.constant 96 : i32
    %162 = vector.broadcast %c96_i32_66 : i32 to vector<8x128xi32>
    %163 = arith.cmpi slt, %159, %162 : vector<8x128xi32>
    %164 = arith.andi %161, %163 : vector<8x128xi1>
    %165 = math.tanh %158 : vector<8x128xf32>
    %166 = arith.negf %158 : vector<8x128xf32>
    %167 = math.exp %166 : vector<8x128xf32>
    %cst_67 = arith.constant 1.000000e+00 : f32
    %168 = vector.broadcast %cst_67 : f32 to vector<8x128xf32>
    %169 = arith.addf %168, %167 : vector<8x128xf32>
    %170 = arith.divf %168, %169 : vector<8x128xf32>
    %171 = arith.select %164, %165, %170 : vector<8x128xi1>, vector<8x128xf32>
    %172 = vector.extract_strided_slice %171 {offsets = [0, 0], sizes = [8, 32], strides = [1, 1]} : vector<8x128xf32> to vector<8x32xf32>
    %173 = vector.extract_strided_slice %171 {offsets = [0, 32], sizes = [8, 32], strides = [1, 1]} : vector<8x128xf32> to vector<8x32xf32>
    %174 = vector.extract_strided_slice %171 {offsets = [0, 64], sizes = [8, 32], strides = [1, 1]} : vector<8x128xf32> to vector<8x32xf32>
    %175 = vector.extract_strided_slice %171 {offsets = [0, 96], sizes = [8, 32], strides = [1, 1]} : vector<8x128xf32> to vector<8x32xf32>
    %176 = arith.mulf %173, %111 : vector<8x32xf32>
    %177 = arith.mulf %172, %174 : vector<8x32xf32>
    %178 = arith.addf %176, %177 : vector<8x32xf32>
    %179 = math.tanh %178 : vector<8x32xf32>
    %180 = arith.mulf %175, %179 : vector<8x32xf32>
    %c1_68 = arith.constant 1 : index
    %c0_69 = arith.constant 0 : index
    %c0_70 = arith.constant 0 : index
    %181 = vector.load %arg5[%c1_68, %c0_69, %c0_70] : memref<2x64x128xf32, #tpu.memory_space<vmem>>, vector<1x64x128xf32>
    %182 = vector.shape_cast %181 : vector<1x64x128xf32> to vector<64x128xf32>
    %c1_71 = arith.constant 1 : index
    %c0_72 = arith.constant 0 : index
    %c0_73 = arith.constant 0 : index
    %183 = vector.load %arg6[%c1_71, %c0_72, %c0_73] : memref<2x1x128xf32, #tpu.memory_space<vmem>>, vector<1x1x128xf32>
    %184 = vector.shape_cast %183 : vector<1x1x128xf32> to vector<1x128xf32>
    %185 = tpu.concatenate %180, %143 in 1 : vector<8x32xf32>, vector<8x32xf32> -> vector<8x64xf32>
    %cst_74 = arith.constant dense<0.000000e+00> : vector<8x128xf32>
    %186 = tpu.matmul %185, %182, %cst_74 {dimension_numbers = #tpu.dot_dimension_numbers<[1], [0], [0], [1], [0, 0, 1, 1], [], []>} : vector<8x64xf32>, vector<64x128xf32>, vector<8x128xf32> -> vector<8x128xf32>
    %187 = vector.broadcast %184 : vector<1x128xf32> to vector<8x128xf32>
    %188 = arith.addf %186, %187 : vector<8x128xf32>
    %189 = tpu.iota {dimensions = array<i32: 1>} : vector<8x128xi32>
    %c64_i32_75 = arith.constant 64 : i32
    %190 = vector.broadcast %c64_i32_75 : i32 to vector<8x128xi32>
    %191 = arith.cmpi sge, %189, %190 : vector<8x128xi32>
    %c96_i32_76 = arith.constant 96 : i32
    %192 = vector.broadcast %c96_i32_76 : i32 to vector<8x128xi32>
    %193 = arith.cmpi slt, %189, %192 : vector<8x128xi32>
    %194 = arith.andi %191, %193 : vector<8x128xi1>
    %195 = math.tanh %188 : vector<8x128xf32>
    %196 = arith.negf %188 : vector<8x128xf32>
    %197 = math.exp %196 : vector<8x128xf32>
    %cst_77 = arith.constant 1.000000e+00 : f32
    %198 = vector.broadcast %cst_77 : f32 to vector<8x128xf32>
    %199 = arith.addf %198, %197 : vector<8x128xf32>
    %200 = arith.divf %198, %199 : vector<8x128xf32>
    %201 = arith.select %194, %195, %200 : vector<8x128xi1>, vector<8x128xf32>
    %202 = vector.extract_strided_slice %201 {offsets = [0, 0], sizes = [8, 32], strides = [1, 1]} : vector<8x128xf32> to vector<8x32xf32>
    %203 = vector.extract_strided_slice %201 {offsets = [0, 32], sizes = [8, 32], strides = [1, 1]} : vector<8x128xf32> to vector<8x32xf32>
    %204 = vector.extract_strided_slice %201 {offsets = [0, 64], sizes = [8, 32], strides = [1, 1]} : vector<8x128xf32> to vector<8x32xf32>
    %205 = vector.extract_strided_slice %201 {offsets = [0, 96], sizes = [8, 32], strides = [1, 1]} : vector<8x128xf32> to vector<8x32xf32>
    %206 = arith.mulf %203, %141 : vector<8x32xf32>
    %207 = arith.mulf %202, %204 : vector<8x32xf32>
    %208 = arith.addf %206, %207 : vector<8x32xf32>
    %209 = math.tanh %208 : vector<8x32xf32>
    %210 = arith.mulf %205, %209 : vector<8x32xf32>
    %c3 = arith.constant 3 : index
    %c0_78 = arith.constant 0 : index
    %c0_79 = arith.constant 0 : index
    %211 = vector.load %arg0[%c3, %c0_78, %c0_79] : memref<8x8x1xi32, #tpu.memory_space<vmem>>, vector<1x8x1xi32>
    %212 = vector.shape_cast %211 : vector<1x8x1xi32> to vector<8x1xi32>
    %213 = vector.broadcast %212 : vector<8x1xi32> to vector<8x64xi32>
    %214 = arith.cmpi eq, %4, %213 : vector<8x64xi32>
    %215 = arith.extui %214 : vector<8x64xi1> to vector<8x64xi32>
    %216 = arith.sitofp %215 : vector<8x64xi32> to vector<8x64xf32>
    %cst_80 = arith.constant dense<0.000000e+00> : vector<8x32xf32>
    %217 = tpu.matmul %216, %0, %cst_80 {dimension_numbers = #tpu.dot_dimension_numbers<[1], [0], [0], [1], [0, 0, 1, 1], [], []>} : vector<8x64xf32>, vector<64x32xf32>, vector<8x32xf32> -> vector<8x32xf32>
    %c0_81 = arith.constant 0 : index
    %c0_82 = arith.constant 0 : index
    %c0_83 = arith.constant 0 : index
    %218 = vector.load %arg5[%c0_81, %c0_82, %c0_83] : memref<2x64x128xf32, #tpu.memory_space<vmem>>, vector<1x64x128xf32>
    %219 = vector.shape_cast %218 : vector<1x64x128xf32> to vector<64x128xf32>
    %c0_84 = arith.constant 0 : index
    %c0_85 = arith.constant 0 : index
    %c0_86 = arith.constant 0 : index
    %220 = vector.load %arg6[%c0_84, %c0_85, %c0_86] : memref<2x1x128xf32, #tpu.memory_space<vmem>>, vector<1x1x128xf32>
    %221 = vector.shape_cast %220 : vector<1x1x128xf32> to vector<1x128xf32>
    %222 = tpu.concatenate %217, %180 in 1 : vector<8x32xf32>, vector<8x32xf32> -> vector<8x64xf32>
    %cst_87 = arith.constant dense<0.000000e+00> : vector<8x128xf32>
    %223 = tpu.matmul %222, %219, %cst_87 {dimension_numbers = #tpu.dot_dimension_numbers<[1], [0], [0], [1], [0, 0, 1, 1], [], []>} : vector<8x64xf32>, vector<64x128xf32>, vector<8x128xf32> -> vector<8x128xf32>
    %224 = vector.broadcast %221 : vector<1x128xf32> to vector<8x128xf32>
    %225 = arith.addf %223, %224 : vector<8x128xf32>
    %226 = tpu.iota {dimensions = array<i32: 1>} : vector<8x128xi32>
    %c64_i32_88 = arith.constant 64 : i32
    %227 = vector.broadcast %c64_i32_88 : i32 to vector<8x128xi32>
    %228 = arith.cmpi sge, %226, %227 : vector<8x128xi32>
    %c96_i32_89 = arith.constant 96 : i32
    %229 = vector.broadcast %c96_i32_89 : i32 to vector<8x128xi32>
    %230 = arith.cmpi slt, %226, %229 : vector<8x128xi32>
    %231 = arith.andi %228, %230 : vector<8x128xi1>
    %232 = math.tanh %225 : vector<8x128xf32>
    %233 = arith.negf %225 : vector<8x128xf32>
    %234 = math.exp %233 : vector<8x128xf32>
    %cst_90 = arith.constant 1.000000e+00 : f32
    %235 = vector.broadcast %cst_90 : f32 to vector<8x128xf32>
    %236 = arith.addf %235, %234 : vector<8x128xf32>
    %237 = arith.divf %235, %236 : vector<8x128xf32>
    %238 = arith.select %231, %232, %237 : vector<8x128xi1>, vector<8x128xf32>
    %239 = vector.extract_strided_slice %238 {offsets = [0, 0], sizes = [8, 32], strides = [1, 1]} : vector<8x128xf32> to vector<8x32xf32>
    %240 = vector.extract_strided_slice %238 {offsets = [0, 32], sizes = [8, 32], strides = [1, 1]} : vector<8x128xf32> to vector<8x32xf32>
    %241 = vector.extract_strided_slice %238 {offsets = [0, 64], sizes = [8, 32], strides = [1, 1]} : vector<8x128xf32> to vector<8x32xf32>
    %242 = vector.extract_strided_slice %238 {offsets = [0, 96], sizes = [8, 32], strides = [1, 1]} : vector<8x128xf32> to vector<8x32xf32>
    %243 = arith.mulf %240, %178 : vector<8x32xf32>
    %244 = arith.mulf %239, %241 : vector<8x32xf32>
    %245 = arith.addf %243, %244 : vector<8x32xf32>
    %246 = math.tanh %245 : vector<8x32xf32>
    %247 = arith.mulf %242, %246 : vector<8x32xf32>
    %c1_91 = arith.constant 1 : index
    %c0_92 = arith.constant 0 : index
    %c0_93 = arith.constant 0 : index
    %248 = vector.load %arg5[%c1_91, %c0_92, %c0_93] : memref<2x64x128xf32, #tpu.memory_space<vmem>>, vector<1x64x128xf32>
    %249 = vector.shape_cast %248 : vector<1x64x128xf32> to vector<64x128xf32>
    %c1_94 = arith.constant 1 : index
    %c0_95 = arith.constant 0 : index
    %c0_96 = arith.constant 0 : index
    %250 = vector.load %arg6[%c1_94, %c0_95, %c0_96] : memref<2x1x128xf32, #tpu.memory_space<vmem>>, vector<1x1x128xf32>
    %251 = vector.shape_cast %250 : vector<1x1x128xf32> to vector<1x128xf32>
    %252 = tpu.concatenate %247, %210 in 1 : vector<8x32xf32>, vector<8x32xf32> -> vector<8x64xf32>
    %cst_97 = arith.constant dense<0.000000e+00> : vector<8x128xf32>
    %253 = tpu.matmul %252, %249, %cst_97 {dimension_numbers = #tpu.dot_dimension_numbers<[1], [0], [0], [1], [0, 0, 1, 1], [], []>} : vector<8x64xf32>, vector<64x128xf32>, vector<8x128xf32> -> vector<8x128xf32>
    %254 = vector.broadcast %251 : vector<1x128xf32> to vector<8x128xf32>
    %255 = arith.addf %253, %254 : vector<8x128xf32>
    %256 = tpu.iota {dimensions = array<i32: 1>} : vector<8x128xi32>
    %c64_i32_98 = arith.constant 64 : i32
    %257 = vector.broadcast %c64_i32_98 : i32 to vector<8x128xi32>
    %258 = arith.cmpi sge, %256, %257 : vector<8x128xi32>
    %c96_i32_99 = arith.constant 96 : i32
    %259 = vector.broadcast %c96_i32_99 : i32 to vector<8x128xi32>
    %260 = arith.cmpi slt, %256, %259 : vector<8x128xi32>
    %261 = arith.andi %258, %260 : vector<8x128xi1>
    %262 = math.tanh %255 : vector<8x128xf32>
    %263 = arith.negf %255 : vector<8x128xf32>
    %264 = math.exp %263 : vector<8x128xf32>
    %cst_100 = arith.constant 1.000000e+00 : f32
    %265 = vector.broadcast %cst_100 : f32 to vector<8x128xf32>
    %266 = arith.addf %265, %264 : vector<8x128xf32>
    %267 = arith.divf %265, %266 : vector<8x128xf32>
    %268 = arith.select %261, %262, %267 : vector<8x128xi1>, vector<8x128xf32>
    %269 = vector.extract_strided_slice %268 {offsets = [0, 0], sizes = [8, 32], strides = [1, 1]} : vector<8x128xf32> to vector<8x32xf32>
    %270 = vector.extract_strided_slice %268 {offsets = [0, 32], sizes = [8, 32], strides = [1, 1]} : vector<8x128xf32> to vector<8x32xf32>
    %271 = vector.extract_strided_slice %268 {offsets = [0, 64], sizes = [8, 32], strides = [1, 1]} : vector<8x128xf32> to vector<8x32xf32>
    %272 = vector.extract_strided_slice %268 {offsets = [0, 96], sizes = [8, 32], strides = [1, 1]} : vector<8x128xf32> to vector<8x32xf32>
    %273 = arith.mulf %270, %208 : vector<8x32xf32>
    %274 = arith.mulf %269, %271 : vector<8x32xf32>
    %275 = arith.addf %273, %274 : vector<8x32xf32>
    %276 = math.tanh %275 : vector<8x32xf32>
    %277 = arith.mulf %272, %276 : vector<8x32xf32>
    %c4 = arith.constant 4 : index
    %c0_101 = arith.constant 0 : index
    %c0_102 = arith.constant 0 : index
    %278 = vector.load %arg0[%c4, %c0_101, %c0_102] : memref<8x8x1xi32, #tpu.memory_space<vmem>>, vector<1x8x1xi32>
    %279 = vector.shape_cast %278 : vector<1x8x1xi32> to vector<8x1xi32>
    %280 = vector.broadcast %279 : vector<8x1xi32> to vector<8x64xi32>
    %281 = arith.cmpi eq, %4, %280 : vector<8x64xi32>
    %282 = arith.extui %281 : vector<8x64xi1> to vector<8x64xi32>
    %283 = arith.sitofp %282 : vector<8x64xi32> to vector<8x64xf32>
    %cst_103 = arith.constant dense<0.000000e+00> : vector<8x32xf32>
    %284 = tpu.matmul %283, %0, %cst_103 {dimension_numbers = #tpu.dot_dimension_numbers<[1], [0], [0], [1], [0, 0, 1, 1], [], []>} : vector<8x64xf32>, vector<64x32xf32>, vector<8x32xf32> -> vector<8x32xf32>
    %c0_104 = arith.constant 0 : index
    %c0_105 = arith.constant 0 : index
    %c0_106 = arith.constant 0 : index
    %285 = vector.load %arg5[%c0_104, %c0_105, %c0_106] : memref<2x64x128xf32, #tpu.memory_space<vmem>>, vector<1x64x128xf32>
    %286 = vector.shape_cast %285 : vector<1x64x128xf32> to vector<64x128xf32>
    %c0_107 = arith.constant 0 : index
    %c0_108 = arith.constant 0 : index
    %c0_109 = arith.constant 0 : index
    %287 = vector.load %arg6[%c0_107, %c0_108, %c0_109] : memref<2x1x128xf32, #tpu.memory_space<vmem>>, vector<1x1x128xf32>
    %288 = vector.shape_cast %287 : vector<1x1x128xf32> to vector<1x128xf32>
    %289 = tpu.concatenate %284, %247 in 1 : vector<8x32xf32>, vector<8x32xf32> -> vector<8x64xf32>
    %cst_110 = arith.constant dense<0.000000e+00> : vector<8x128xf32>
    %290 = tpu.matmul %289, %286, %cst_110 {dimension_numbers = #tpu.dot_dimension_numbers<[1], [0], [0], [1], [0, 0, 1, 1], [], []>} : vector<8x64xf32>, vector<64x128xf32>, vector<8x128xf32> -> vector<8x128xf32>
    %291 = vector.broadcast %288 : vector<1x128xf32> to vector<8x128xf32>
    %292 = arith.addf %290, %291 : vector<8x128xf32>
    %293 = tpu.iota {dimensions = array<i32: 1>} : vector<8x128xi32>
    %c64_i32_111 = arith.constant 64 : i32
    %294 = vector.broadcast %c64_i32_111 : i32 to vector<8x128xi32>
    %295 = arith.cmpi sge, %293, %294 : vector<8x128xi32>
    %c96_i32_112 = arith.constant 96 : i32
    %296 = vector.broadcast %c96_i32_112 : i32 to vector<8x128xi32>
    %297 = arith.cmpi slt, %293, %296 : vector<8x128xi32>
    %298 = arith.andi %295, %297 : vector<8x128xi1>
    %299 = math.tanh %292 : vector<8x128xf32>
    %300 = arith.negf %292 : vector<8x128xf32>
    %301 = math.exp %300 : vector<8x128xf32>
    %cst_113 = arith.constant 1.000000e+00 : f32
    %302 = vector.broadcast %cst_113 : f32 to vector<8x128xf32>
    %303 = arith.addf %302, %301 : vector<8x128xf32>
    %304 = arith.divf %302, %303 : vector<8x128xf32>
    %305 = arith.select %298, %299, %304 : vector<8x128xi1>, vector<8x128xf32>
    %306 = vector.extract_strided_slice %305 {offsets = [0, 0], sizes = [8, 32], strides = [1, 1]} : vector<8x128xf32> to vector<8x32xf32>
    %307 = vector.extract_strided_slice %305 {offsets = [0, 32], sizes = [8, 32], strides = [1, 1]} : vector<8x128xf32> to vector<8x32xf32>
    %308 = vector.extract_strided_slice %305 {offsets = [0, 64], sizes = [8, 32], strides = [1, 1]} : vector<8x128xf32> to vector<8x32xf32>
    %309 = vector.extract_strided_slice %305 {offsets = [0, 96], sizes = [8, 32], strides = [1, 1]} : vector<8x128xf32> to vector<8x32xf32>
    %310 = arith.mulf %307, %245 : vector<8x32xf32>
    %311 = arith.mulf %306, %308 : vector<8x32xf32>
    %312 = arith.addf %310, %311 : vector<8x32xf32>
    %313 = math.tanh %312 : vector<8x32xf32>
    %314 = arith.mulf %309, %313 : vector<8x32xf32>
    %c1_114 = arith.constant 1 : index
    %c0_115 = arith.constant 0 : index
    %c0_116 = arith.constant 0 : index
    %315 = vector.load %arg5[%c1_114, %c0_115, %c0_116] : memref<2x64x128xf32, #tpu.memory_space<vmem>>, vector<1x64x128xf32>
    %316 = vector.shape_cast %315 : vector<1x64x128xf32> to vector<64x128xf32>
    %c1_117 = arith.constant 1 : index
    %c0_118 = arith.constant 0 : index
    %c0_119 = arith.constant 0 : index
    %317 = vector.load %arg6[%c1_117, %c0_118, %c0_119] : memref<2x1x128xf32, #tpu.memory_space<vmem>>, vector<1x1x128xf32>
    %318 = vector.shape_cast %317 : vector<1x1x128xf32> to vector<1x128xf32>
    %319 = tpu.concatenate %314, %277 in 1 : vector<8x32xf32>, vector<8x32xf32> -> vector<8x64xf32>
    %cst_120 = arith.constant dense<0.000000e+00> : vector<8x128xf32>
    %320 = tpu.matmul %319, %316, %cst_120 {dimension_numbers = #tpu.dot_dimension_numbers<[1], [0], [0], [1], [0, 0, 1, 1], [], []>} : vector<8x64xf32>, vector<64x128xf32>, vector<8x128xf32> -> vector<8x128xf32>
    %321 = vector.broadcast %318 : vector<1x128xf32> to vector<8x128xf32>
    %322 = arith.addf %320, %321 : vector<8x128xf32>
    %323 = tpu.iota {dimensions = array<i32: 1>} : vector<8x128xi32>
    %c64_i32_121 = arith.constant 64 : i32
    %324 = vector.broadcast %c64_i32_121 : i32 to vector<8x128xi32>
    %325 = arith.cmpi sge, %323, %324 : vector<8x128xi32>
    %c96_i32_122 = arith.constant 96 : i32
    %326 = vector.broadcast %c96_i32_122 : i32 to vector<8x128xi32>
    %327 = arith.cmpi slt, %323, %326 : vector<8x128xi32>
    %328 = arith.andi %325, %327 : vector<8x128xi1>
    %329 = math.tanh %322 : vector<8x128xf32>
    %330 = arith.negf %322 : vector<8x128xf32>
    %331 = math.exp %330 : vector<8x128xf32>
    %cst_123 = arith.constant 1.000000e+00 : f32
    %332 = vector.broadcast %cst_123 : f32 to vector<8x128xf32>
    %333 = arith.addf %332, %331 : vector<8x128xf32>
    %334 = arith.divf %332, %333 : vector<8x128xf32>
    %335 = arith.select %328, %329, %334 : vector<8x128xi1>, vector<8x128xf32>
    %336 = vector.extract_strided_slice %335 {offsets = [0, 0], sizes = [8, 32], strides = [1, 1]} : vector<8x128xf32> to vector<8x32xf32>
    %337 = vector.extract_strided_slice %335 {offsets = [0, 32], sizes = [8, 32], strides = [1, 1]} : vector<8x128xf32> to vector<8x32xf32>
    %338 = vector.extract_strided_slice %335 {offsets = [0, 64], sizes = [8, 32], strides = [1, 1]} : vector<8x128xf32> to vector<8x32xf32>
    %339 = vector.extract_strided_slice %335 {offsets = [0, 96], sizes = [8, 32], strides = [1, 1]} : vector<8x128xf32> to vector<8x32xf32>
    %340 = arith.mulf %337, %275 : vector<8x32xf32>
    %341 = arith.mulf %336, %338 : vector<8x32xf32>
    %342 = arith.addf %340, %341 : vector<8x32xf32>
    %343 = math.tanh %342 : vector<8x32xf32>
    %344 = arith.mulf %339, %343 : vector<8x32xf32>
    %c5 = arith.constant 5 : index
    %c0_124 = arith.constant 0 : index
    %c0_125 = arith.constant 0 : index
    %345 = vector.load %arg0[%c5, %c0_124, %c0_125] : memref<8x8x1xi32, #tpu.memory_space<vmem>>, vector<1x8x1xi32>
    %346 = vector.shape_cast %345 : vector<1x8x1xi32> to vector<8x1xi32>
    %347 = vector.broadcast %346 : vector<8x1xi32> to vector<8x64xi32>
    %348 = arith.cmpi eq, %4, %347 : vector<8x64xi32>
    %349 = arith.extui %348 : vector<8x64xi1> to vector<8x64xi32>
    %350 = arith.sitofp %349 : vector<8x64xi32> to vector<8x64xf32>
    %cst_126 = arith.constant dense<0.000000e+00> : vector<8x32xf32>
    %351 = tpu.matmul %350, %0, %cst_126 {dimension_numbers = #tpu.dot_dimension_numbers<[1], [0], [0], [1], [0, 0, 1, 1], [], []>} : vector<8x64xf32>, vector<64x32xf32>, vector<8x32xf32> -> vector<8x32xf32>
    %c0_127 = arith.constant 0 : index
    %c0_128 = arith.constant 0 : index
    %c0_129 = arith.constant 0 : index
    %352 = vector.load %arg5[%c0_127, %c0_128, %c0_129] : memref<2x64x128xf32, #tpu.memory_space<vmem>>, vector<1x64x128xf32>
    %353 = vector.shape_cast %352 : vector<1x64x128xf32> to vector<64x128xf32>
    %c0_130 = arith.constant 0 : index
    %c0_131 = arith.constant 0 : index
    %c0_132 = arith.constant 0 : index
    %354 = vector.load %arg6[%c0_130, %c0_131, %c0_132] : memref<2x1x128xf32, #tpu.memory_space<vmem>>, vector<1x1x128xf32>
    %355 = vector.shape_cast %354 : vector<1x1x128xf32> to vector<1x128xf32>
    %356 = tpu.concatenate %351, %314 in 1 : vector<8x32xf32>, vector<8x32xf32> -> vector<8x64xf32>
    %cst_133 = arith.constant dense<0.000000e+00> : vector<8x128xf32>
    %357 = tpu.matmul %356, %353, %cst_133 {dimension_numbers = #tpu.dot_dimension_numbers<[1], [0], [0], [1], [0, 0, 1, 1], [], []>} : vector<8x64xf32>, vector<64x128xf32>, vector<8x128xf32> -> vector<8x128xf32>
    %358 = vector.broadcast %355 : vector<1x128xf32> to vector<8x128xf32>
    %359 = arith.addf %357, %358 : vector<8x128xf32>
    %360 = tpu.iota {dimensions = array<i32: 1>} : vector<8x128xi32>
    %c64_i32_134 = arith.constant 64 : i32
    %361 = vector.broadcast %c64_i32_134 : i32 to vector<8x128xi32>
    %362 = arith.cmpi sge, %360, %361 : vector<8x128xi32>
    %c96_i32_135 = arith.constant 96 : i32
    %363 = vector.broadcast %c96_i32_135 : i32 to vector<8x128xi32>
    %364 = arith.cmpi slt, %360, %363 : vector<8x128xi32>
    %365 = arith.andi %362, %364 : vector<8x128xi1>
    %366 = math.tanh %359 : vector<8x128xf32>
    %367 = arith.negf %359 : vector<8x128xf32>
    %368 = math.exp %367 : vector<8x128xf32>
    %cst_136 = arith.constant 1.000000e+00 : f32
    %369 = vector.broadcast %cst_136 : f32 to vector<8x128xf32>
    %370 = arith.addf %369, %368 : vector<8x128xf32>
    %371 = arith.divf %369, %370 : vector<8x128xf32>
    %372 = arith.select %365, %366, %371 : vector<8x128xi1>, vector<8x128xf32>
    %373 = vector.extract_strided_slice %372 {offsets = [0, 0], sizes = [8, 32], strides = [1, 1]} : vector<8x128xf32> to vector<8x32xf32>
    %374 = vector.extract_strided_slice %372 {offsets = [0, 32], sizes = [8, 32], strides = [1, 1]} : vector<8x128xf32> to vector<8x32xf32>
    %375 = vector.extract_strided_slice %372 {offsets = [0, 64], sizes = [8, 32], strides = [1, 1]} : vector<8x128xf32> to vector<8x32xf32>
    %376 = vector.extract_strided_slice %372 {offsets = [0, 96], sizes = [8, 32], strides = [1, 1]} : vector<8x128xf32> to vector<8x32xf32>
    %377 = arith.mulf %374, %312 : vector<8x32xf32>
    %378 = arith.mulf %373, %375 : vector<8x32xf32>
    %379 = arith.addf %377, %378 : vector<8x32xf32>
    %380 = math.tanh %379 : vector<8x32xf32>
    %381 = arith.mulf %376, %380 : vector<8x32xf32>
    %c1_137 = arith.constant 1 : index
    %c0_138 = arith.constant 0 : index
    %c0_139 = arith.constant 0 : index
    %382 = vector.load %arg5[%c1_137, %c0_138, %c0_139] : memref<2x64x128xf32, #tpu.memory_space<vmem>>, vector<1x64x128xf32>
    %383 = vector.shape_cast %382 : vector<1x64x128xf32> to vector<64x128xf32>
    %c1_140 = arith.constant 1 : index
    %c0_141 = arith.constant 0 : index
    %c0_142 = arith.constant 0 : index
    %384 = vector.load %arg6[%c1_140, %c0_141, %c0_142] : memref<2x1x128xf32, #tpu.memory_space<vmem>>, vector<1x1x128xf32>
    %385 = vector.shape_cast %384 : vector<1x1x128xf32> to vector<1x128xf32>
    %386 = tpu.concatenate %381, %344 in 1 : vector<8x32xf32>, vector<8x32xf32> -> vector<8x64xf32>
    %cst_143 = arith.constant dense<0.000000e+00> : vector<8x128xf32>
    %387 = tpu.matmul %386, %383, %cst_143 {dimension_numbers = #tpu.dot_dimension_numbers<[1], [0], [0], [1], [0, 0, 1, 1], [], []>} : vector<8x64xf32>, vector<64x128xf32>, vector<8x128xf32> -> vector<8x128xf32>
    %388 = vector.broadcast %385 : vector<1x128xf32> to vector<8x128xf32>
    %389 = arith.addf %387, %388 : vector<8x128xf32>
    %390 = tpu.iota {dimensions = array<i32: 1>} : vector<8x128xi32>
    %c64_i32_144 = arith.constant 64 : i32
    %391 = vector.broadcast %c64_i32_144 : i32 to vector<8x128xi32>
    %392 = arith.cmpi sge, %390, %391 : vector<8x128xi32>
    %c96_i32_145 = arith.constant 96 : i32
    %393 = vector.broadcast %c96_i32_145 : i32 to vector<8x128xi32>
    %394 = arith.cmpi slt, %390, %393 : vector<8x128xi32>
    %395 = arith.andi %392, %394 : vector<8x128xi1>
    %396 = math.tanh %389 : vector<8x128xf32>
    %397 = arith.negf %389 : vector<8x128xf32>
    %398 = math.exp %397 : vector<8x128xf32>
    %cst_146 = arith.constant 1.000000e+00 : f32
    %399 = vector.broadcast %cst_146 : f32 to vector<8x128xf32>
    %400 = arith.addf %399, %398 : vector<8x128xf32>
    %401 = arith.divf %399, %400 : vector<8x128xf32>
    %402 = arith.select %395, %396, %401 : vector<8x128xi1>, vector<8x128xf32>
    %403 = vector.extract_strided_slice %402 {offsets = [0, 0], sizes = [8, 32], strides = [1, 1]} : vector<8x128xf32> to vector<8x32xf32>
    %404 = vector.extract_strided_slice %402 {offsets = [0, 32], sizes = [8, 32], strides = [1, 1]} : vector<8x128xf32> to vector<8x32xf32>
    %405 = vector.extract_strided_slice %402 {offsets = [0, 64], sizes = [8, 32], strides = [1, 1]} : vector<8x128xf32> to vector<8x32xf32>
    %406 = vector.extract_strided_slice %402 {offsets = [0, 96], sizes = [8, 32], strides = [1, 1]} : vector<8x128xf32> to vector<8x32xf32>
    %407 = arith.mulf %404, %342 : vector<8x32xf32>
    %408 = arith.mulf %403, %405 : vector<8x32xf32>
    %409 = arith.addf %407, %408 : vector<8x32xf32>
    %410 = math.tanh %409 : vector<8x32xf32>
    %411 = arith.mulf %406, %410 : vector<8x32xf32>
    %c6 = arith.constant 6 : index
    %c0_147 = arith.constant 0 : index
    %c0_148 = arith.constant 0 : index
    %412 = vector.load %arg0[%c6, %c0_147, %c0_148] : memref<8x8x1xi32, #tpu.memory_space<vmem>>, vector<1x8x1xi32>
    %413 = vector.shape_cast %412 : vector<1x8x1xi32> to vector<8x1xi32>
    %414 = vector.broadcast %413 : vector<8x1xi32> to vector<8x64xi32>
    %415 = arith.cmpi eq, %4, %414 : vector<8x64xi32>
    %416 = arith.extui %415 : vector<8x64xi1> to vector<8x64xi32>
    %417 = arith.sitofp %416 : vector<8x64xi32> to vector<8x64xf32>
    %cst_149 = arith.constant dense<0.000000e+00> : vector<8x32xf32>
    %418 = tpu.matmul %417, %0, %cst_149 {dimension_numbers = #tpu.dot_dimension_numbers<[1], [0], [0], [1], [0, 0, 1, 1], [], []>} : vector<8x64xf32>, vector<64x32xf32>, vector<8x32xf32> -> vector<8x32xf32>
    %c0_150 = arith.constant 0 : index
    %c0_151 = arith.constant 0 : index
    %c0_152 = arith.constant 0 : index
    %419 = vector.load %arg5[%c0_150, %c0_151, %c0_152] : memref<2x64x128xf32, #tpu.memory_space<vmem>>, vector<1x64x128xf32>
    %420 = vector.shape_cast %419 : vector<1x64x128xf32> to vector<64x128xf32>
    %c0_153 = arith.constant 0 : index
    %c0_154 = arith.constant 0 : index
    %c0_155 = arith.constant 0 : index
    %421 = vector.load %arg6[%c0_153, %c0_154, %c0_155] : memref<2x1x128xf32, #tpu.memory_space<vmem>>, vector<1x1x128xf32>
    %422 = vector.shape_cast %421 : vector<1x1x128xf32> to vector<1x128xf32>
    %423 = tpu.concatenate %418, %381 in 1 : vector<8x32xf32>, vector<8x32xf32> -> vector<8x64xf32>
    %cst_156 = arith.constant dense<0.000000e+00> : vector<8x128xf32>
    %424 = tpu.matmul %423, %420, %cst_156 {dimension_numbers = #tpu.dot_dimension_numbers<[1], [0], [0], [1], [0, 0, 1, 1], [], []>} : vector<8x64xf32>, vector<64x128xf32>, vector<8x128xf32> -> vector<8x128xf32>
    %425 = vector.broadcast %422 : vector<1x128xf32> to vector<8x128xf32>
    %426 = arith.addf %424, %425 : vector<8x128xf32>
    %427 = tpu.iota {dimensions = array<i32: 1>} : vector<8x128xi32>
    %c64_i32_157 = arith.constant 64 : i32
    %428 = vector.broadcast %c64_i32_157 : i32 to vector<8x128xi32>
    %429 = arith.cmpi sge, %427, %428 : vector<8x128xi32>
    %c96_i32_158 = arith.constant 96 : i32
    %430 = vector.broadcast %c96_i32_158 : i32 to vector<8x128xi32>
    %431 = arith.cmpi slt, %427, %430 : vector<8x128xi32>
    %432 = arith.andi %429, %431 : vector<8x128xi1>
    %433 = math.tanh %426 : vector<8x128xf32>
    %434 = arith.negf %426 : vector<8x128xf32>
    %435 = math.exp %434 : vector<8x128xf32>
    %cst_159 = arith.constant 1.000000e+00 : f32
    %436 = vector.broadcast %cst_159 : f32 to vector<8x128xf32>
    %437 = arith.addf %436, %435 : vector<8x128xf32>
    %438 = arith.divf %436, %437 : vector<8x128xf32>
    %439 = arith.select %432, %433, %438 : vector<8x128xi1>, vector<8x128xf32>
    %440 = vector.extract_strided_slice %439 {offsets = [0, 0], sizes = [8, 32], strides = [1, 1]} : vector<8x128xf32> to vector<8x32xf32>
    %441 = vector.extract_strided_slice %439 {offsets = [0, 32], sizes = [8, 32], strides = [1, 1]} : vector<8x128xf32> to vector<8x32xf32>
    %442 = vector.extract_strided_slice %439 {offsets = [0, 64], sizes = [8, 32], strides = [1, 1]} : vector<8x128xf32> to vector<8x32xf32>
    %443 = vector.extract_strided_slice %439 {offsets = [0, 96], sizes = [8, 32], strides = [1, 1]} : vector<8x128xf32> to vector<8x32xf32>
    %444 = arith.mulf %441, %379 : vector<8x32xf32>
    %445 = arith.mulf %440, %442 : vector<8x32xf32>
    %446 = arith.addf %444, %445 : vector<8x32xf32>
    %447 = math.tanh %446 : vector<8x32xf32>
    %448 = arith.mulf %443, %447 : vector<8x32xf32>
    %c1_160 = arith.constant 1 : index
    %c0_161 = arith.constant 0 : index
    %c0_162 = arith.constant 0 : index
    %449 = vector.load %arg5[%c1_160, %c0_161, %c0_162] : memref<2x64x128xf32, #tpu.memory_space<vmem>>, vector<1x64x128xf32>
    %450 = vector.shape_cast %449 : vector<1x64x128xf32> to vector<64x128xf32>
    %c1_163 = arith.constant 1 : index
    %c0_164 = arith.constant 0 : index
    %c0_165 = arith.constant 0 : index
    %451 = vector.load %arg6[%c1_163, %c0_164, %c0_165] : memref<2x1x128xf32, #tpu.memory_space<vmem>>, vector<1x1x128xf32>
    %452 = vector.shape_cast %451 : vector<1x1x128xf32> to vector<1x128xf32>
    %453 = tpu.concatenate %448, %411 in 1 : vector<8x32xf32>, vector<8x32xf32> -> vector<8x64xf32>
    %cst_166 = arith.constant dense<0.000000e+00> : vector<8x128xf32>
    %454 = tpu.matmul %453, %450, %cst_166 {dimension_numbers = #tpu.dot_dimension_numbers<[1], [0], [0], [1], [0, 0, 1, 1], [], []>} : vector<8x64xf32>, vector<64x128xf32>, vector<8x128xf32> -> vector<8x128xf32>
    %455 = vector.broadcast %452 : vector<1x128xf32> to vector<8x128xf32>
    %456 = arith.addf %454, %455 : vector<8x128xf32>
    %457 = tpu.iota {dimensions = array<i32: 1>} : vector<8x128xi32>
    %c64_i32_167 = arith.constant 64 : i32
    %458 = vector.broadcast %c64_i32_167 : i32 to vector<8x128xi32>
    %459 = arith.cmpi sge, %457, %458 : vector<8x128xi32>
    %c96_i32_168 = arith.constant 96 : i32
    %460 = vector.broadcast %c96_i32_168 : i32 to vector<8x128xi32>
    %461 = arith.cmpi slt, %457, %460 : vector<8x128xi32>
    %462 = arith.andi %459, %461 : vector<8x128xi1>
    %463 = math.tanh %456 : vector<8x128xf32>
    %464 = arith.negf %456 : vector<8x128xf32>
    %465 = math.exp %464 : vector<8x128xf32>
    %cst_169 = arith.constant 1.000000e+00 : f32
    %466 = vector.broadcast %cst_169 : f32 to vector<8x128xf32>
    %467 = arith.addf %466, %465 : vector<8x128xf32>
    %468 = arith.divf %466, %467 : vector<8x128xf32>
    %469 = arith.select %462, %463, %468 : vector<8x128xi1>, vector<8x128xf32>
    %470 = vector.extract_strided_slice %469 {offsets = [0, 0], sizes = [8, 32], strides = [1, 1]} : vector<8x128xf32> to vector<8x32xf32>
    %471 = vector.extract_strided_slice %469 {offsets = [0, 32], sizes = [8, 32], strides = [1, 1]} : vector<8x128xf32> to vector<8x32xf32>
    %472 = vector.extract_strided_slice %469 {offsets = [0, 64], sizes = [8, 32], strides = [1, 1]} : vector<8x128xf32> to vector<8x32xf32>
    %473 = vector.extract_strided_slice %469 {offsets = [0, 96], sizes = [8, 32], strides = [1, 1]} : vector<8x128xf32> to vector<8x32xf32>
    %474 = arith.mulf %471, %409 : vector<8x32xf32>
    %475 = arith.mulf %470, %472 : vector<8x32xf32>
    %476 = arith.addf %474, %475 : vector<8x32xf32>
    %477 = math.tanh %476 : vector<8x32xf32>
    %478 = arith.mulf %473, %477 : vector<8x32xf32>
    %c7 = arith.constant 7 : index
    %c0_170 = arith.constant 0 : index
    %c0_171 = arith.constant 0 : index
    %479 = vector.load %arg0[%c7, %c0_170, %c0_171] : memref<8x8x1xi32, #tpu.memory_space<vmem>>, vector<1x8x1xi32>
    %480 = vector.shape_cast %479 : vector<1x8x1xi32> to vector<8x1xi32>
    %481 = vector.broadcast %480 : vector<8x1xi32> to vector<8x64xi32>
    %482 = arith.cmpi eq, %4, %481 : vector<8x64xi32>
    %483 = arith.extui %482 : vector<8x64xi1> to vector<8x64xi32>
    %484 = arith.sitofp %483 : vector<8x64xi32> to vector<8x64xf32>
    %cst_172 = arith.constant dense<0.000000e+00> : vector<8x32xf32>
    %485 = tpu.matmul %484, %0, %cst_172 {dimension_numbers = #tpu.dot_dimension_numbers<[1], [0], [0], [1], [0, 0, 1, 1], [], []>} : vector<8x64xf32>, vector<64x32xf32>, vector<8x32xf32> -> vector<8x32xf32>
    %c0_173 = arith.constant 0 : index
    %c0_174 = arith.constant 0 : index
    %c0_175 = arith.constant 0 : index
    %486 = vector.load %arg5[%c0_173, %c0_174, %c0_175] : memref<2x64x128xf32, #tpu.memory_space<vmem>>, vector<1x64x128xf32>
    %487 = vector.shape_cast %486 : vector<1x64x128xf32> to vector<64x128xf32>
    %c0_176 = arith.constant 0 : index
    %c0_177 = arith.constant 0 : index
    %c0_178 = arith.constant 0 : index
    %488 = vector.load %arg6[%c0_176, %c0_177, %c0_178] : memref<2x1x128xf32, #tpu.memory_space<vmem>>, vector<1x1x128xf32>
    %489 = vector.shape_cast %488 : vector<1x1x128xf32> to vector<1x128xf32>
    %490 = tpu.concatenate %485, %448 in 1 : vector<8x32xf32>, vector<8x32xf32> -> vector<8x64xf32>
    %cst_179 = arith.constant dense<0.000000e+00> : vector<8x128xf32>
    %491 = tpu.matmul %490, %487, %cst_179 {dimension_numbers = #tpu.dot_dimension_numbers<[1], [0], [0], [1], [0, 0, 1, 1], [], []>} : vector<8x64xf32>, vector<64x128xf32>, vector<8x128xf32> -> vector<8x128xf32>
    %492 = vector.broadcast %489 : vector<1x128xf32> to vector<8x128xf32>
    %493 = arith.addf %491, %492 : vector<8x128xf32>
    %494 = tpu.iota {dimensions = array<i32: 1>} : vector<8x128xi32>
    %c64_i32_180 = arith.constant 64 : i32
    %495 = vector.broadcast %c64_i32_180 : i32 to vector<8x128xi32>
    %496 = arith.cmpi sge, %494, %495 : vector<8x128xi32>
    %c96_i32_181 = arith.constant 96 : i32
    %497 = vector.broadcast %c96_i32_181 : i32 to vector<8x128xi32>
    %498 = arith.cmpi slt, %494, %497 : vector<8x128xi32>
    %499 = arith.andi %496, %498 : vector<8x128xi1>
    %500 = math.tanh %493 : vector<8x128xf32>
    %501 = arith.negf %493 : vector<8x128xf32>
    %502 = math.exp %501 : vector<8x128xf32>
    %cst_182 = arith.constant 1.000000e+00 : f32
    %503 = vector.broadcast %cst_182 : f32 to vector<8x128xf32>
    %504 = arith.addf %503, %502 : vector<8x128xf32>
    %505 = arith.divf %503, %504 : vector<8x128xf32>
    %506 = arith.select %499, %500, %505 : vector<8x128xi1>, vector<8x128xf32>
    %507 = vector.extract_strided_slice %506 {offsets = [0, 0], sizes = [8, 32], strides = [1, 1]} : vector<8x128xf32> to vector<8x32xf32>
    %508 = vector.extract_strided_slice %506 {offsets = [0, 32], sizes = [8, 32], strides = [1, 1]} : vector<8x128xf32> to vector<8x32xf32>
    %509 = vector.extract_strided_slice %506 {offsets = [0, 64], sizes = [8, 32], strides = [1, 1]} : vector<8x128xf32> to vector<8x32xf32>
    %510 = vector.extract_strided_slice %506 {offsets = [0, 96], sizes = [8, 32], strides = [1, 1]} : vector<8x128xf32> to vector<8x32xf32>
    %511 = arith.mulf %508, %446 : vector<8x32xf32>
    %512 = arith.mulf %507, %509 : vector<8x32xf32>
    %513 = arith.addf %511, %512 : vector<8x32xf32>
    %514 = math.tanh %513 : vector<8x32xf32>
    %515 = arith.mulf %510, %514 : vector<8x32xf32>
    %c1_183 = arith.constant 1 : index
    %c0_184 = arith.constant 0 : index
    %c0_185 = arith.constant 0 : index
    %516 = vector.load %arg5[%c1_183, %c0_184, %c0_185] : memref<2x64x128xf32, #tpu.memory_space<vmem>>, vector<1x64x128xf32>
    %517 = vector.shape_cast %516 : vector<1x64x128xf32> to vector<64x128xf32>
    %c1_186 = arith.constant 1 : index
    %c0_187 = arith.constant 0 : index
    %c0_188 = arith.constant 0 : index
    %518 = vector.load %arg6[%c1_186, %c0_187, %c0_188] : memref<2x1x128xf32, #tpu.memory_space<vmem>>, vector<1x1x128xf32>
    %519 = vector.shape_cast %518 : vector<1x1x128xf32> to vector<1x128xf32>
    %520 = tpu.concatenate %515, %478 in 1 : vector<8x32xf32>, vector<8x32xf32> -> vector<8x64xf32>
    %cst_189 = arith.constant dense<0.000000e+00> : vector<8x128xf32>
    %521 = tpu.matmul %520, %517, %cst_189 {dimension_numbers = #tpu.dot_dimension_numbers<[1], [0], [0], [1], [0, 0, 1, 1], [], []>} : vector<8x64xf32>, vector<64x128xf32>, vector<8x128xf32> -> vector<8x128xf32>
    %522 = vector.broadcast %519 : vector<1x128xf32> to vector<8x128xf32>
    %523 = arith.addf %521, %522 : vector<8x128xf32>
    %524 = tpu.iota {dimensions = array<i32: 1>} : vector<8x128xi32>
    %c64_i32_190 = arith.constant 64 : i32
    %525 = vector.broadcast %c64_i32_190 : i32 to vector<8x128xi32>
    %526 = arith.cmpi sge, %524, %525 : vector<8x128xi32>
    %c96_i32_191 = arith.constant 96 : i32
    %527 = vector.broadcast %c96_i32_191 : i32 to vector<8x128xi32>
    %528 = arith.cmpi slt, %524, %527 : vector<8x128xi32>
    %529 = arith.andi %526, %528 : vector<8x128xi1>
    %530 = math.tanh %523 : vector<8x128xf32>
    %531 = arith.negf %523 : vector<8x128xf32>
    %532 = math.exp %531 : vector<8x128xf32>
    %cst_192 = arith.constant 1.000000e+00 : f32
    %533 = vector.broadcast %cst_192 : f32 to vector<8x128xf32>
    %534 = arith.addf %533, %532 : vector<8x128xf32>
    %535 = arith.divf %533, %534 : vector<8x128xf32>
    %536 = arith.select %529, %530, %535 : vector<8x128xi1>, vector<8x128xf32>
    %537 = vector.extract_strided_slice %536 {offsets = [0, 0], sizes = [8, 32], strides = [1, 1]} : vector<8x128xf32> to vector<8x32xf32>
    %538 = vector.extract_strided_slice %536 {offsets = [0, 32], sizes = [8, 32], strides = [1, 1]} : vector<8x128xf32> to vector<8x32xf32>
    %539 = vector.extract_strided_slice %536 {offsets = [0, 64], sizes = [8, 32], strides = [1, 1]} : vector<8x128xf32> to vector<8x32xf32>
    %540 = vector.extract_strided_slice %536 {offsets = [0, 96], sizes = [8, 32], strides = [1, 1]} : vector<8x128xf32> to vector<8x32xf32>
    %541 = arith.mulf %538, %476 : vector<8x32xf32>
    %542 = arith.mulf %537, %539 : vector<8x32xf32>
    %543 = arith.addf %541, %542 : vector<8x32xf32>
    %544 = math.tanh %543 : vector<8x32xf32>
    %545 = arith.mulf %540, %544 : vector<8x32xf32>
    %cst_193 = arith.constant 0.000000e+00 : f32
    %546 = vector.broadcast %cst_193 : f32 to vector<8x128xf32>
    %c0_194 = arith.constant 0 : index
    %c0_195 = arith.constant 0 : index
    %c0_196 = arith.constant 0 : index
    %547 = vector.load %arg11[%c0_194, %c0_195, %c0_196] : memref<6x8x128xf32, #tpu.memory_space<vmem>>, vector<1x8x128xf32>
    %548 = vector.shape_cast %547 : vector<1x8x128xf32> to vector<8x128xf32>
    %549 = vector.shape_cast %546 : vector<8x128xf32> to vector<1x8x128xf32>
    tpu.vector_store %arg11[%c0_194, %c0_195, %c0_196], %549 {strides = array<i32>} : memref<6x8x128xf32, #tpu.memory_space<vmem>>, vector<1x8x128xf32>,
    %c0_197 = arith.constant 0 : index
    %c0_198 = arith.constant 0 : index
    %c0_199 = arith.constant 0 : index
    %550 = vector.load %arg1[%c0_197, %c0_198, %c0_199] : memref<6x8x1xi32, #tpu.memory_space<vmem>>, vector<1x8x1xi32>
    %551 = vector.shape_cast %550 : vector<1x8x1xi32> to vector<8x1xi32>
    %552 = vector.broadcast %551 : vector<8x1xi32> to vector<8x128xi32>
    %553 = arith.cmpi eq, %5, %552 : vector<8x128xi32>
    %554 = arith.extui %553 : vector<8x128xi1> to vector<8x128xi32>
    %555 = arith.sitofp %554 : vector<8x128xi32> to vector<8x128xf32>
    %cst_200 = arith.constant dense<0.000000e+00> : vector<8x32xf32>
    %556 = tpu.matmul %555, %1, %cst_200 {dimension_numbers = #tpu.dot_dimension_numbers<[1], [0], [0], [1], [0, 0, 1, 1], [], []>} : vector<8x128xf32>, vector<128x32xf32>, vector<8x32xf32> -> vector<8x32xf32>
    %c0_201 = arith.constant 0 : index
    %c0_202 = arith.constant 0 : index
    %c0_203 = arith.constant 0 : index
    %557 = vector.load %arg7[%c0_201, %c0_202, %c0_203] : memref<2x64x128xf32, #tpu.memory_space<vmem>>, vector<1x64x128xf32>
    %558 = vector.shape_cast %557 : vector<1x64x128xf32> to vector<64x128xf32>
    %c0_204 = arith.constant 0 : index
    %c0_205 = arith.constant 0 : index
    %c0_206 = arith.constant 0 : index
    %559 = vector.load %arg8[%c0_204, %c0_205, %c0_206] : memref<2x1x128xf32, #tpu.memory_space<vmem>>, vector<1x1x128xf32>
    %560 = vector.shape_cast %559 : vector<1x1x128xf32> to vector<1x128xf32>
    %561 = tpu.concatenate %556, %515 in 1 : vector<8x32xf32>, vector<8x32xf32> -> vector<8x64xf32>
    %cst_207 = arith.constant dense<0.000000e+00> : vector<8x128xf32>
    %562 = tpu.matmul %561, %558, %cst_207 {dimension_numbers = #tpu.dot_dimension_numbers<[1], [0], [0], [1], [0, 0, 1, 1], [], []>} : vector<8x64xf32>, vector<64x128xf32>, vector<8x128xf32> -> vector<8x128xf32>
    %563 = vector.broadcast %560 : vector<1x128xf32> to vector<8x128xf32>
    %564 = arith.addf %562, %563 : vector<8x128xf32>
    %565 = tpu.iota {dimensions = array<i32: 1>} : vector<8x128xi32>
    %c64_i32_208 = arith.constant 64 : i32
    %566 = vector.broadcast %c64_i32_208 : i32 to vector<8x128xi32>
    %567 = arith.cmpi sge, %565, %566 : vector<8x128xi32>
    %c96_i32_209 = arith.constant 96 : i32
    %568 = vector.broadcast %c96_i32_209 : i32 to vector<8x128xi32>
    %569 = arith.cmpi slt, %565, %568 : vector<8x128xi32>
    %570 = arith.andi %567, %569 : vector<8x128xi1>
    %571 = math.tanh %564 : vector<8x128xf32>
    %572 = arith.negf %564 : vector<8x128xf32>
    %573 = math.exp %572 : vector<8x128xf32>
    %cst_210 = arith.constant 1.000000e+00 : f32
    %574 = vector.broadcast %cst_210 : f32 to vector<8x128xf32>
    %575 = arith.addf %574, %573 : vector<8x128xf32>
    %576 = arith.divf %574, %575 : vector<8x128xf32>
    %577 = arith.select %570, %571, %576 : vector<8x128xi1>, vector<8x128xf32>
    %578 = vector.extract_strided_slice %577 {offsets = [0, 0], sizes = [8, 32], strides = [1, 1]} : vector<8x128xf32> to vector<8x32xf32>
    %579 = vector.extract_strided_slice %577 {offsets = [0, 32], sizes = [8, 32], strides = [1, 1]} : vector<8x128xf32> to vector<8x32xf32>
    %580 = vector.extract_strided_slice %577 {offsets = [0, 64], sizes = [8, 32], strides = [1, 1]} : vector<8x128xf32> to vector<8x32xf32>
    %581 = vector.extract_strided_slice %577 {offsets = [0, 96], sizes = [8, 32], strides = [1, 1]} : vector<8x128xf32> to vector<8x32xf32>
    %582 = arith.mulf %579, %513 : vector<8x32xf32>
    %583 = arith.mulf %578, %580 : vector<8x32xf32>
    %584 = arith.addf %582, %583 : vector<8x32xf32>
    %585 = math.tanh %584 : vector<8x32xf32>
    %586 = arith.mulf %581, %585 : vector<8x32xf32>
    %c1_211 = arith.constant 1 : index
    %c0_212 = arith.constant 0 : index
    %c0_213 = arith.constant 0 : index
    %587 = vector.load %arg7[%c1_211, %c0_212, %c0_213] : memref<2x64x128xf32, #tpu.memory_space<vmem>>, vector<1x64x128xf32>
    %588 = vector.shape_cast %587 : vector<1x64x128xf32> to vector<64x128xf32>
    %c1_214 = arith.constant 1 : index
    %c0_215 = arith.constant 0 : index
    %c0_216 = arith.constant 0 : index
    %589 = vector.load %arg8[%c1_214, %c0_215, %c0_216] : memref<2x1x128xf32, #tpu.memory_space<vmem>>, vector<1x1x128xf32>
    %590 = vector.shape_cast %589 : vector<1x1x128xf32> to vector<1x128xf32>
    %591 = tpu.concatenate %586, %545 in 1 : vector<8x32xf32>, vector<8x32xf32> -> vector<8x64xf32>
    %cst_217 = arith.constant dense<0.000000e+00> : vector<8x128xf32>
    %592 = tpu.matmul %591, %588, %cst_217 {dimension_numbers = #tpu.dot_dimension_numbers<[1], [0], [0], [1], [0, 0, 1, 1], [], []>} : vector<8x64xf32>, vector<64x128xf32>, vector<8x128xf32> -> vector<8x128xf32>
    %593 = vector.broadcast %590 : vector<1x128xf32> to vector<8x128xf32>
    %594 = arith.addf %592, %593 : vector<8x128xf32>
    %595 = tpu.iota {dimensions = array<i32: 1>} : vector<8x128xi32>
    %c64_i32_218 = arith.constant 64 : i32
    %596 = vector.broadcast %c64_i32_218 : i32 to vector<8x128xi32>
    %597 = arith.cmpi sge, %595, %596 : vector<8x128xi32>
    %c96_i32_219 = arith.constant 96 : i32
    %598 = vector.broadcast %c96_i32_219 : i32 to vector<8x128xi32>
    %599 = arith.cmpi slt, %595, %598 : vector<8x128xi32>
    %600 = arith.andi %597, %599 : vector<8x128xi1>
    %601 = math.tanh %594 : vector<8x128xf32>
    %602 = arith.negf %594 : vector<8x128xf32>
    %603 = math.exp %602 : vector<8x128xf32>
    %cst_220 = arith.constant 1.000000e+00 : f32
    %604 = vector.broadcast %cst_220 : f32 to vector<8x128xf32>
    %605 = arith.addf %604, %603 : vector<8x128xf32>
    %606 = arith.divf %604, %605 : vector<8x128xf32>
    %607 = arith.select %600, %601, %606 : vector<8x128xi1>, vector<8x128xf32>
    %608 = vector.extract_strided_slice %607 {offsets = [0, 0], sizes = [8, 32], strides = [1, 1]} : vector<8x128xf32> to vector<8x32xf32>
    %609 = vector.extract_strided_slice %607 {offsets = [0, 32], sizes = [8, 32], strides = [1, 1]} : vector<8x128xf32> to vector<8x32xf32>
    %610 = vector.extract_strided_slice %607 {offsets = [0, 64], sizes = [8, 32], strides = [1, 1]} : vector<8x128xf32> to vector<8x32xf32>
    %611 = vector.extract_strided_slice %607 {offsets = [0, 96], sizes = [8, 32], strides = [1, 1]} : vector<8x128xf32> to vector<8x32xf32>
    %612 = arith.mulf %609, %543 : vector<8x32xf32>
    %613 = arith.mulf %608, %610 : vector<8x32xf32>
    %614 = arith.addf %612, %613 : vector<8x32xf32>
    %615 = math.tanh %614 : vector<8x32xf32>
    %616 = arith.mulf %611, %615 : vector<8x32xf32>
    %cst_221 = arith.constant dense<0.000000e+00> : vector<8x128xf32>
    %617 = tpu.matmul %616, %2, %cst_221 {dimension_numbers = #tpu.dot_dimension_numbers<[1], [0], [0], [1], [0, 0, 1, 1], [], []>} : vector<8x32xf32>, vector<32x128xf32>, vector<8x128xf32> -> vector<8x128xf32>
    %618 = vector.broadcast %3 : vector<1x128xf32> to vector<8x128xf32>
    %619 = arith.addf %617, %618 : vector<8x128xf32>
    %c1_222 = arith.constant 1 : index
    %c0_223 = arith.constant 0 : index
    %c0_224 = arith.constant 0 : index
    %620 = vector.load %arg11[%c1_222, %c0_223, %c0_224] : memref<6x8x128xf32, #tpu.memory_space<vmem>>, vector<1x8x128xf32>
    %621 = vector.shape_cast %620 : vector<1x8x128xf32> to vector<8x128xf32>
    %622 = vector.shape_cast %619 : vector<8x128xf32> to vector<1x8x128xf32>
    tpu.vector_store %arg11[%c1_222, %c0_223, %c0_224], %622 {strides = array<i32>} : memref<6x8x128xf32, #tpu.memory_space<vmem>>, vector<1x8x128xf32>,
    %cst_225 = arith.constant dense<0xFF800000> : vector<8xf32>
    %623 = vector.multi_reduction <maximumf>, %619, %cst_225 [1] : vector<8x128xf32> to vector<8xf32>
    %624 = vector.shape_cast %623 : vector<8xf32> to vector<8x1xf32>
    %625 = tpu.iota {dimensions = array<i32: 1>} : vector<8x128xi32>
    %626 = vector.broadcast %624 : vector<8x1xf32> to vector<8x128xf32>
    %627 = arith.cmpf oeq, %619, %626 : vector<8x128xf32>
    %c128_i32 = arith.constant 128 : i32
    %628 = vector.broadcast %c128_i32 : i32 to vector<8x128xi32>
    %629 = arith.select %627, %625, %628 : vector<8x128xi1>, vector<8x128xi32>
    %cst_226 = arith.constant dense<2147483647> : vector<8xi32>
    %630 = vector.multi_reduction <minsi>, %629, %cst_226 [1] : vector<8x128xi32> to vector<8xi32>
    %631 = vector.shape_cast %630 : vector<8xi32> to vector<8x1xi32>
    %c1_227 = arith.constant 1 : index
    %c0_228 = arith.constant 0 : index
    %c0_229 = arith.constant 0 : index
    %632 = vector.load %arg2[%c1_227, %c0_228, %c0_229] : memref<6x1x1xi32, #tpu.memory_space<vmem>>, vector<1x1x1xi32>
    %633 = vector.shape_cast %632 : vector<1x1x1xi32> to vector<1x1xi32>
    %c0_i32 = arith.constant 0 : i32
    %634 = vector.broadcast %c0_i32 : i32 to vector<1x1xi32>
    %635 = arith.cmpi ne, %633, %634 : vector<1x1xi32>
    %c1_230 = arith.constant 1 : index
    %c0_231 = arith.constant 0 : index
    %c0_232 = arith.constant 0 : index
    %636 = vector.load %arg1[%c1_230, %c0_231, %c0_232] : memref<6x8x1xi32, #tpu.memory_space<vmem>>, vector<1x8x1xi32>
    %637 = vector.shape_cast %636 : vector<1x8x1xi32> to vector<8x1xi32>
    %638 = vector.shape_cast %635 : vector<1x1xi1> to vector<1x1xi1>
    %639 = vector.broadcast %638 : vector<1x1xi1> to vector<8x1xi1>
    %640 = arith.select %639, %637, %631 : vector<8x1xi1>, vector<8x1xi32>
    %641 = vector.broadcast %640 : vector<8x1xi32> to vector<8x128xi32>
    %642 = arith.cmpi eq, %5, %641 : vector<8x128xi32>
    %643 = arith.extui %642 : vector<8x128xi1> to vector<8x128xi32>
    %644 = arith.sitofp %643 : vector<8x128xi32> to vector<8x128xf32>
    %cst_233 = arith.constant dense<0.000000e+00> : vector<8x32xf32>
    %645 = tpu.matmul %644, %1, %cst_233 {dimension_numbers = #tpu.dot_dimension_numbers<[1], [0], [0], [1], [0, 0, 1, 1], [], []>} : vector<8x128xf32>, vector<128x32xf32>, vector<8x32xf32> -> vector<8x32xf32>
    %c0_234 = arith.constant 0 : index
    %c0_235 = arith.constant 0 : index
    %c0_236 = arith.constant 0 : index
    %646 = vector.load %arg7[%c0_234, %c0_235, %c0_236] : memref<2x64x128xf32, #tpu.memory_space<vmem>>, vector<1x64x128xf32>
    %647 = vector.shape_cast %646 : vector<1x64x128xf32> to vector<64x128xf32>
    %c0_237 = arith.constant 0 : index
    %c0_238 = arith.constant 0 : index
    %c0_239 = arith.constant 0 : index
    %648 = vector.load %arg8[%c0_237, %c0_238, %c0_239] : memref<2x1x128xf32, #tpu.memory_space<vmem>>, vector<1x1x128xf32>
    %649 = vector.shape_cast %648 : vector<1x1x128xf32> to vector<1x128xf32>
    %650 = tpu.concatenate %645, %586 in 1 : vector<8x32xf32>, vector<8x32xf32> -> vector<8x64xf32>
    %cst_240 = arith.constant dense<0.000000e+00> : vector<8x128xf32>
    %651 = tpu.matmul %650, %647, %cst_240 {dimension_numbers = #tpu.dot_dimension_numbers<[1], [0], [0], [1], [0, 0, 1, 1], [], []>} : vector<8x64xf32>, vector<64x128xf32>, vector<8x128xf32> -> vector<8x128xf32>
    %652 = vector.broadcast %649 : vector<1x128xf32> to vector<8x128xf32>
    %653 = arith.addf %651, %652 : vector<8x128xf32>
    %654 = tpu.iota {dimensions = array<i32: 1>} : vector<8x128xi32>
    %c64_i32_241 = arith.constant 64 : i32
    %655 = vector.broadcast %c64_i32_241 : i32 to vector<8x128xi32>
    %656 = arith.cmpi sge, %654, %655 : vector<8x128xi32>
    %c96_i32_242 = arith.constant 96 : i32
    %657 = vector.broadcast %c96_i32_242 : i32 to vector<8x128xi32>
    %658 = arith.cmpi slt, %654, %657 : vector<8x128xi32>
    %659 = arith.andi %656, %658 : vector<8x128xi1>
    %660 = math.tanh %653 : vector<8x128xf32>
    %661 = arith.negf %653 : vector<8x128xf32>
    %662 = math.exp %661 : vector<8x128xf32>
    %cst_243 = arith.constant 1.000000e+00 : f32
    %663 = vector.broadcast %cst_243 : f32 to vector<8x128xf32>
    %664 = arith.addf %663, %662 : vector<8x128xf32>
    %665 = arith.divf %663, %664 : vector<8x128xf32>
    %666 = arith.select %659, %660, %665 : vector<8x128xi1>, vector<8x128xf32>
    %667 = vector.extract_strided_slice %666 {offsets = [0, 0], sizes = [8, 32], strides = [1, 1]} : vector<8x128xf32> to vector<8x32xf32>
    %668 = vector.extract_strided_slice %666 {offsets = [0, 32], sizes = [8, 32], strides = [1, 1]} : vector<8x128xf32> to vector<8x32xf32>
    %669 = vector.extract_strided_slice %666 {offsets = [0, 64], sizes = [8, 32], strides = [1, 1]} : vector<8x128xf32> to vector<8x32xf32>
    %670 = vector.extract_strided_slice %666 {offsets = [0, 96], sizes = [8, 32], strides = [1, 1]} : vector<8x128xf32> to vector<8x32xf32>
    %671 = arith.mulf %668, %584 : vector<8x32xf32>
    %672 = arith.mulf %667, %669 : vector<8x32xf32>
    %673 = arith.addf %671, %672 : vector<8x32xf32>
    %674 = math.tanh %673 : vector<8x32xf32>
    %675 = arith.mulf %670, %674 : vector<8x32xf32>
    %c1_244 = arith.constant 1 : index
    %c0_245 = arith.constant 0 : index
    %c0_246 = arith.constant 0 : index
    %676 = vector.load %arg7[%c1_244, %c0_245, %c0_246] : memref<2x64x128xf32, #tpu.memory_space<vmem>>, vector<1x64x128xf32>
    %677 = vector.shape_cast %676 : vector<1x64x128xf32> to vector<64x128xf32>
    %c1_247 = arith.constant 1 : index
    %c0_248 = arith.constant 0 : index
    %c0_249 = arith.constant 0 : index
    %678 = vector.load %arg8[%c1_247, %c0_248, %c0_249] : memref<2x1x128xf32, #tpu.memory_space<vmem>>, vector<1x1x128xf32>
    %679 = vector.shape_cast %678 : vector<1x1x128xf32> to vector<1x128xf32>
    %680 = tpu.concatenate %675, %616 in 1 : vector<8x32xf32>, vector<8x32xf32> -> vector<8x64xf32>
    %cst_250 = arith.constant dense<0.000000e+00> : vector<8x128xf32>
    %681 = tpu.matmul %680, %677, %cst_250 {dimension_numbers = #tpu.dot_dimension_numbers<[1], [0], [0], [1], [0, 0, 1, 1], [], []>} : vector<8x64xf32>, vector<64x128xf32>, vector<8x128xf32> -> vector<8x128xf32>
    %682 = vector.broadcast %679 : vector<1x128xf32> to vector<8x128xf32>
    %683 = arith.addf %681, %682 : vector<8x128xf32>
    %684 = tpu.iota {dimensions = array<i32: 1>} : vector<8x128xi32>
    %c64_i32_251 = arith.constant 64 : i32
    %685 = vector.broadcast %c64_i32_251 : i32 to vector<8x128xi32>
    %686 = arith.cmpi sge, %684, %685 : vector<8x128xi32>
    %c96_i32_252 = arith.constant 96 : i32
    %687 = vector.broadcast %c96_i32_252 : i32 to vector<8x128xi32>
    %688 = arith.cmpi slt, %684, %687 : vector<8x128xi32>
    %689 = arith.andi %686, %688 : vector<8x128xi1>
    %690 = math.tanh %683 : vector<8x128xf32>
    %691 = arith.negf %683 : vector<8x128xf32>
    %692 = math.exp %691 : vector<8x128xf32>
    %cst_253 = arith.constant 1.000000e+00 : f32
    %693 = vector.broadcast %cst_253 : f32 to vector<8x128xf32>
    %694 = arith.addf %693, %692 : vector<8x128xf32>
    %695 = arith.divf %693, %694 : vector<8x128xf32>
    %696 = arith.select %689, %690, %695 : vector<8x128xi1>, vector<8x128xf32>
    %697 = vector.extract_strided_slice %696 {offsets = [0, 0], sizes = [8, 32], strides = [1, 1]} : vector<8x128xf32> to vector<8x32xf32>
    %698 = vector.extract_strided_slice %696 {offsets = [0, 32], sizes = [8, 32], strides = [1, 1]} : vector<8x128xf32> to vector<8x32xf32>
    %699 = vector.extract_strided_slice %696 {offsets = [0, 64], sizes = [8, 32], strides = [1, 1]} : vector<8x128xf32> to vector<8x32xf32>
    %700 = vector.extract_strided_slice %696 {offsets = [0, 96], sizes = [8, 32], strides = [1, 1]} : vector<8x128xf32> to vector<8x32xf32>
    %701 = arith.mulf %698, %614 : vector<8x32xf32>
    %702 = arith.mulf %697, %699 : vector<8x32xf32>
    %703 = arith.addf %701, %702 : vector<8x32xf32>
    %704 = math.tanh %703 : vector<8x32xf32>
    %705 = arith.mulf %700, %704 : vector<8x32xf32>
    %cst_254 = arith.constant dense<0.000000e+00> : vector<8x128xf32>
    %706 = tpu.matmul %705, %2, %cst_254 {dimension_numbers = #tpu.dot_dimension_numbers<[1], [0], [0], [1], [0, 0, 1, 1], [], []>} : vector<8x32xf32>, vector<32x128xf32>, vector<8x128xf32> -> vector<8x128xf32>
    %707 = vector.broadcast %3 : vector<1x128xf32> to vector<8x128xf32>
    %708 = arith.addf %706, %707 : vector<8x128xf32>
    %c2_255 = arith.constant 2 : index
    %c0_256 = arith.constant 0 : index
    %c0_257 = arith.constant 0 : index
    %709 = vector.load %arg11[%c2_255, %c0_256, %c0_257] : memref<6x8x128xf32, #tpu.memory_space<vmem>>, vector<1x8x128xf32>
    %710 = vector.shape_cast %709 : vector<1x8x128xf32> to vector<8x128xf32>
    %711 = vector.shape_cast %708 : vector<8x128xf32> to vector<1x8x128xf32>
    tpu.vector_store %arg11[%c2_255, %c0_256, %c0_257], %711 {strides = array<i32>} : memref<6x8x128xf32, #tpu.memory_space<vmem>>, vector<1x8x128xf32>,
    %cst_258 = arith.constant dense<0xFF800000> : vector<8xf32>
    %712 = vector.multi_reduction <maximumf>, %708, %cst_258 [1] : vector<8x128xf32> to vector<8xf32>
    %713 = vector.shape_cast %712 : vector<8xf32> to vector<8x1xf32>
    %714 = tpu.iota {dimensions = array<i32: 1>} : vector<8x128xi32>
    %715 = vector.broadcast %713 : vector<8x1xf32> to vector<8x128xf32>
    %716 = arith.cmpf oeq, %708, %715 : vector<8x128xf32>
    %c128_i32_259 = arith.constant 128 : i32
    %717 = vector.broadcast %c128_i32_259 : i32 to vector<8x128xi32>
    %718 = arith.select %716, %714, %717 : vector<8x128xi1>, vector<8x128xi32>
    %cst_260 = arith.constant dense<2147483647> : vector<8xi32>
    %719 = vector.multi_reduction <minsi>, %718, %cst_260 [1] : vector<8x128xi32> to vector<8xi32>
    %720 = vector.shape_cast %719 : vector<8xi32> to vector<8x1xi32>
    %c2_261 = arith.constant 2 : index
    %c0_262 = arith.constant 0 : index
    %c0_263 = arith.constant 0 : index
    %721 = vector.load %arg2[%c2_261, %c0_262, %c0_263] : memref<6x1x1xi32, #tpu.memory_space<vmem>>, vector<1x1x1xi32>
    %722 = vector.shape_cast %721 : vector<1x1x1xi32> to vector<1x1xi32>
    %c0_i32_264 = arith.constant 0 : i32
    %723 = vector.broadcast %c0_i32_264 : i32 to vector<1x1xi32>
    %724 = arith.cmpi ne, %722, %723 : vector<1x1xi32>
    %c2_265 = arith.constant 2 : index
    %c0_266 = arith.constant 0 : index
    %c0_267 = arith.constant 0 : index
    %725 = vector.load %arg1[%c2_265, %c0_266, %c0_267] : memref<6x8x1xi32, #tpu.memory_space<vmem>>, vector<1x8x1xi32>
    %726 = vector.shape_cast %725 : vector<1x8x1xi32> to vector<8x1xi32>
    %727 = vector.shape_cast %724 : vector<1x1xi1> to vector<1x1xi1>
    %728 = vector.broadcast %727 : vector<1x1xi1> to vector<8x1xi1>
    %729 = arith.select %728, %726, %720 : vector<8x1xi1>, vector<8x1xi32>
    %730 = vector.broadcast %729 : vector<8x1xi32> to vector<8x128xi32>
    %731 = arith.cmpi eq, %5, %730 : vector<8x128xi32>
    %732 = arith.extui %731 : vector<8x128xi1> to vector<8x128xi32>
    %733 = arith.sitofp %732 : vector<8x128xi32> to vector<8x128xf32>
    %cst_268 = arith.constant dense<0.000000e+00> : vector<8x32xf32>
    %734 = tpu.matmul %733, %1, %cst_268 {dimension_numbers = #tpu.dot_dimension_numbers<[1], [0], [0], [1], [0, 0, 1, 1], [], []>} : vector<8x128xf32>, vector<128x32xf32>, vector<8x32xf32> -> vector<8x32xf32>
    %c0_269 = arith.constant 0 : index
    %c0_270 = arith.constant 0 : index
    %c0_271 = arith.constant 0 : index
    %735 = vector.load %arg7[%c0_269, %c0_270, %c0_271] : memref<2x64x128xf32, #tpu.memory_space<vmem>>, vector<1x64x128xf32>
    %736 = vector.shape_cast %735 : vector<1x64x128xf32> to vector<64x128xf32>
    %c0_272 = arith.constant 0 : index
    %c0_273 = arith.constant 0 : index
    %c0_274 = arith.constant 0 : index
    %737 = vector.load %arg8[%c0_272, %c0_273, %c0_274] : memref<2x1x128xf32, #tpu.memory_space<vmem>>, vector<1x1x128xf32>
    %738 = vector.shape_cast %737 : vector<1x1x128xf32> to vector<1x128xf32>
    %739 = tpu.concatenate %734, %675 in 1 : vector<8x32xf32>, vector<8x32xf32> -> vector<8x64xf32>
    %cst_275 = arith.constant dense<0.000000e+00> : vector<8x128xf32>
    %740 = tpu.matmul %739, %736, %cst_275 {dimension_numbers = #tpu.dot_dimension_numbers<[1], [0], [0], [1], [0, 0, 1, 1], [], []>} : vector<8x64xf32>, vector<64x128xf32>, vector<8x128xf32> -> vector<8x128xf32>
    %741 = vector.broadcast %738 : vector<1x128xf32> to vector<8x128xf32>
    %742 = arith.addf %740, %741 : vector<8x128xf32>
    %743 = tpu.iota {dimensions = array<i32: 1>} : vector<8x128xi32>
    %c64_i32_276 = arith.constant 64 : i32
    %744 = vector.broadcast %c64_i32_276 : i32 to vector<8x128xi32>
    %745 = arith.cmpi sge, %743, %744 : vector<8x128xi32>
    %c96_i32_277 = arith.constant 96 : i32
    %746 = vector.broadcast %c96_i32_277 : i32 to vector<8x128xi32>
    %747 = arith.cmpi slt, %743, %746 : vector<8x128xi32>
    %748 = arith.andi %745, %747 : vector<8x128xi1>
    %749 = math.tanh %742 : vector<8x128xf32>
    %750 = arith.negf %742 : vector<8x128xf32>
    %751 = math.exp %750 : vector<8x128xf32>
    %cst_278 = arith.constant 1.000000e+00 : f32
    %752 = vector.broadcast %cst_278 : f32 to vector<8x128xf32>
    %753 = arith.addf %752, %751 : vector<8x128xf32>
    %754 = arith.divf %752, %753 : vector<8x128xf32>
    %755 = arith.select %748, %749, %754 : vector<8x128xi1>, vector<8x128xf32>
    %756 = vector.extract_strided_slice %755 {offsets = [0, 0], sizes = [8, 32], strides = [1, 1]} : vector<8x128xf32> to vector<8x32xf32>
    %757 = vector.extract_strided_slice %755 {offsets = [0, 32], sizes = [8, 32], strides = [1, 1]} : vector<8x128xf32> to vector<8x32xf32>
    %758 = vector.extract_strided_slice %755 {offsets = [0, 64], sizes = [8, 32], strides = [1, 1]} : vector<8x128xf32> to vector<8x32xf32>
    %759 = vector.extract_strided_slice %755 {offsets = [0, 96], sizes = [8, 32], strides = [1, 1]} : vector<8x128xf32> to vector<8x32xf32>
    %760 = arith.mulf %757, %673 : vector<8x32xf32>
    %761 = arith.mulf %756, %758 : vector<8x32xf32>
    %762 = arith.addf %760, %761 : vector<8x32xf32>
    %763 = math.tanh %762 : vector<8x32xf32>
    %764 = arith.mulf %759, %763 : vector<8x32xf32>
    %c1_279 = arith.constant 1 : index
    %c0_280 = arith.constant 0 : index
    %c0_281 = arith.constant 0 : index
    %765 = vector.load %arg7[%c1_279, %c0_280, %c0_281] : memref<2x64x128xf32, #tpu.memory_space<vmem>>, vector<1x64x128xf32>
    %766 = vector.shape_cast %765 : vector<1x64x128xf32> to vector<64x128xf32>
    %c1_282 = arith.constant 1 : index
    %c0_283 = arith.constant 0 : index
    %c0_284 = arith.constant 0 : index
    %767 = vector.load %arg8[%c1_282, %c0_283, %c0_284] : memref<2x1x128xf32, #tpu.memory_space<vmem>>, vector<1x1x128xf32>
    %768 = vector.shape_cast %767 : vector<1x1x128xf32> to vector<1x128xf32>
    %769 = tpu.concatenate %764, %705 in 1 : vector<8x32xf32>, vector<8x32xf32> -> vector<8x64xf32>
    %cst_285 = arith.constant dense<0.000000e+00> : vector<8x128xf32>
    %770 = tpu.matmul %769, %766, %cst_285 {dimension_numbers = #tpu.dot_dimension_numbers<[1], [0], [0], [1], [0, 0, 1, 1], [], []>} : vector<8x64xf32>, vector<64x128xf32>, vector<8x128xf32> -> vector<8x128xf32>
    %771 = vector.broadcast %768 : vector<1x128xf32> to vector<8x128xf32>
    %772 = arith.addf %770, %771 : vector<8x128xf32>
    %773 = tpu.iota {dimensions = array<i32: 1>} : vector<8x128xi32>
    %c64_i32_286 = arith.constant 64 : i32
    %774 = vector.broadcast %c64_i32_286 : i32 to vector<8x128xi32>
    %775 = arith.cmpi sge, %773, %774 : vector<8x128xi32>
    %c96_i32_287 = arith.constant 96 : i32
    %776 = vector.broadcast %c96_i32_287 : i32 to vector<8x128xi32>
    %777 = arith.cmpi slt, %773, %776 : vector<8x128xi32>
    %778 = arith.andi %775, %777 : vector<8x128xi1>
    %779 = math.tanh %772 : vector<8x128xf32>
    %780 = arith.negf %772 : vector<8x128xf32>
    %781 = math.exp %780 : vector<8x128xf32>
    %cst_288 = arith.constant 1.000000e+00 : f32
    %782 = vector.broadcast %cst_288 : f32 to vector<8x128xf32>
    %783 = arith.addf %782, %781 : vector<8x128xf32>
    %784 = arith.divf %782, %783 : vector<8x128xf32>
    %785 = arith.select %778, %779, %784 : vector<8x128xi1>, vector<8x128xf32>
    %786 = vector.extract_strided_slice %785 {offsets = [0, 0], sizes = [8, 32], strides = [1, 1]} : vector<8x128xf32> to vector<8x32xf32>
    %787 = vector.extract_strided_slice %785 {offsets = [0, 32], sizes = [8, 32], strides = [1, 1]} : vector<8x128xf32> to vector<8x32xf32>
    %788 = vector.extract_strided_slice %785 {offsets = [0, 64], sizes = [8, 32], strides = [1, 1]} : vector<8x128xf32> to vector<8x32xf32>
    %789 = vector.extract_strided_slice %785 {offsets = [0, 96], sizes = [8, 32], strides = [1, 1]} : vector<8x128xf32> to vector<8x32xf32>
    %790 = arith.mulf %787, %703 : vector<8x32xf32>
    %791 = arith.mulf %786, %788 : vector<8x32xf32>
    %792 = arith.addf %790, %791 : vector<8x32xf32>
    %793 = math.tanh %792 : vector<8x32xf32>
    %794 = arith.mulf %789, %793 : vector<8x32xf32>
    %cst_289 = arith.constant dense<0.000000e+00> : vector<8x128xf32>
    %795 = tpu.matmul %794, %2, %cst_289 {dimension_numbers = #tpu.dot_dimension_numbers<[1], [0], [0], [1], [0, 0, 1, 1], [], []>} : vector<8x32xf32>, vector<32x128xf32>, vector<8x128xf32> -> vector<8x128xf32>
    %796 = vector.broadcast %3 : vector<1x128xf32> to vector<8x128xf32>
    %797 = arith.addf %795, %796 : vector<8x128xf32>
    %c3_290 = arith.constant 3 : index
    %c0_291 = arith.constant 0 : index
    %c0_292 = arith.constant 0 : index
    %798 = vector.load %arg11[%c3_290, %c0_291, %c0_292] : memref<6x8x128xf32, #tpu.memory_space<vmem>>, vector<1x8x128xf32>
    %799 = vector.shape_cast %798 : vector<1x8x128xf32> to vector<8x128xf32>
    %800 = vector.shape_cast %797 : vector<8x128xf32> to vector<1x8x128xf32>
    tpu.vector_store %arg11[%c3_290, %c0_291, %c0_292], %800 {strides = array<i32>} : memref<6x8x128xf32, #tpu.memory_space<vmem>>, vector<1x8x128xf32>,
    %cst_293 = arith.constant dense<0xFF800000> : vector<8xf32>
    %801 = vector.multi_reduction <maximumf>, %797, %cst_293 [1] : vector<8x128xf32> to vector<8xf32>
    %802 = vector.shape_cast %801 : vector<8xf32> to vector<8x1xf32>
    %803 = tpu.iota {dimensions = array<i32: 1>} : vector<8x128xi32>
    %804 = vector.broadcast %802 : vector<8x1xf32> to vector<8x128xf32>
    %805 = arith.cmpf oeq, %797, %804 : vector<8x128xf32>
    %c128_i32_294 = arith.constant 128 : i32
    %806 = vector.broadcast %c128_i32_294 : i32 to vector<8x128xi32>
    %807 = arith.select %805, %803, %806 : vector<8x128xi1>, vector<8x128xi32>
    %cst_295 = arith.constant dense<2147483647> : vector<8xi32>
    %808 = vector.multi_reduction <minsi>, %807, %cst_295 [1] : vector<8x128xi32> to vector<8xi32>
    %809 = vector.shape_cast %808 : vector<8xi32> to vector<8x1xi32>
    %c3_296 = arith.constant 3 : index
    %c0_297 = arith.constant 0 : index
    %c0_298 = arith.constant 0 : index
    %810 = vector.load %arg2[%c3_296, %c0_297, %c0_298] : memref<6x1x1xi32, #tpu.memory_space<vmem>>, vector<1x1x1xi32>
    %811 = vector.shape_cast %810 : vector<1x1x1xi32> to vector<1x1xi32>
    %c0_i32_299 = arith.constant 0 : i32
    %812 = vector.broadcast %c0_i32_299 : i32 to vector<1x1xi32>
    %813 = arith.cmpi ne, %811, %812 : vector<1x1xi32>
    %c3_300 = arith.constant 3 : index
    %c0_301 = arith.constant 0 : index
    %c0_302 = arith.constant 0 : index
    %814 = vector.load %arg1[%c3_300, %c0_301, %c0_302] : memref<6x8x1xi32, #tpu.memory_space<vmem>>, vector<1x8x1xi32>
    %815 = vector.shape_cast %814 : vector<1x8x1xi32> to vector<8x1xi32>
    %816 = vector.shape_cast %813 : vector<1x1xi1> to vector<1x1xi1>
    %817 = vector.broadcast %816 : vector<1x1xi1> to vector<8x1xi1>
    %818 = arith.select %817, %815, %809 : vector<8x1xi1>, vector<8x1xi32>
    %819 = vector.broadcast %818 : vector<8x1xi32> to vector<8x128xi32>
    %820 = arith.cmpi eq, %5, %819 : vector<8x128xi32>
    %821 = arith.extui %820 : vector<8x128xi1> to vector<8x128xi32>
    %822 = arith.sitofp %821 : vector<8x128xi32> to vector<8x128xf32>
    %cst_303 = arith.constant dense<0.000000e+00> : vector<8x32xf32>
    %823 = tpu.matmul %822, %1, %cst_303 {dimension_numbers = #tpu.dot_dimension_numbers<[1], [0], [0], [1], [0, 0, 1, 1], [], []>} : vector<8x128xf32>, vector<128x32xf32>, vector<8x32xf32> -> vector<8x32xf32>
    %c0_304 = arith.constant 0 : index
    %c0_305 = arith.constant 0 : index
    %c0_306 = arith.constant 0 : index
    %824 = vector.load %arg7[%c0_304, %c0_305, %c0_306] : memref<2x64x128xf32, #tpu.memory_space<vmem>>, vector<1x64x128xf32>
    %825 = vector.shape_cast %824 : vector<1x64x128xf32> to vector<64x128xf32>
    %c0_307 = arith.constant 0 : index
    %c0_308 = arith.constant 0 : index
    %c0_309 = arith.constant 0 : index
    %826 = vector.load %arg8[%c0_307, %c0_308, %c0_309] : memref<2x1x128xf32, #tpu.memory_space<vmem>>, vector<1x1x128xf32>
    %827 = vector.shape_cast %826 : vector<1x1x128xf32> to vector<1x128xf32>
    %828 = tpu.concatenate %823, %764 in 1 : vector<8x32xf32>, vector<8x32xf32> -> vector<8x64xf32>
    %cst_310 = arith.constant dense<0.000000e+00> : vector<8x128xf32>
    %829 = tpu.matmul %828, %825, %cst_310 {dimension_numbers = #tpu.dot_dimension_numbers<[1], [0], [0], [1], [0, 0, 1, 1], [], []>} : vector<8x64xf32>, vector<64x128xf32>, vector<8x128xf32> -> vector<8x128xf32>
    %830 = vector.broadcast %827 : vector<1x128xf32> to vector<8x128xf32>
    %831 = arith.addf %829, %830 : vector<8x128xf32>
    %832 = tpu.iota {dimensions = array<i32: 1>} : vector<8x128xi32>
    %c64_i32_311 = arith.constant 64 : i32
    %833 = vector.broadcast %c64_i32_311 : i32 to vector<8x128xi32>
    %834 = arith.cmpi sge, %832, %833 : vector<8x128xi32>
    %c96_i32_312 = arith.constant 96 : i32
    %835 = vector.broadcast %c96_i32_312 : i32 to vector<8x128xi32>
    %836 = arith.cmpi slt, %832, %835 : vector<8x128xi32>
    %837 = arith.andi %834, %836 : vector<8x128xi1>
    %838 = math.tanh %831 : vector<8x128xf32>
    %839 = arith.negf %831 : vector<8x128xf32>
    %840 = math.exp %839 : vector<8x128xf32>
    %cst_313 = arith.constant 1.000000e+00 : f32
    %841 = vector.broadcast %cst_313 : f32 to vector<8x128xf32>
    %842 = arith.addf %841, %840 : vector<8x128xf32>
    %843 = arith.divf %841, %842 : vector<8x128xf32>
    %844 = arith.select %837, %838, %843 : vector<8x128xi1>, vector<8x128xf32>
    %845 = vector.extract_strided_slice %844 {offsets = [0, 0], sizes = [8, 32], strides = [1, 1]} : vector<8x128xf32> to vector<8x32xf32>
    %846 = vector.extract_strided_slice %844 {offsets = [0, 32], sizes = [8, 32], strides = [1, 1]} : vector<8x128xf32> to vector<8x32xf32>
    %847 = vector.extract_strided_slice %844 {offsets = [0, 64], sizes = [8, 32], strides = [1, 1]} : vector<8x128xf32> to vector<8x32xf32>
    %848 = vector.extract_strided_slice %844 {offsets = [0, 96], sizes = [8, 32], strides = [1, 1]} : vector<8x128xf32> to vector<8x32xf32>
    %849 = arith.mulf %846, %762 : vector<8x32xf32>
    %850 = arith.mulf %845, %847 : vector<8x32xf32>
    %851 = arith.addf %849, %850 : vector<8x32xf32>
    %852 = math.tanh %851 : vector<8x32xf32>
    %853 = arith.mulf %848, %852 : vector<8x32xf32>
    %c1_314 = arith.constant 1 : index
    %c0_315 = arith.constant 0 : index
    %c0_316 = arith.constant 0 : index
    %854 = vector.load %arg7[%c1_314, %c0_315, %c0_316] : memref<2x64x128xf32, #tpu.memory_space<vmem>>, vector<1x64x128xf32>
    %855 = vector.shape_cast %854 : vector<1x64x128xf32> to vector<64x128xf32>
    %c1_317 = arith.constant 1 : index
    %c0_318 = arith.constant 0 : index
    %c0_319 = arith.constant 0 : index
    %856 = vector.load %arg8[%c1_317, %c0_318, %c0_319] : memref<2x1x128xf32, #tpu.memory_space<vmem>>, vector<1x1x128xf32>
    %857 = vector.shape_cast %856 : vector<1x1x128xf32> to vector<1x128xf32>
    %858 = tpu.concatenate %853, %794 in 1 : vector<8x32xf32>, vector<8x32xf32> -> vector<8x64xf32>
    %cst_320 = arith.constant dense<0.000000e+00> : vector<8x128xf32>
    %859 = tpu.matmul %858, %855, %cst_320 {dimension_numbers = #tpu.dot_dimension_numbers<[1], [0], [0], [1], [0, 0, 1, 1], [], []>} : vector<8x64xf32>, vector<64x128xf32>, vector<8x128xf32> -> vector<8x128xf32>
    %860 = vector.broadcast %857 : vector<1x128xf32> to vector<8x128xf32>
    %861 = arith.addf %859, %860 : vector<8x128xf32>
    %862 = tpu.iota {dimensions = array<i32: 1>} : vector<8x128xi32>
    %c64_i32_321 = arith.constant 64 : i32
    %863 = vector.broadcast %c64_i32_321 : i32 to vector<8x128xi32>
    %864 = arith.cmpi sge, %862, %863 : vector<8x128xi32>
    %c96_i32_322 = arith.constant 96 : i32
    %865 = vector.broadcast %c96_i32_322 : i32 to vector<8x128xi32>
    %866 = arith.cmpi slt, %862, %865 : vector<8x128xi32>
    %867 = arith.andi %864, %866 : vector<8x128xi1>
    %868 = math.tanh %861 : vector<8x128xf32>
    %869 = arith.negf %861 : vector<8x128xf32>
    %870 = math.exp %869 : vector<8x128xf32>
    %cst_323 = arith.constant 1.000000e+00 : f32
    %871 = vector.broadcast %cst_323 : f32 to vector<8x128xf32>
    %872 = arith.addf %871, %870 : vector<8x128xf32>
    %873 = arith.divf %871, %872 : vector<8x128xf32>
    %874 = arith.select %867, %868, %873 : vector<8x128xi1>, vector<8x128xf32>
    %875 = vector.extract_strided_slice %874 {offsets = [0, 0], sizes = [8, 32], strides = [1, 1]} : vector<8x128xf32> to vector<8x32xf32>
    %876 = vector.extract_strided_slice %874 {offsets = [0, 32], sizes = [8, 32], strides = [1, 1]} : vector<8x128xf32> to vector<8x32xf32>
    %877 = vector.extract_strided_slice %874 {offsets = [0, 64], sizes = [8, 32], strides = [1, 1]} : vector<8x128xf32> to vector<8x32xf32>
    %878 = vector.extract_strided_slice %874 {offsets = [0, 96], sizes = [8, 32], strides = [1, 1]} : vector<8x128xf32> to vector<8x32xf32>
    %879 = arith.mulf %876, %792 : vector<8x32xf32>
    %880 = arith.mulf %875, %877 : vector<8x32xf32>
    %881 = arith.addf %879, %880 : vector<8x32xf32>
    %882 = math.tanh %881 : vector<8x32xf32>
    %883 = arith.mulf %878, %882 : vector<8x32xf32>
    %cst_324 = arith.constant dense<0.000000e+00> : vector<8x128xf32>
    %884 = tpu.matmul %883, %2, %cst_324 {dimension_numbers = #tpu.dot_dimension_numbers<[1], [0], [0], [1], [0, 0, 1, 1], [], []>} : vector<8x32xf32>, vector<32x128xf32>, vector<8x128xf32> -> vector<8x128xf32>
    %885 = vector.broadcast %3 : vector<1x128xf32> to vector<8x128xf32>
    %886 = arith.addf %884, %885 : vector<8x128xf32>
    %c4_325 = arith.constant 4 : index
    %c0_326 = arith.constant 0 : index
    %c0_327 = arith.constant 0 : index
    %887 = vector.load %arg11[%c4_325, %c0_326, %c0_327] : memref<6x8x128xf32, #tpu.memory_space<vmem>>, vector<1x8x128xf32>
    %888 = vector.shape_cast %887 : vector<1x8x128xf32> to vector<8x128xf32>
    %889 = vector.shape_cast %886 : vector<8x128xf32> to vector<1x8x128xf32>
    tpu.vector_store %arg11[%c4_325, %c0_326, %c0_327], %889 {strides = array<i32>} : memref<6x8x128xf32, #tpu.memory_space<vmem>>, vector<1x8x128xf32>,
    %cst_328 = arith.constant dense<0xFF800000> : vector<8xf32>
    %890 = vector.multi_reduction <maximumf>, %886, %cst_328 [1] : vector<8x128xf32> to vector<8xf32>
    %891 = vector.shape_cast %890 : vector<8xf32> to vector<8x1xf32>
    %892 = tpu.iota {dimensions = array<i32: 1>} : vector<8x128xi32>
    %893 = vector.broadcast %891 : vector<8x1xf32> to vector<8x128xf32>
    %894 = arith.cmpf oeq, %886, %893 : vector<8x128xf32>
    %c128_i32_329 = arith.constant 128 : i32
    %895 = vector.broadcast %c128_i32_329 : i32 to vector<8x128xi32>
    %896 = arith.select %894, %892, %895 : vector<8x128xi1>, vector<8x128xi32>
    %cst_330 = arith.constant dense<2147483647> : vector<8xi32>
    %897 = vector.multi_reduction <minsi>, %896, %cst_330 [1] : vector<8x128xi32> to vector<8xi32>
    %898 = vector.shape_cast %897 : vector<8xi32> to vector<8x1xi32>
    %c4_331 = arith.constant 4 : index
    %c0_332 = arith.constant 0 : index
    %c0_333 = arith.constant 0 : index
    %899 = vector.load %arg2[%c4_331, %c0_332, %c0_333] : memref<6x1x1xi32, #tpu.memory_space<vmem>>, vector<1x1x1xi32>
    %900 = vector.shape_cast %899 : vector<1x1x1xi32> to vector<1x1xi32>
    %c0_i32_334 = arith.constant 0 : i32
    %901 = vector.broadcast %c0_i32_334 : i32 to vector<1x1xi32>
    %902 = arith.cmpi ne, %900, %901 : vector<1x1xi32>
    %c4_335 = arith.constant 4 : index
    %c0_336 = arith.constant 0 : index
    %c0_337 = arith.constant 0 : index
    %903 = vector.load %arg1[%c4_335, %c0_336, %c0_337] : memref<6x8x1xi32, #tpu.memory_space<vmem>>, vector<1x8x1xi32>
    %904 = vector.shape_cast %903 : vector<1x8x1xi32> to vector<8x1xi32>
    %905 = vector.shape_cast %902 : vector<1x1xi1> to vector<1x1xi1>
    %906 = vector.broadcast %905 : vector<1x1xi1> to vector<8x1xi1>
    %907 = arith.select %906, %904, %898 : vector<8x1xi1>, vector<8x1xi32>
    %908 = vector.broadcast %907 : vector<8x1xi32> to vector<8x128xi32>
    %909 = arith.cmpi eq, %5, %908 : vector<8x128xi32>
    %910 = arith.extui %909 : vector<8x128xi1> to vector<8x128xi32>
    %911 = arith.sitofp %910 : vector<8x128xi32> to vector<8x128xf32>
    %cst_338 = arith.constant dense<0.000000e+00> : vector<8x32xf32>
    %912 = tpu.matmul %911, %1, %cst_338 {dimension_numbers = #tpu.dot_dimension_numbers<[1], [0], [0], [1], [0, 0, 1, 1], [], []>} : vector<8x128xf32>, vector<128x32xf32>, vector<8x32xf32> -> vector<8x32xf32>
    %c0_339 = arith.constant 0 : index
    %c0_340 = arith.constant 0 : index
    %c0_341 = arith.constant 0 : index
    %913 = vector.load %arg7[%c0_339, %c0_340, %c0_341] : memref<2x64x128xf32, #tpu.memory_space<vmem>>, vector<1x64x128xf32>
    %914 = vector.shape_cast %913 : vector<1x64x128xf32> to vector<64x128xf32>
    %c0_342 = arith.constant 0 : index
    %c0_343 = arith.constant 0 : index
    %c0_344 = arith.constant 0 : index
    %915 = vector.load %arg8[%c0_342, %c0_343, %c0_344] : memref<2x1x128xf32, #tpu.memory_space<vmem>>, vector<1x1x128xf32>
    %916 = vector.shape_cast %915 : vector<1x1x128xf32> to vector<1x128xf32>
    %917 = tpu.concatenate %912, %853 in 1 : vector<8x32xf32>, vector<8x32xf32> -> vector<8x64xf32>
    %cst_345 = arith.constant dense<0.000000e+00> : vector<8x128xf32>
    %918 = tpu.matmul %917, %914, %cst_345 {dimension_numbers = #tpu.dot_dimension_numbers<[1], [0], [0], [1], [0, 0, 1, 1], [], []>} : vector<8x64xf32>, vector<64x128xf32>, vector<8x128xf32> -> vector<8x128xf32>
    %919 = vector.broadcast %916 : vector<1x128xf32> to vector<8x128xf32>
    %920 = arith.addf %918, %919 : vector<8x128xf32>
    %921 = tpu.iota {dimensions = array<i32: 1>} : vector<8x128xi32>
    %c64_i32_346 = arith.constant 64 : i32
    %922 = vector.broadcast %c64_i32_346 : i32 to vector<8x128xi32>
    %923 = arith.cmpi sge, %921, %922 : vector<8x128xi32>
    %c96_i32_347 = arith.constant 96 : i32
    %924 = vector.broadcast %c96_i32_347 : i32 to vector<8x128xi32>
    %925 = arith.cmpi slt, %921, %924 : vector<8x128xi32>
    %926 = arith.andi %923, %925 : vector<8x128xi1>
    %927 = math.tanh %920 : vector<8x128xf32>
    %928 = arith.negf %920 : vector<8x128xf32>
    %929 = math.exp %928 : vector<8x128xf32>
    %cst_348 = arith.constant 1.000000e+00 : f32
    %930 = vector.broadcast %cst_348 : f32 to vector<8x128xf32>
    %931 = arith.addf %930, %929 : vector<8x128xf32>
    %932 = arith.divf %930, %931 : vector<8x128xf32>
    %933 = arith.select %926, %927, %932 : vector<8x128xi1>, vector<8x128xf32>
    %934 = vector.extract_strided_slice %933 {offsets = [0, 0], sizes = [8, 32], strides = [1, 1]} : vector<8x128xf32> to vector<8x32xf32>
    %935 = vector.extract_strided_slice %933 {offsets = [0, 32], sizes = [8, 32], strides = [1, 1]} : vector<8x128xf32> to vector<8x32xf32>
    %936 = vector.extract_strided_slice %933 {offsets = [0, 64], sizes = [8, 32], strides = [1, 1]} : vector<8x128xf32> to vector<8x32xf32>
    %937 = vector.extract_strided_slice %933 {offsets = [0, 96], sizes = [8, 32], strides = [1, 1]} : vector<8x128xf32> to vector<8x32xf32>
    %938 = arith.mulf %935, %851 : vector<8x32xf32>
    %939 = arith.mulf %934, %936 : vector<8x32xf32>
    %940 = arith.addf %938, %939 : vector<8x32xf32>
    %941 = math.tanh %940 : vector<8x32xf32>
    %942 = arith.mulf %937, %941 : vector<8x32xf32>
    %c1_349 = arith.constant 1 : index
    %c0_350 = arith.constant 0 : index
    %c0_351 = arith.constant 0 : index
    %943 = vector.load %arg7[%c1_349, %c0_350, %c0_351] : memref<2x64x128xf32, #tpu.memory_space<vmem>>, vector<1x64x128xf32>
    %944 = vector.shape_cast %943 : vector<1x64x128xf32> to vector<64x128xf32>
    %c1_352 = arith.constant 1 : index
    %c0_353 = arith.constant 0 : index
    %c0_354 = arith.constant 0 : index
    %945 = vector.load %arg8[%c1_352, %c0_353, %c0_354] : memref<2x1x128xf32, #tpu.memory_space<vmem>>, vector<1x1x128xf32>
    %946 = vector.shape_cast %945 : vector<1x1x128xf32> to vector<1x128xf32>
    %947 = tpu.concatenate %942, %883 in 1 : vector<8x32xf32>, vector<8x32xf32> -> vector<8x64xf32>
    %cst_355 = arith.constant dense<0.000000e+00> : vector<8x128xf32>
    %948 = tpu.matmul %947, %944, %cst_355 {dimension_numbers = #tpu.dot_dimension_numbers<[1], [0], [0], [1], [0, 0, 1, 1], [], []>} : vector<8x64xf32>, vector<64x128xf32>, vector<8x128xf32> -> vector<8x128xf32>
    %949 = vector.broadcast %946 : vector<1x128xf32> to vector<8x128xf32>
    %950 = arith.addf %948, %949 : vector<8x128xf32>
    %951 = tpu.iota {dimensions = array<i32: 1>} : vector<8x128xi32>
    %c64_i32_356 = arith.constant 64 : i32
    %952 = vector.broadcast %c64_i32_356 : i32 to vector<8x128xi32>
    %953 = arith.cmpi sge, %951, %952 : vector<8x128xi32>
    %c96_i32_357 = arith.constant 96 : i32
    %954 = vector.broadcast %c96_i32_357 : i32 to vector<8x128xi32>
    %955 = arith.cmpi slt, %951, %954 : vector<8x128xi32>
    %956 = arith.andi %953, %955 : vector<8x128xi1>
    %957 = math.tanh %950 : vector<8x128xf32>
    %958 = arith.negf %950 : vector<8x128xf32>
    %959 = math.exp %958 : vector<8x128xf32>
    %cst_358 = arith.constant 1.000000e+00 : f32
    %960 = vector.broadcast %cst_358 : f32 to vector<8x128xf32>
    %961 = arith.addf %960, %959 : vector<8x128xf32>
    %962 = arith.divf %960, %961 : vector<8x128xf32>
    %963 = arith.select %956, %957, %962 : vector<8x128xi1>, vector<8x128xf32>
    %964 = vector.extract_strided_slice %963 {offsets = [0, 0], sizes = [8, 32], strides = [1, 1]} : vector<8x128xf32> to vector<8x32xf32>
    %965 = vector.extract_strided_slice %963 {offsets = [0, 32], sizes = [8, 32], strides = [1, 1]} : vector<8x128xf32> to vector<8x32xf32>
    %966 = vector.extract_strided_slice %963 {offsets = [0, 64], sizes = [8, 32], strides = [1, 1]} : vector<8x128xf32> to vector<8x32xf32>
    %967 = vector.extract_strided_slice %963 {offsets = [0, 96], sizes = [8, 32], strides = [1, 1]} : vector<8x128xf32> to vector<8x32xf32>
    %968 = arith.mulf %965, %881 : vector<8x32xf32>
    %969 = arith.mulf %964, %966 : vector<8x32xf32>
    %970 = arith.addf %968, %969 : vector<8x32xf32>
    %971 = math.tanh %970 : vector<8x32xf32>
    %972 = arith.mulf %967, %971 : vector<8x32xf32>
    %cst_359 = arith.constant dense<0.000000e+00> : vector<8x128xf32>
    %973 = tpu.matmul %972, %2, %cst_359 {dimension_numbers = #tpu.dot_dimension_numbers<[1], [0], [0], [1], [0, 0, 1, 1], [], []>} : vector<8x32xf32>, vector<32x128xf32>, vector<8x128xf32> -> vector<8x128xf32>
    %974 = vector.broadcast %3 : vector<1x128xf32> to vector<8x128xf32>
    %975 = arith.addf %973, %974 : vector<8x128xf32>
    %c5_360 = arith.constant 5 : index
    %c0_361 = arith.constant 0 : index
    %c0_362 = arith.constant 0 : index
    %976 = vector.load %arg11[%c5_360, %c0_361, %c0_362] : memref<6x8x128xf32, #tpu.memory_space<vmem>>, vector<1x8x128xf32>
    %977 = vector.shape_cast %976 : vector<1x8x128xf32> to vector<8x128xf32>
    %978 = vector.shape_cast %975 : vector<8x128xf32> to vector<1x8x128xf32>
    tpu.vector_store %arg11[%c5_360, %c0_361, %c0_362], %978 {strides = array<i32>} : memref<6x8x128xf32, #tpu.memory_space<vmem>>, vector<1x8x128xf32>,
    return
  }
}

</mosaic_0001>

<bundles_post_ra>
// kernel: seq2seq_forward.1
= control target key start
LH: loop header
LB: loop body
LE: loop exit
PB: predicated region body
PF: predicated region fallthrough
CT: control target
= control target key end

     0   :  { %v6785_v2 = vmov 0   ;;  %v6786_v3 = vmov 0.0|0.0   ;;  %v6787_v7 = vmov 0.0   ;;  %vm6788_vm0 = vmmov 0   ;;  %s8155_s0 = inlined_call_operand.vmem [shape: s32[8,8,1], index: 0, kind: input, shape index: {}]   ;;  %s8156_s1 = inlined_call_operand.vmem [shape: s32[6,8,1], index: 1, kind: input, shape index: {}]   ;;  %s8157_s2 = inlined_call_operand.vmem [shape: s32[6,1,1], index: 2, kind: input, shape index: {}]   ;;  %s8158_s3 = inlined_call_operand.vmem [shape: f32[64,32], index: 3, kind: input, shape index: {}]   ;;  %s8159_s4 = inlined_call_operand.vmem [shape: f32[128,32], index: 4, kind: input, shape index: {}]   ;;  %s8160_s5 = inlined_call_operand.vmem [shape: f32[2,64,128], index: 5, kind: input, shape index: {}]   ;;  %s8161_s6 = inlined_call_operand.vmem [shape: f32[2,1,128], index: 6, kind: input, shape index: {}]   ;;  %s8162_s7 = inlined_call_operand.vmem [shape: f32[2,64,128], index: 7, kind: input, shape index: {}]   ;;  %s8163_s8 = inlined_call_operand.vmem [shape: f32[2,1,128], index: 8, kind: input, shape index: {}]   ;;  %s8164_s9 = inlined_call_operand.vmem [shape: f32[32,128], index: 9, kind: input, shape index: {}]   ;;  %s8165_s10 = inlined_call_operand.vmem [shape: f32[1,128], index: 10, kind: input, shape index: {}]   ;;  %s8166_s11 = inlined_call_operand.hbm [shape: f32[6,8,128], index: 11, kind: output, shape index: {}]  }
   0x1   :  { %v70_v0 = vld [vmem:[%s8155_s0] sm:$0xff]  ;;  %6546 = vset.pattern.permute.xlu0 %v6785_v2  ;;  %5978 = vmatprep.subr.bf16.mxu0 %v6786_v3  ;;  %v40_v4 = vld [vmem:[%s8158_s3 + $0x8] sm:$0xff]  ;;  %v41_v5 = vld [vmem:[%s8158_s3 + $0x10] sm:$0xff]  ;;  %2419 = vst [vmem:[#allocation2] sm:$0xff] %v6787_v7 }
   0x2   :  { %v39_v1 = vld [vmem:[%s8158_s3] sm:$0xff]  ;;  %v42_v6 = vld [vmem:[%s8158_s3 + $0x18] sm:$0xff]  ;;  %72 = vperm.xlu0 %6546, %v70_v0   ;;  %5990 = vmatprep.subr.bf16.mxu1 %v6786_v3  ;;  %v4538_v9 = vld [vmem:[%s8155_s0 + $0x8] sm:$0xff] }
   0x3   :  { %v6873_v8 = vpack.c.bf16 %v40_v4, %v39_v1  ;;  %5118 = vmatprep.mubr.msk.f32.mxu0 %vm6788_vm0, %v6787_v7  ;;  %5137 = vmatprep.mubr.msk.f32.mxu1 %vm6788_vm0, %v6787_v7 }
   0x4   :  { %16 = vsyncpa [#allocation3], 0  ;;  %v6884_v10 = vpack.c.bf16 %v42_v6, %v41_v5  ;;  %6547 = vset.pattern.permute.xlu1 %v6785_v2  ;;  %v43_v11 = vld [vmem:[%s8158_s3 + $0x20] sm:$0xff]  ;;  %v44_v12 = vld [vmem:[%s8158_s3 + $0x28] sm:$0xff]  ;;  %v68_v29 = vlaneseq  ;;  %vm77_vm1 = vcmask 523264   ;;  %vm160_vm3 = vcmask 261120  }
   0x5   :  { %5980 = vmatpush3.bf16.msra.mxu0 %v6873_v8  ;;  %v151_v13 = vld [vmem:[%s8160_s5] sm:$0xff]  ;;  %v152_v14 = vld [vmem:[%s8160_s5 + $0x8] sm:$0xff]  ;;  %v153_v15 = vld [vmem:[%s8160_s5 + $0x10] sm:$0xff]  ;;  %v6904_v16 = vpack.c.bf16 %v44_v12, %v43_v11  ;;  %s6789_s16 = smov 64   ;;  %s6790_s17 = smov 32  }
   0x6   :  { %5981 = vmatprep.subr.bf16.mxu0 %v6786_v3  ;;  %392 = vperm.xlu0 %6546, %v4538_v9   ;;  %v6906_v17 = vpack.c.bf16 %v152_v14, %v151_v13  ;;  %v154_v18 = vld [vmem:[%s8160_s5 + $0x18] sm:$0xff]  ;;  %v45_v19 = vld [vmem:[%s8158_s3 + $0x30] sm:$0xff]  ;;  %v155_v22 = vld [vmem:[%s8160_s5 + $0x20] sm:$0xff]  ;;  %v6951_v30 = vand.u32 127, %v68_v29 }
   0x7   :  { %v46_v20 = vld [vmem:[%s8158_s3 + $0x38] sm:$0xff]  ;;  %v6919_v21 = vpack.c.bf16 %v154_v18, %v153_v15  ;;  %v156_v23 = vld [vmem:[%s8160_s5 + $0x28] sm:$0xff]  ;;  %v157_v26 = vld [vmem:[%s8160_s5 + $0x30] sm:$0xff] }
   0x8   :  { %5992 = vmatpush3.bf16.msra.mxu1 %v6906_v17  ;;  %v6929_v24 = vpack.c.bf16 %v46_v20, %v45_v19  ;;  %v6933_v25 = vpack.c.bf16 %v156_v23, %v155_v22  ;;  %v158_v27 = vld [vmem:[%s8160_s5 + $0x38] sm:$0xff]  ;;  %v6978_v38 = vld [vmem:[%s8161_s6] ss:$0 sm:$0xff]  ;;  %vm241_vm5 = vcmp.ge.s32.totalorder %v6951_v30, 64  ;;  %vm242_vm6 = vcmp.lt.s32.totalorder %v6951_v30, 96  ;;  %v4527_v57 = vld [vmem:[%s8160_s5 + $0x48] sm:$0xff] }
   0x9   :  { %5983 = vmatpush3.bf16.msra.mxu0 %v6884_v10  ;;  %5993 = vmatprep.subr.bf16.mxu1 %v6786_v3  ;;  %v6945_v28 = vpack.c.bf16 %v158_v27, %v157_v26  ;;  %vm6985_vm7 = vmand %vm241_vm5, %vm242_vm6  ;;  %v4526_v56 = vld [vmem:[%s8160_s5 + $0x40] sm:$0xff]  ;;  %v4528_v58 = vld [vmem:[%s8160_s5 + $0x50] sm:$0xff] }
   0xa   :  { %5984 = vmatprep.subr.bf16.mxu0 %v6786_v3  ;;  %v7005_v59 = vpack.c.bf16 %v4527_v57, %v4526_v56  ;;  %v4529_v60 = vld [vmem:[%s8160_s5 + $0x58] sm:$0xff]  ;;  %v4530_v62 = vld [vmem:[%s8160_s5 + $0x60] sm:$0xff]  ;;  %v4531_v63 = vld [vmem:[%s8160_s5 + $0x68] sm:$0xff] }
   0xb   :  { %v7011_v61 = vpack.c.bf16 %v4529_v60, %v4528_v58  ;;  %v7023_v0 = vpack.c.bf16 %v4531_v63, %v4530_v62  ;;  %v4532_v1 = vld [vmem:[%s8160_s5 + $0x70] sm:$0xff]  ;;  %v4533_v4 = vld [vmem:[%s8160_s5 + $0x78] sm:$0xff]  ;;  %v7078_v19 = vld [vmem:[%s8161_s6 + $0x1] ss:$0 sm:$0xff] }
   0xc   :  { %5995 = vmatpush3.bf16.msra.mxu1 %v6919_v21  ;;  %v7036_v6 = vpack.c.bf16 %v4533_v4, %v4532_v1  ;;  %v4545_v18 = vld [vmem:[%s8155_s0 + $0x10] sm:$0xff] }
   0xd   :  { %5986 = vmatpush3.bf16.msra.mxu0 %v6904_v16  ;;  %5996 = vmatprep.subr.bf16.mxu1 %v6786_v3 }
   0xe   :  { %5987 = vmatprep.subr.bf16.mxu0 %v6786_v3 }
  0x10   :  { %5998 = vmatpush3.bf16.msra.mxu1 %v6933_v25 }
  0x11   :  { %5989 = vmatpush3.bf16.msra.mxu0 %v6929_v24  ;;  %5999 = vmatprep.subr.bf16.mxu1 %v6786_v3 }
  0x12   :  { %6002 = vmatprep.subr.bf16.mxu0 %v6786_v3 }
  0x14   :  { %6001 = vmatpush3.bf16.msra.mxu1 %v6945_v28 }
  0x15   :  { %6014 = vmatprep.subr.bf16.mxu1 %v6786_v3 }
  0x81   :  { %v73_v31 = vpop.permute.xlu0 %72 }
  0x82   :  { %vm74_vm2 = vcmp.eq.s32.totalorder %v6951_v30, %v73_v31 }
  0x83   :  { %v4521_v32 = vsel %vm74_vm2, 1.0, %v6787_v7 }
  0x84   :  { %5119 = vmatmul.mubr.msk.f32.vlgmr.msra.gmra.mrb[0].mxu0 %vm77_vm1, %v4521_v32 }
  0x85   :  { %5156 = vmatprep.mubr.msk.f32.mxu0 %vm6788_vm0, %v6787_v7  ;;  %v393_v36 = vpop.permute.xlu0 %392  ;;  %6004 = vmatpush3.bf16.msra.mxu0 %v7005_v59 }
  0x86   :  { %vm394_vm4 = vcmp.eq.s32.totalorder %v6951_v30, %v393_v36  ;;  %6005 = vmatprep.subr.bf16.mxu0 %v6786_v3 }
  0x87   :  { %v4539_v37 = vsel %vm394_vm4, 1.0, %v6787_v7 }
  0x89   :  { %6007 = vmatpush3.bf16.msra.mxu0 %v7011_v61 }
  0x8a   :  { %6008 = vmatprep.subr.bf16.mxu0 %v6786_v3 }
  0x8d   :  { %6010 = vmatpush3.bf16.msra.mxu0 %v7023_v0 }
  0x8e   :  { %6011 = vmatprep.subr.bf16.mxu0 %v6786_v3 }
  0x91   :  { %6013 = vmatpush3.bf16.msra.mxu0 %v7036_v6 }
  0x92   :  { %6026 = vmatprep.subr.bf16.mxu0 %v6786_v3 }
 0x157   :  { %v147_v33 = vpop.f32.mrb[0].mxu0 }
 0x158   :  { %v161_v34 = vsel %vm160_vm3, %v147_v33, 0.0  ;;  %v5120_v35 = vpop.f32.mrb[1].mxu0 }
 0x159   :  { %5138 = vmatmul.mubr.msk.f32.vlgmr.msra.gmra.mrb[0].mxu1 %vm77_vm1, %v161_v34 }
 0x15a   :  { %6016 = vmatpush3.bf16.msra.mxu1 %v6873_v8  ;;  %5175 = vmatprep.mubr.msk.f32.mxu1 %vm6788_vm0, %v6787_v7 }
 0x15b   :  { %6017 = vmatprep.subr.bf16.mxu1 %v6786_v3 }
 0x15e   :  { %6019 = vmatpush3.bf16.msra.mxu1 %v6884_v10 }
 0x15f   :  { %6020 = vmatprep.subr.bf16.mxu1 %v6786_v3 }
 0x162   :  { %6022 = vmatpush3.bf16.msra.mxu1 %v6904_v16 }
 0x163   :  { %6023 = vmatprep.subr.bf16.mxu1 %v6786_v3 }
 0x166   :  { %6025 = vmatpush3.bf16.msra.mxu1 %v6929_v24 }
 0x167   :  { %6038 = vmatprep.subr.bf16.mxu1 %v6786_v3 }
 0x169   :  { %5176 = vmatmul.mubr.msk.f32.vlgmr.msra.gmra.mrb[2].mxu1 %vm77_vm1, %v4539_v37 }
 0x16a   :  { %5213 = vmatprep.mubr.msk.f32.mxu1 %vm6788_vm0, %v6787_v7  ;;  %6040 = vmatpush3.bf16.msra.mxu1 %v7005_v59 }
 0x16b   :  { %6041 = vmatprep.subr.bf16.mxu1 %v6786_v3 }
 0x16e   :  { %6043 = vmatpush3.bf16.msra.mxu1 %v7011_v61 }
 0x16f   :  { %6044 = vmatprep.subr.bf16.mxu1 %v6786_v3 }
 0x172   :  { %6046 = vmatpush3.bf16.msra.mxu1 %v7023_v0 }
 0x173   :  { %6047 = vmatprep.subr.bf16.mxu1 %v6786_v3 }
 0x176   :  { %6049 = vmatpush3.bf16.msra.mxu1 %v7036_v6 }
 0x177   :  { %6062 = vmatprep.subr.bf16.mxu1 %v6786_v3 }
 0x22c   :  { %v237_v39 = vpop.f32.mrb[0].mxu1 }
 0x22d   :  { %v238_v40 = vadd.f32 %v6978_v38, %v237_v39  ;;  %v5139_v41 = vpop.f32.mrb[1].mxu1 }
 0x22f   :  { %v4525_v42 = vmul.f32 -1.442695, %v238_v40 }
 0x231   :  { %6548 = vpow2.f32 %v4525_v42 }
 0x232   :  { %6550 = vtanh.f32 %v238_v40 }
 0x23b   :  { %v6549_v43 = vpop.eup %6548 }
 0x23c   :  { %v248_v44 = vadd.f32 1.0, %v6549_v43  ;;  %v6981_v45 = vpop.f32.mrb[2].mxu1  ;;  %v6551_v48 = vpop.eup %6550 }
 0x23d   :  { %v5177_v46 = vpop.f32.mrb[3].mxu1 }
 0x23e   :  { %6552 = vrcp.f32 %v248_v44 }
 0x248   :  { %v6553_v49 = vpop.eup %6552 }
 0x249   :  { %v251_v50 = vsel %vm6985_vm7, %v6551_v48, %v6553_v49 }
 0x24a   :  { %254 = vrot.lane.b32.xlu1 %v251_v50, %s6789_s16  ;;  %v252_v53 = vmul.f32 0.0, %v251_v50 }
 0x2bc   :  { %v255_v51 = vpop.permute.xlu1 %254 }
 0x2bd   :  { %v257_v52 = vmul.f32 %v255_v51, %v251_v50 }
 0x2bf   :  { %259 = vrot.lane.b32.xlu1 %v257_v52, %s6790_s17 }
 0x331   :  { %v260_v54 = vpop.permute.xlu1 %259 }
 0x332   :  { %v6993_v55 = vadd.f32 %v260_v54, %v252_v53 }
 0x334   :  { %6554 = vtanh.f32 %v6993_v55 }
 0x33e   :  { %v6555_v5 = vpop.eup %6554 }
 0x33f   :  { %265 = vrot.lane.b32.xlu0 %v6555_v5, %s6789_s16 }
 0x3b1   :  { %v266_v9 = vpop.permute.xlu0 %265 }
 0x3b2   :  { %v268_v11 = vmul.f32 %v266_v9, %v251_v50  ;;  %v4552_v9 = vld [vmem:[%s8155_s0 + $0x18] sm:$0xff] }
 0x3b4   :  { %470 = vrot.lane.b32.xlu0 %v268_v11, %s6789_s16  ;;  %281 = vrot.lane.b32.xlu1 %v268_v11, %s6790_s17 }
 0x3b8   :  { %682 = vperm.xlu1 %6547, %v4545_v18  }
 0x426   :  { %v282_v12 = vpop.permute.xlu1 %281  ;;  %v471_v14 = vpop.permute.xlu0 %470 }
 0x427   :  { %v284_v13 = vsel %vm160_vm3, %v282_v12, 0.0  ;;  %v473_v15 = vsel %vm160_vm3, %v6981_v45, %v471_v14 }
 0x428   :  { %5157 = vmatmul.mubr.msk.f32.vlgmr.msra.gmra.mrb[2].mxu0 %vm77_vm1, %v284_v13 }
 0x429   :  { %6028 = vmatpush3.bf16.msra.mxu0 %v6906_v17  ;;  %5194 = vmatprep.mubr.msk.f32.mxu0 %vm6788_vm0, %v6787_v7 }
 0x42a   :  { %6029 = vmatprep.subr.bf16.mxu0 %v6786_v3 }
 0x42d   :  { %6031 = vmatpush3.bf16.msra.mxu0 %v6919_v21 }
 0x42e   :  { %6032 = vmatprep.subr.bf16.mxu0 %v6786_v3 }
 0x431   :  { %6034 = vmatpush3.bf16.msra.mxu0 %v6933_v25 }
 0x432   :  { %6035 = vmatprep.subr.bf16.mxu0 %v6786_v3 }
 0x435   :  { %6037 = vmatpush3.bf16.msra.mxu0 %v6945_v28 }
 0x436   :  { %6050 = vmatprep.subr.bf16.mxu0 %v6786_v3 }
 0x437   :  { %v683_v37 = vpop.permute.xlu1 %682 }
 0x438   :  { %5195 = vmatmul.mubr.msk.f32.vlgmr.msra.gmra.mrb[4].mxu0 %vm77_vm1, %v473_v15  ;;  %vm684_vm8 = vcmp.eq.s32.totalorder %v6951_v30, %v683_v37 }
 0x439   :  { %6052 = vmatpush3.bf16.msra.mxu0 %v6873_v8  ;;  %5232 = vmatprep.mubr.msk.f32.mxu0 %vm6788_vm0, %v6787_v7  ;;  %v4546_v41 = vsel %vm684_vm8, 1.0, %v6787_v7 }
 0x43a   :  { %6053 = vmatprep.subr.bf16.mxu0 %v6786_v3 }
 0x43d   :  { %6055 = vmatpush3.bf16.msra.mxu0 %v6884_v10 }
 0x43e   :  { %6056 = vmatprep.subr.bf16.mxu0 %v6786_v3 }
 0x441   :  { %6058 = vmatpush3.bf16.msra.mxu0 %v6904_v16 }
 0x442   :  { %6059 = vmatprep.subr.bf16.mxu0 %v6786_v3 }
 0x445   :  { %6061 = vmatpush3.bf16.msra.mxu0 %v6929_v24 }
 0x446   :  { %6074 = vmatprep.subr.bf16.mxu0 %v6786_v3 }
 0x448   :  { %5233 = vmatmul.mubr.msk.f32.vlgmr.msra.gmra.mrb[6].mxu0 %vm77_vm1, %v4546_v41 }
 0x449   :  { %6076 = vmatpush3.bf16.msra.mxu0 %v7005_v59  ;;  %5270 = vmatprep.mubr.msk.f32.mxu0 %vm6788_vm0, %v6787_v7 }
 0x44a   :  { %6077 = vmatprep.subr.bf16.mxu0 %v6786_v3 }
 0x44d   :  { %6079 = vmatpush3.bf16.msra.mxu0 %v7011_v61 }
 0x44e   :  { %6080 = vmatprep.subr.bf16.mxu0 %v6786_v3 }
 0x451   :  { %6082 = vmatpush3.bf16.msra.mxu0 %v7023_v0 }
 0x452   :  { %6083 = vmatprep.subr.bf16.mxu0 %v6786_v3 }
 0x455   :  { %6085 = vmatpush3.bf16.msra.mxu0 %v7036_v6 }
 0x456   :  { %6098 = vmatprep.subr.bf16.mxu0 %v6786_v3 }
 0x4fb   :  { %v360_v20 = vpop.f32.mrb[2].mxu0 }
 0x4fc   :  { %v361_v22 = vadd.f32 %v7078_v19, %v360_v20  ;;  %v5158_v23 = vpop.f32.mrb[3].mxu0 }
 0x4fe   :  { %v4537_v26 = vmul.f32 -1.442695, %v361_v22 }
 0x500   :  { %6556 = vpow2.f32 %v4537_v26 }
 0x501   :  { %6558 = vtanh.f32 %v361_v22 }
 0x50a   :  { %v6557_v27 = vpop.eup %6556 }
 0x50b   :  { %v368_v31 = vadd.f32 1.0, %v6557_v27  ;;  %v543_v32 = vpop.f32.mrb[4].mxu0  ;;  %v6559_v36 = vpop.eup %6558 }
 0x50c   :  { %v544_v33 = vadd.f32 %v6978_v38, %v543_v32  ;;  %v5196_v34 = vpop.f32.mrb[5].mxu0 }
 0x50d   :  { %6560 = vrcp.f32 %v368_v31 }
 0x50e   :  { %v4542_v35 = vmul.f32 -1.442695, %v544_v33 }
 0x510   :  { %6562 = vpow2.f32 %v4542_v35 }
 0x511   :  { %6564 = vtanh.f32 %v544_v33 }
 0x517   :  { %v6561_v39 = vpop.eup %6560 }
 0x518   :  { %v371_v40 = vsel %vm6985_vm7, %v6559_v36, %v6561_v39 }
 0x519   :  { %374 = vrot.lane.b32.xlu0 %v371_v40, %s6789_s16  ;;  %v372_v54 = vmul.f32 0.0, %v371_v40 }
 0x51a   :  { %v6563_v42 = vpop.eup %6562 }
 0x51b   :  { %v551_v43 = vadd.f32 1.0, %v6563_v42  ;;  %v6565_v44 = vpop.eup %6564  ;;  %v756_v52 = vpop.f32.mrb[6].mxu0 }
 0x51c   :  { %v5234_v53 = vpop.f32.mrb[7].mxu0 }
 0x51d   :  { %6566 = vrcp.f32 %v551_v43 }
 0x527   :  { %v6567_v45 = vpop.eup %6566 }
 0x528   :  { %v554_v46 = vsel %vm6985_vm7, %v6565_v44, %v6567_v45 }
 0x529   :  { %557 = vrot.lane.b32.xlu1 %v554_v46, %s6789_s16  ;;  %v555_v60 = vmul.f32 %v554_v46, %v6993_v55 }
 0x58b   :  { %v375_v48 = vpop.permute.xlu0 %374 }
 0x58c   :  { %v377_v49 = vmul.f32 %v375_v48, %v371_v40 }
 0x58e   :  { %379 = vrot.lane.b32.xlu0 %v377_v49, %s6790_s17 }
 0x59b   :  { %v558_v50 = vpop.permute.xlu1 %557 }
 0x59c   :  { %v560_v51 = vmul.f32 %v558_v50, %v554_v46 }
 0x59e   :  { %562 = vrot.lane.b32.xlu1 %v560_v51, %s6790_s17 }
 0x600   :  { %v380_v56 = vpop.permute.xlu0 %379 }
 0x601   :  { %v7103_v57 = vadd.f32 %v380_v56, %v372_v54 }
 0x603   :  { %6568 = vtanh.f32 %v7103_v57 }
 0x60d   :  { %v6569_v58 = vpop.eup %6568 }
 0x60e   :  { %385 = vrot.lane.b32.xlu0 %v6569_v58, %s6789_s16 }
 0x610   :  { %v563_v62 = vpop.permute.xlu1 %562 }
 0x611   :  { %v7108_v63 = vadd.f32 %v563_v62, %v555_v60 }
 0x613   :  { %6570 = vtanh.f32 %v7108_v63 }
 0x61d   :  { %v6571_v1 = vpop.eup %6570 }
 0x61e   :  { %568 = vrot.lane.b32.xlu1 %v6571_v1, %s6789_s16 }
 0x680   :  { %v386_v4 = vpop.permute.xlu0 %385 }
 0x681   :  { %v388_v5 = vmul.f32 %v386_v4, %v371_v40 }
 0x683   :  { %577 = vrot.lane.b32.xlu1 %v388_v5, %s6789_s16 }
 0x687   :  { %972 = vperm.xlu1 %6547, %v4552_v9  }
 0x690   :  { %v569_v11 = vpop.permute.xlu1 %568 }
 0x691   :  { %v571_v12 = vmul.f32 %v569_v11, %v554_v46  ;;  %v4559_v11 = vld [vmem:[%s8155_s0 + $0x20] sm:$0xff] }
 0x693   :  { %573 = vrot.lane.b32.xlu0 %v571_v12, %s6790_s17 }
 0x697   :  { %760 = vrot.lane.b32.xlu0 %v571_v12, %s6789_s16 }
 0x6f5   :  { %v578_v55 = vpop.permute.xlu1 %577 }
 0x705   :  { %v574_v13 = vpop.permute.xlu0 %573 }
 0x706   :  { %v580_v14 = vsel %vm160_vm3, %v574_v13, %v578_v55  ;;  %v973_v20 = vpop.permute.xlu1 %972 }
 0x707   :  { %5214 = vmatmul.mubr.msk.f32.vlgmr.msra.gmra.mrb[4].mxu1 %vm77_vm1, %v580_v14  ;;  %vm974_vm9 = vcmp.eq.s32.totalorder %v6951_v30, %v973_v20 }
 0x708   :  { %6064 = vmatpush3.bf16.msra.mxu1 %v6906_v17  ;;  %5251 = vmatprep.mubr.msk.f32.mxu1 %vm6788_vm0, %v6787_v7  ;;  %v4553_v22 = vsel %vm974_vm9, 1.0, %v6787_v7 }
 0x709   :  { %6065 = vmatprep.subr.bf16.mxu1 %v6786_v3  ;;  %v761_v15 = vpop.permute.xlu0 %760 }
 0x70a   :  { %v763_v18 = vsel %vm160_vm3, %v756_v52, %v761_v15 }
 0x70c   :  { %6067 = vmatpush3.bf16.msra.mxu1 %v6919_v21 }
 0x70d   :  { %6068 = vmatprep.subr.bf16.mxu1 %v6786_v3 }
 0x710   :  { %6070 = vmatpush3.bf16.msra.mxu1 %v6933_v25 }
 0x711   :  { %6071 = vmatprep.subr.bf16.mxu1 %v6786_v3 }
 0x714   :  { %6073 = vmatpush3.bf16.msra.mxu1 %v6945_v28 }
 0x715   :  { %6086 = vmatprep.subr.bf16.mxu1 %v6786_v3 }
 0x717   :  { %5252 = vmatmul.mubr.msk.f32.vlgmr.msra.gmra.mrb[6].mxu1 %vm77_vm1, %v763_v18 }
 0x718   :  { %6088 = vmatpush3.bf16.msra.mxu1 %v6873_v8  ;;  %5289 = vmatprep.mubr.msk.f32.mxu1 %vm6788_vm0, %v6787_v7 }
 0x719   :  { %6089 = vmatprep.subr.bf16.mxu1 %v6786_v3 }
 0x71c   :  { %6091 = vmatpush3.bf16.msra.mxu1 %v6884_v10 }
 0x71d   :  { %6092 = vmatprep.subr.bf16.mxu1 %v6786_v3 }
 0x720   :  { %6094 = vmatpush3.bf16.msra.mxu1 %v6904_v16 }
 0x721   :  { %6095 = vmatprep.subr.bf16.mxu1 %v6786_v3 }
 0x724   :  { %6097 = vmatpush3.bf16.msra.mxu1 %v6929_v24 }
 0x725   :  { %6110 = vmatprep.subr.bf16.mxu1 %v6786_v3 }
 0x727   :  { %5290 = vmatmul.mubr.msk.f32.vlgmr.msra.gmra.mrb[8].mxu1 %vm77_vm1, %v4553_v22 }
 0x728   :  { %6112 = vmatpush3.bf16.msra.mxu1 %v7005_v59  ;;  %5327 = vmatprep.mubr.msk.f32.mxu1 %vm6788_vm0, %v6787_v7 }
 0x729   :  { %6113 = vmatprep.subr.bf16.mxu1 %v6786_v3 }
 0x72c   :  { %6115 = vmatpush3.bf16.msra.mxu1 %v7011_v61 }
 0x72d   :  { %6116 = vmatprep.subr.bf16.mxu1 %v6786_v3 }
 0x730   :  { %6118 = vmatpush3.bf16.msra.mxu1 %v7023_v0 }
 0x731   :  { %6119 = vmatprep.subr.bf16.mxu1 %v6786_v3 }
 0x734   :  { %6121 = vmatpush3.bf16.msra.mxu1 %v7036_v6 }
 0x735   :  { %6134 = vmatprep.subr.bf16.mxu1 %v6786_v3 }
 0x7da   :  { %v650_v23 = vpop.f32.mrb[4].mxu1 }
 0x7db   :  { %v651_v26 = vadd.f32 %v7078_v19, %v650_v23  ;;  %v5215_v27 = vpop.f32.mrb[5].mxu1 }
 0x7dd   :  { %v4544_v31 = vmul.f32 -1.442695, %v651_v26 }
 0x7df   :  { %6572 = vpow2.f32 %v4544_v31 }
 0x7e0   :  { %6574 = vtanh.f32 %v651_v26 }
 0x7e9   :  { %v6573_v32 = vpop.eup %6572 }
 0x7ea   :  { %v658_v33 = vadd.f32 1.0, %v6573_v32  ;;  %v833_v34 = vpop.f32.mrb[6].mxu1  ;;  %v6575_v39 = vpop.eup %6574 }
 0x7eb   :  { %v834_v35 = vadd.f32 %v6978_v38, %v833_v34  ;;  %v5253_v36 = vpop.f32.mrb[7].mxu1 }
 0x7ec   :  { %6576 = vrcp.f32 %v658_v33 }
 0x7ed   :  { %v4549_v37 = vmul.f32 -1.442695, %v834_v35 }
 0x7ef   :  { %6578 = vpow2.f32 %v4549_v37 }
 0x7f0   :  { %6580 = vtanh.f32 %v834_v35 }
 0x7f6   :  { %v6577_v40 = vpop.eup %6576 }
 0x7f7   :  { %v661_v41 = vsel %vm6985_vm7, %v6575_v39, %v6577_v40 }
 0x7f8   :  { %664 = vrot.lane.b32.xlu0 %v661_v41, %s6789_s16  ;;  %v662_v54 = vmul.f32 %v661_v41, %v7103_v57 }
 0x7f9   :  { %v6579_v42 = vpop.eup %6578 }
 0x7fa   :  { %v841_v43 = vadd.f32 1.0, %v6579_v42  ;;  %v1046_v44 = vpop.f32.mrb[8].mxu1  ;;  %v6581_v46 = vpop.eup %6580 }
 0x7fb   :  { %v5291_v45 = vpop.f32.mrb[9].mxu1 }
 0x7fc   :  { %6582 = vrcp.f32 %v841_v43 }
 0x806   :  { %v6583_v48 = vpop.eup %6582 }
 0x807   :  { %v844_v49 = vsel %vm6985_vm7, %v6581_v46, %v6583_v48 }
 0x808   :  { %847 = vrot.lane.b32.xlu1 %v844_v49, %s6789_s16  ;;  %v845_v62 = vmul.f32 %v844_v49, %v7108_v63 }
 0x86a   :  { %v665_v50 = vpop.permute.xlu0 %664 }
 0x86b   :  { %v667_v51 = vmul.f32 %v665_v50, %v661_v41 }
 0x86d   :  { %669 = vrot.lane.b32.xlu0 %v667_v51, %s6790_s17 }
 0x87a   :  { %v848_v52 = vpop.permute.xlu1 %847 }
 0x87b   :  { %v850_v53 = vmul.f32 %v848_v52, %v844_v49 }
 0x87d   :  { %852 = vrot.lane.b32.xlu1 %v850_v53, %s6790_s17 }
 0x8df   :  { %v670_v56 = vpop.permute.xlu0 %669 }
 0x8e0   :  { %v7166_v58 = vadd.f32 %v670_v56, %v662_v54 }
 0x8e2   :  { %6584 = vtanh.f32 %v7166_v58 }
 0x8ec   :  { %v6585_v60 = vpop.eup %6584 }
 0x8ed   :  { %675 = vrot.lane.b32.xlu0 %v6585_v60, %s6789_s16 }
 0x8ef   :  { %v853_v1 = vpop.permute.xlu1 %852 }
 0x8f0   :  { %v7171_v4 = vadd.f32 %v853_v1, %v845_v62 }
 0x8f2   :  { %6586 = vtanh.f32 %v7171_v4 }
 0x8fc   :  { %v6587_v5 = vpop.eup %6586 }
 0x8fd   :  { %858 = vrot.lane.b32.xlu1 %v6587_v5, %s6789_s16 }
 0x95f   :  { %v676_v9 = vpop.permute.xlu0 %675 }
 0x960   :  { %v678_v57 = vmul.f32 %v676_v9, %v661_v41 }
 0x962   :  { %867 = vrot.lane.b32.xlu1 %v678_v57, %s6789_s16 }
 0x966   :  { %1262 = vperm.xlu1 %6547, %v4559_v11  }
 0x96f   :  { %v859_v12 = vpop.permute.xlu1 %858 }
 0x970   :  { %v861_v55 = vmul.f32 %v859_v12, %v844_v49  ;;  %v4566_v12 = vld [vmem:[%s8155_s0 + $0x28] sm:$0xff] }
 0x972   :  { %863 = vrot.lane.b32.xlu0 %v861_v55, %s6790_s17 }
 0x976   :  { %1050 = vrot.lane.b32.xlu0 %v861_v55, %s6789_s16 }
 0x9d4   :  { %v868_v63 = vpop.permute.xlu1 %867 }
 0x9e4   :  { %v864_v13 = vpop.permute.xlu0 %863 }
 0x9e5   :  { %v870_v14 = vsel %vm160_vm3, %v864_v13, %v868_v63  ;;  %v1263_v20 = vpop.permute.xlu1 %1262 }
 0x9e6   :  { %5271 = vmatmul.mubr.msk.f32.vlgmr.msra.gmra.mrb[8].mxu0 %vm77_vm1, %v870_v14  ;;  %vm1264_vm10 = vcmp.eq.s32.totalorder %v6951_v30, %v1263_v20 }
 0x9e7   :  { %6100 = vmatpush3.bf16.msra.mxu0 %v6906_v17  ;;  %5308 = vmatprep.mubr.msk.f32.mxu0 %vm6788_vm0, %v6787_v7  ;;  %v4560_v22 = vsel %vm1264_vm10, 1.0, %v6787_v7 }
 0x9e8   :  { %6101 = vmatprep.subr.bf16.mxu0 %v6786_v3  ;;  %v1051_v15 = vpop.permute.xlu0 %1050 }
 0x9e9   :  { %v1053_v18 = vsel %vm160_vm3, %v1046_v44, %v1051_v15 }
 0x9eb   :  { %6103 = vmatpush3.bf16.msra.mxu0 %v6919_v21 }
 0x9ec   :  { %6104 = vmatprep.subr.bf16.mxu0 %v6786_v3 }
 0x9ef   :  { %6106 = vmatpush3.bf16.msra.mxu0 %v6933_v25 }
 0x9f0   :  { %6107 = vmatprep.subr.bf16.mxu0 %v6786_v3 }
 0x9f3   :  { %6109 = vmatpush3.bf16.msra.mxu0 %v6945_v28 }
 0x9f4   :  { %6122 = vmatprep.subr.bf16.mxu0 %v6786_v3 }
 0x9f6   :  { %5309 = vmatmul.mubr.msk.f32.vlgmr.msra.gmra.mrb[10].mxu0 %vm77_vm1, %v1053_v18 }
 0x9f7   :  { %6124 = vmatpush3.bf16.msra.mxu0 %v6873_v8  ;;  %5346 = vmatprep.mubr.msk.f32.mxu0 %vm6788_vm0, %v6787_v7 }
 0x9f8   :  { %6125 = vmatprep.subr.bf16.mxu0 %v6786_v3 }
 0x9fb   :  { %6127 = vmatpush3.bf16.msra.mxu0 %v6884_v10 }
 0x9fc   :  { %6128 = vmatprep.subr.bf16.mxu0 %v6786_v3 }
 0x9ff   :  { %6130 = vmatpush3.bf16.msra.mxu0 %v6904_v16 }
 0xa00   :  { %6131 = vmatprep.subr.bf16.mxu0 %v6786_v3 }
 0xa03   :  { %6133 = vmatpush3.bf16.msra.mxu0 %v6929_v24 }
 0xa04   :  { %6146 = vmatprep.subr.bf16.mxu0 %v6786_v3 }
 0xa06   :  { %5347 = vmatmul.mubr.msk.f32.vlgmr.msra.gmra.mrb[12].mxu0 %vm77_vm1, %v4560_v22 }
 0xa07   :  { %6148 = vmatpush3.bf16.msra.mxu0 %v7005_v59  ;;  %5384 = vmatprep.mubr.msk.f32.mxu0 %vm6788_vm0, %v6787_v7 }
 0xa08   :  { %6149 = vmatprep.subr.bf16.mxu0 %v6786_v3 }
 0xa0b   :  { %6151 = vmatpush3.bf16.msra.mxu0 %v7011_v61 }
 0xa0c   :  { %6152 = vmatprep.subr.bf16.mxu0 %v6786_v3 }
 0xa0f   :  { %6154 = vmatpush3.bf16.msra.mxu0 %v7023_v0 }
 0xa10   :  { %6155 = vmatprep.subr.bf16.mxu0 %v6786_v3 }
 0xa13   :  { %6157 = vmatpush3.bf16.msra.mxu0 %v7036_v6 }
 0xa14   :  { %6170 = vmatprep.subr.bf16.mxu0 %v6786_v3 }
 0xab9   :  { %v940_v23 = vpop.f32.mrb[8].mxu0 }
 0xaba   :  { %v941_v26 = vadd.f32 %v7078_v19, %v940_v23  ;;  %v5272_v27 = vpop.f32.mrb[9].mxu0 }
 0xabc   :  { %v4551_v31 = vmul.f32 -1.442695, %v941_v26 }
 0xabe   :  { %6588 = vpow2.f32 %v4551_v31 }
 0xabf   :  { %6590 = vtanh.f32 %v941_v26 }
 0xac8   :  { %v6589_v32 = vpop.eup %6588 }
 0xac9   :  { %v948_v33 = vadd.f32 1.0, %v6589_v32  ;;  %v1123_v34 = vpop.f32.mrb[10].mxu0  ;;  %v6591_v39 = vpop.eup %6590 }
 0xaca   :  { %v1124_v35 = vadd.f32 %v6978_v38, %v1123_v34  ;;  %v5310_v36 = vpop.f32.mrb[11].mxu0 }
 0xacb   :  { %6592 = vrcp.f32 %v948_v33 }
 0xacc   :  { %v4556_v37 = vmul.f32 -1.442695, %v1124_v35 }
 0xace   :  { %6594 = vpow2.f32 %v4556_v37 }
 0xacf   :  { %6596 = vtanh.f32 %v1124_v35 }
 0xad5   :  { %v6593_v40 = vpop.eup %6592 }
 0xad6   :  { %v951_v41 = vsel %vm6985_vm7, %v6591_v39, %v6593_v40 }
 0xad7   :  { %954 = vrot.lane.b32.xlu0 %v951_v41, %s6789_s16  ;;  %v952_v54 = vmul.f32 %v951_v41, %v7166_v58 }
 0xad8   :  { %v6595_v42 = vpop.eup %6594 }
 0xad9   :  { %v1131_v43 = vadd.f32 1.0, %v6595_v42  ;;  %v1336_v44 = vpop.f32.mrb[12].mxu0  ;;  %v6597_v46 = vpop.eup %6596 }
 0xada   :  { %v5348_v45 = vpop.f32.mrb[13].mxu0 }
 0xadb   :  { %6598 = vrcp.f32 %v1131_v43 }
 0xae5   :  { %v6599_v48 = vpop.eup %6598 }
 0xae6   :  { %v1134_v49 = vsel %vm6985_vm7, %v6597_v46, %v6599_v48 }
 0xae7   :  { %1137 = vrot.lane.b32.xlu1 %v1134_v49, %s6789_s16  ;;  %v1135_v1 = vmul.f32 %v1134_v49, %v7171_v4 }
 0xb49   :  { %v955_v50 = vpop.permute.xlu0 %954 }
 0xb4a   :  { %v957_v51 = vmul.f32 %v955_v50, %v951_v41 }
 0xb4c   :  { %959 = vrot.lane.b32.xlu0 %v957_v51, %s6790_s17 }
 0xb59   :  { %v1138_v52 = vpop.permute.xlu1 %1137 }
 0xb5a   :  { %v1140_v53 = vmul.f32 %v1138_v52, %v1134_v49 }
 0xb5c   :  { %1142 = vrot.lane.b32.xlu1 %v1140_v53, %s6790_s17 }
 0xbbe   :  { %v960_v56 = vpop.permute.xlu0 %959 }
 0xbbf   :  { %v7229_v60 = vadd.f32 %v960_v56, %v952_v54 }
 0xbc1   :  { %6600 = vtanh.f32 %v7229_v60 }
 0xbcb   :  { %v6601_v62 = vpop.eup %6600 }
 0xbcc   :  { %965 = vrot.lane.b32.xlu0 %v6601_v62, %s6789_s16 }
 0xbce   :  { %v1143_v5 = vpop.permute.xlu1 %1142 }
 0xbcf   :  { %v7234_v9 = vadd.f32 %v1143_v5, %v1135_v1 }
 0xbd1   :  { %6602 = vtanh.f32 %v7234_v9 }
 0xbdb   :  { %v6603_v57 = vpop.eup %6602 }
 0xbdc   :  { %1148 = vrot.lane.b32.xlu1 %v6603_v57, %s6789_s16 }
 0xc3e   :  { %v966_v11 = vpop.permute.xlu0 %965 }
 0xc3f   :  { %v968_v58 = vmul.f32 %v966_v11, %v951_v41 }
 0xc41   :  { %1157 = vrot.lane.b32.xlu1 %v968_v58, %s6789_s16 }
 0xc45   :  { %1552 = vperm.xlu1 %6547, %v4566_v12   ;;  %v4573_v12 = vld [vmem:[%s8155_s0 + $0x30] sm:$0xff] }
 0xc4e   :  { %v1149_v55 = vpop.permute.xlu1 %1148 }
 0xc4f   :  { %v1151_v63 = vmul.f32 %v1149_v55, %v1134_v49 }
 0xc51   :  { %1153 = vrot.lane.b32.xlu0 %v1151_v63, %s6790_s17 }
 0xc55   :  { %1340 = vrot.lane.b32.xlu0 %v1151_v63, %s6789_s16 }
 0xcb3   :  { %v1158_v4 = vpop.permute.xlu1 %1157 }
 0xcc3   :  { %v1154_v13 = vpop.permute.xlu0 %1153 }
 0xcc4   :  { %v1160_v14 = vsel %vm160_vm3, %v1154_v13, %v1158_v4  ;;  %v1553_v20 = vpop.permute.xlu1 %1552 }
 0xcc5   :  { %5328 = vmatmul.mubr.msk.f32.vlgmr.msra.gmra.mrb[10].mxu1 %vm77_vm1, %v1160_v14  ;;  %vm1554_vm11 = vcmp.eq.s32.totalorder %v6951_v30, %v1553_v20  ;;  %v7310_v14 = vld [vmem:[#allocation2] sm:$0xff] }
 0xcc6   :  { %6136 = vmatpush3.bf16.msra.mxu1 %v6906_v17  ;;  %5365 = vmatprep.mubr.msk.f32.mxu1 %vm6788_vm0, %v6787_v7  ;;  %v4567_v22 = vsel %vm1554_vm11, 1.0, %v6787_v7 }
 0xcc7   :  { %6137 = vmatprep.subr.bf16.mxu1 %v6786_v3  ;;  %v1341_v15 = vpop.permute.xlu0 %1340 }
 0xcc8   :  { %v1343_v18 = vsel %vm160_vm3, %v1336_v44, %v1341_v15 }
 0xcca   :  { %6139 = vmatpush3.bf16.msra.mxu1 %v6919_v21 }
 0xccb   :  { %6140 = vmatprep.subr.bf16.mxu1 %v6786_v3 }
 0xcce   :  { %6142 = vmatpush3.bf16.msra.mxu1 %v6933_v25 }
 0xccf   :  { %6143 = vmatprep.subr.bf16.mxu1 %v6786_v3 }
 0xcd2   :  { %6145 = vmatpush3.bf16.msra.mxu1 %v6945_v28 }
 0xcd3   :  { %6158 = vmatprep.subr.bf16.mxu1 %v6786_v3 }
 0xcd5   :  { %5366 = vmatmul.mubr.msk.f32.vlgmr.msra.gmra.mrb[12].mxu1 %vm77_vm1, %v1343_v18 }
 0xcd6   :  { %6160 = vmatpush3.bf16.msra.mxu1 %v6873_v8  ;;  %5403 = vmatprep.mubr.msk.f32.mxu1 %vm6788_vm0, %v6787_v7 }
 0xcd7   :  { %6161 = vmatprep.subr.bf16.mxu1 %v6786_v3 }
 0xcda   :  { %6163 = vmatpush3.bf16.msra.mxu1 %v6884_v10 }
 0xcdb   :  { %6164 = vmatprep.subr.bf16.mxu1 %v6786_v3 }
 0xcde   :  { %6166 = vmatpush3.bf16.msra.mxu1 %v6904_v16 }
 0xcdf   :  { %6167 = vmatprep.subr.bf16.mxu1 %v6786_v3 }
 0xce2   :  { %6169 = vmatpush3.bf16.msra.mxu1 %v6929_v24 }
 0xce3   :  { %6182 = vmatprep.subr.bf16.mxu1 %v6786_v3 }
 0xce5   :  { %5404 = vmatmul.mubr.msk.f32.vlgmr.msra.gmra.mrb[14].mxu1 %vm77_vm1, %v4567_v22 }
 0xce6   :  { %6184 = vmatpush3.bf16.msra.mxu1 %v7005_v59  ;;  %5441 = vmatprep.mubr.msk.f32.mxu1 %vm6788_vm0, %v6787_v7 }
 0xce7   :  { %6185 = vmatprep.subr.bf16.mxu1 %v6786_v3 }
 0xcea   :  { %6187 = vmatpush3.bf16.msra.mxu1 %v7011_v61 }
 0xceb   :  { %6188 = vmatprep.subr.bf16.mxu1 %v6786_v3 }
 0xcee   :  { %6190 = vmatpush3.bf16.msra.mxu1 %v7023_v0 }
 0xcef   :  { %6191 = vmatprep.subr.bf16.mxu1 %v6786_v3 }
 0xcf2   :  { %6193 = vmatpush3.bf16.msra.mxu1 %v7036_v6 }
 0xcf3   :  { %6206 = vmatprep.subr.bf16.mxu1 %v6786_v3 }
 0xd98   :  { %v1230_v23 = vpop.f32.mrb[10].mxu1 }
 0xd99   :  { %v1231_v26 = vadd.f32 %v7078_v19, %v1230_v23  ;;  %v5329_v27 = vpop.f32.mrb[11].mxu1 }
 0xd9b   :  { %v4558_v31 = vmul.f32 -1.442695, %v1231_v26 }
 0xd9d   :  { %6604 = vpow2.f32 %v4558_v31 }
 0xd9e   :  { %6606 = vtanh.f32 %v1231_v26 }
 0xda7   :  { %v6605_v7 = vpop.eup %6604 }
 0xda8   :  { %v1238_v32 = vadd.f32 1.0, %v6605_v7  ;;  %v1413_v33 = vpop.f32.mrb[12].mxu1  ;;  %v6607_v37 = vpop.eup %6606 }
 0xda9   :  { %v1414_v34 = vadd.f32 %v6978_v38, %v1413_v33  ;;  %v5367_v35 = vpop.f32.mrb[13].mxu1 }
 0xdaa   :  { %6608 = vrcp.f32 %v1238_v32 }
 0xdab   :  { %v4563_v36 = vmul.f32 -1.442695, %v1414_v34 }
 0xdad   :  { %6610 = vpow2.f32 %v4563_v36 }
 0xdae   :  { %6612 = vtanh.f32 %v1414_v34 }
 0xdb4   :  { %v6609_v39 = vpop.eup %6608 }
 0xdb5   :  { %v1241_v40 = vsel %vm6985_vm7, %v6607_v37, %v6609_v39 }
 0xdb6   :  { %1244 = vrot.lane.b32.xlu0 %v1241_v40, %s6789_s16  ;;  %v1242_v53 = vmul.f32 %v1241_v40, %v7229_v60 }
 0xdb7   :  { %v6611_v41 = vpop.eup %6610 }
 0xdb8   :  { %v1421_v42 = vadd.f32 1.0, %v6611_v41  ;;  %v1626_v43 = vpop.f32.mrb[14].mxu1  ;;  %v6613_v45 = vpop.eup %6612 }
 0xdb9   :  { %v5405_v44 = vpop.f32.mrb[15].mxu1 }
 0xdba   :  { %6614 = vrcp.f32 %v1421_v42 }
 0xdc4   :  { %v6615_v46 = vpop.eup %6614 }
 0xdc5   :  { %v1424_v48 = vsel %vm6985_vm7, %v6613_v45, %v6615_v46 }
 0xdc6   :  { %1427 = vrot.lane.b32.xlu1 %v1424_v48, %s6789_s16  ;;  %v1425_v1 = vmul.f32 %v1424_v48, %v7234_v9 }
 0xe28   :  { %v1245_v49 = vpop.permute.xlu0 %1244 }
 0xe29   :  { %v1247_v50 = vmul.f32 %v1245_v49, %v1241_v40 }
 0xe2b   :  { %1249 = vrot.lane.b32.xlu0 %v1247_v50, %s6790_s17 }
 0xe38   :  { %v1428_v51 = vpop.permute.xlu1 %1427 }
 0xe39   :  { %v1430_v52 = vmul.f32 %v1428_v51, %v1424_v48 }
 0xe3b   :  { %1432 = vrot.lane.b32.xlu1 %v1430_v52, %s6790_s17 }
 0xe9d   :  { %v1250_v54 = vpop.permute.xlu0 %1249 }
 0xe9e   :  { %v7292_v56 = vadd.f32 %v1250_v54, %v1242_v53 }
 0xea0   :  { %6616 = vtanh.f32 %v7292_v56 }
 0xeaa   :  { %v6617_v62 = vpop.eup %6616 }
 0xeab   :  { %1255 = vrot.lane.b32.xlu0 %v6617_v62, %s6789_s16 }
 0xead   :  { %v1433_v5 = vpop.permute.xlu1 %1432 }
 0xeae   :  { %v7297_v57 = vadd.f32 %v1433_v5, %v1425_v1 }
 0xeb0   :  { %6618 = vtanh.f32 %v7297_v57 }
 0xeba   :  { %v6619_v11 = vpop.eup %6618 }
 0xebb   :  { %1438 = vrot.lane.b32.xlu1 %v6619_v11, %s6789_s16 }
 0xf1d   :  { %v1256_v58 = vpop.permute.xlu0 %1255 }
 0xf1e   :  { %v1258_v60 = vmul.f32 %v1256_v58, %v1241_v40 }
 0xf20   :  { %1447 = vrot.lane.b32.xlu1 %v1258_v60, %s6789_s16 }
 0xf24   :  { %1842 = vperm.xlu1 %6547, %v4573_v12   ;;  %v4580_v12 = vld [vmem:[%s8155_s0 + $0x38] sm:$0xff] }
 0xf2d   :  { %v1439_v55 = vpop.permute.xlu1 %1438 }
 0xf2e   :  { %v1441_v63 = vmul.f32 %v1439_v55, %v1424_v48 }
 0xf30   :  { %1443 = vrot.lane.b32.xlu0 %v1441_v63, %s6790_s17 }
 0xf34   :  { %1630 = vrot.lane.b32.xlu0 %v1441_v63, %s6789_s16 }
 0xf92   :  { %v1448_v9 = vpop.permute.xlu1 %1447 }
 0xfa2   :  { %v1444_v4 = vpop.permute.xlu0 %1443 }
 0xfa3   :  { %v1450_v13 = vsel %vm160_vm3, %v1444_v4, %v1448_v9  ;;  %v1843_v20 = vpop.permute.xlu1 %1842 }
 0xfa4   :  { %5385 = vmatmul.mubr.msk.f32.vlgmr.msra.gmra.mrb[14].mxu0 %vm77_vm1, %v1450_v13  ;;  %vm1844_vm12 = vcmp.eq.s32.totalorder %v6951_v30, %v1843_v20 }
 0xfa5   :  { %6172 = vmatpush3.bf16.msra.mxu0 %v6906_v17  ;;  %5422 = vmatprep.mubr.msk.f32.mxu0 %vm6788_vm0, %v7310_v14  ;;  %v4574_v22 = vsel %vm1844_vm12, 1.0, %v7310_v14 }
 0xfa6   :  { %6173 = vmatprep.subr.bf16.mxu0 %v6786_v3  ;;  %v1631_v15 = vpop.permute.xlu0 %1630 }
 0xfa7   :  { %v1633_v18 = vsel %vm160_vm3, %v1626_v43, %v1631_v15 }
 0xfa9   :  { %6175 = vmatpush3.bf16.msra.mxu0 %v6919_v21 }
 0xfaa   :  { %6176 = vmatprep.subr.bf16.mxu0 %v6786_v3 }
 0xfad   :  { %6178 = vmatpush3.bf16.msra.mxu0 %v6933_v25 }
 0xfae   :  { %6179 = vmatprep.subr.bf16.mxu0 %v6786_v3 }
 0xfb1   :  { %6181 = vmatpush3.bf16.msra.mxu0 %v6945_v28 }
 0xfb2   :  { %6194 = vmatprep.subr.bf16.mxu0 %v6786_v3 }
 0xfb4   :  { %5423 = vmatmul.mubr.msk.f32.vlgmr.msra.gmra.mrb[16].mxu0 %vm77_vm1, %v1633_v18 }
 0xfb5   :  { %6196 = vmatpush3.bf16.msra.mxu0 %v6873_v8  ;;  %5460 = vmatprep.mubr.msk.f32.mxu0 %vm6788_vm0, %v7310_v14 }
 0xfb6   :  { %6197 = vmatprep.subr.bf16.mxu0 %v6786_v3 }
 0xfb9   :  { %6199 = vmatpush3.bf16.msra.mxu0 %v6884_v10 }
 0xfba   :  { %6200 = vmatprep.subr.bf16.mxu0 %v6786_v3 }
 0xfbd   :  { %6202 = vmatpush3.bf16.msra.mxu0 %v6904_v16 }
 0xfbe   :  { %6203 = vmatprep.subr.bf16.mxu0 %v6786_v3 }
 0xfc1   :  { %6205 = vmatpush3.bf16.msra.mxu0 %v6929_v24 }
 0xfc2   :  { %6218 = vmatprep.subr.bf16.mxu0 %v6786_v3 }
 0xfc4   :  { %5461 = vmatmul.mubr.msk.f32.vlgmr.msra.gmra.mrb[18].mxu0 %vm77_vm1, %v4574_v22 }
 0xfc5   :  { %6220 = vmatpush3.bf16.msra.mxu0 %v7005_v59  ;;  %5498 = vmatprep.mubr.msk.f32.mxu0 %vm6788_vm0, %v7310_v14 }
 0xfc6   :  { %6221 = vmatprep.subr.bf16.mxu0 %v6786_v3 }
 0xfc9   :  { %6223 = vmatpush3.bf16.msra.mxu0 %v7011_v61 }
 0xfca   :  { %6224 = vmatprep.subr.bf16.mxu0 %v6786_v3 }
 0xfcd   :  { %6226 = vmatpush3.bf16.msra.mxu0 %v7023_v0 }
 0xfce   :  { %6227 = vmatprep.subr.bf16.mxu0 %v6786_v3 }
 0xfd1   :  { %6229 = vmatpush3.bf16.msra.mxu0 %v7036_v6 }
 0xfd2   :  { %6242 = vmatprep.subr.bf16.mxu0 %v6786_v3 }
0x1077   :  { %v1520_v23 = vpop.f32.mrb[14].mxu0 }
0x1078   :  { %v1521_v26 = vadd.f32 %v7078_v19, %v1520_v23  ;;  %v5386_v27 = vpop.f32.mrb[15].mxu0 }
0x107a   :  { %v4565_v31 = vmul.f32 -1.442695, %v1521_v26 }
0x107c   :  { %6620 = vpow2.f32 %v4565_v31 }
0x107d   :  { %6622 = vtanh.f32 %v1521_v26 }
0x1086   :  { %v6621_v7 = vpop.eup %6620 }
0x1087   :  { %v1528_v32 = vadd.f32 1.0, %v6621_v7  ;;  %v1703_v33 = vpop.f32.mrb[16].mxu0  ;;  %v6623_v37 = vpop.eup %6622 }
0x1088   :  { %v1704_v34 = vadd.f32 %v6978_v38, %v1703_v33  ;;  %v5424_v35 = vpop.f32.mrb[17].mxu0 }
0x1089   :  { %6624 = vrcp.f32 %v1528_v32 }
0x108a   :  { %v4570_v36 = vmul.f32 -1.442695, %v1704_v34 }
0x108c   :  { %6626 = vpow2.f32 %v4570_v36 }
0x108d   :  { %6628 = vtanh.f32 %v1704_v34 }
0x1093   :  { %v6625_v39 = vpop.eup %6624 }
0x1094   :  { %v1531_v40 = vsel %vm6985_vm7, %v6623_v37, %v6625_v39 }
0x1095   :  { %1534 = vrot.lane.b32.xlu0 %v1531_v40, %s6789_s16  ;;  %v1532_v52 = vmul.f32 %v1531_v40, %v7292_v56 }
0x1096   :  { %v6627_v41 = vpop.eup %6626 }
0x1097   :  { %v1711_v42 = vadd.f32 1.0, %v6627_v41  ;;  %v1916_v43 = vpop.f32.mrb[18].mxu0  ;;  %v6629_v45 = vpop.eup %6628 }
0x1098   :  { %v5462_v44 = vpop.f32.mrb[19].mxu0 }
0x1099   :  { %6630 = vrcp.f32 %v1711_v42 }
0x10a3   :  { %v6631_v46 = vpop.eup %6630 }
0x10a4   :  { %v1714_v38 = vsel %vm6985_vm7, %v6629_v45, %v6631_v46 }
0x10a5   :  { %1717 = vrot.lane.b32.xlu1 %v1714_v38, %s6789_s16  ;;  %v1715_v1 = vmul.f32 %v1714_v38, %v7297_v57 }
0x1107   :  { %v1535_v48 = vpop.permute.xlu0 %1534 }
0x1108   :  { %v1537_v49 = vmul.f32 %v1535_v48, %v1531_v40 }
0x110a   :  { %1539 = vrot.lane.b32.xlu0 %v1537_v49, %s6790_s17 }
0x1117   :  { %v1718_v50 = vpop.permute.xlu1 %1717 }
0x1118   :  { %v1720_v51 = vmul.f32 %v1718_v50, %v1714_v38 }
0x111a   :  { %1722 = vrot.lane.b32.xlu1 %v1720_v51, %s6790_s17 }
0x117c   :  { %v1540_v53 = vpop.permute.xlu0 %1539 }
0x117d   :  { %v7357_v54 = vadd.f32 %v1540_v53, %v1532_v52  ;;  %v2420_v53 = vld [vmem:[%s8156_s1] sm:$0xff] }
0x117f   :  { %6632 = vtanh.f32 %v7357_v54 }
0x1189   :  { %v6633_v62 = vpop.eup %6632 }
0x118a   :  { %1545 = vrot.lane.b32.xlu0 %v6633_v62, %s6789_s16 }
0x118c   :  { %v1723_v5 = vpop.permute.xlu1 %1722 }
0x118d   :  { %v7362_v11 = vadd.f32 %v1723_v5, %v1715_v1 }
0x118f   :  { %6634 = vtanh.f32 %v7362_v11 }
0x1199   :  { %v6635_v58 = vpop.eup %6634 }
0x119a   :  { %1728 = vrot.lane.b32.xlu1 %v6635_v58, %s6789_s16  ;;  %v47_v58 = vld [vmem:[%s8159_s4] sm:$0xff] }
0x11fc   :  { %v1546_v60 = vpop.permute.xlu0 %1545 }
0x11fd   :  { %v1548_v56 = vmul.f32 %v1546_v60, %v1531_v40 }
0x11ff   :  { %1737 = vrot.lane.b32.xlu1 %v1548_v56, %s6789_s16 }
0x1203   :  { %2132 = vperm.xlu1 %6547, %v4580_v12  }
0x120c   :  { %v1729_v55 = vpop.permute.xlu1 %1728 }
0x120d   :  { %v1731_v63 = vmul.f32 %v1729_v55, %v1714_v38 }
0x120f   :  { %1733 = vrot.lane.b32.xlu0 %v1731_v63, %s6790_s17 }
0x1213   :  { %1920 = vrot.lane.b32.xlu0 %v1731_v63, %s6789_s16  ;;  %v52_v63 = vld [vmem:[%s8159_s4 + $0x28] sm:$0xff] }
0x1271   :  { %v1738_v57 = vpop.permute.xlu1 %1737 }
0x1281   :  { %v1734_v9 = vpop.permute.xlu0 %1733 }
0x1282   :  { %v1740_v4 = vsel %vm160_vm3, %v1734_v9, %v1738_v57  ;;  %v2133_v18 = vpop.permute.xlu1 %2132  ;;  %v53_v9 = vld [vmem:[%s8159_s4 + $0x30] sm:$0xff] }
0x1283   :  { %5442 = vmatmul.mubr.msk.f32.vlgmr.msra.gmra.mrb[16].mxu1 %vm77_vm1, %v1740_v4  ;;  %vm2134_vm13 = vcmp.eq.s32.totalorder %v6951_v30, %v2133_v18  ;;  %v54_v4 = vld [vmem:[%s8159_s4 + $0x38] sm:$0xff]  ;;  %v56_v18 = vld [vmem:[%s8159_s4 + $0x48] sm:$0xff] }
0x1284   :  { %6208 = vmatpush3.bf16.msra.mxu1 %v6906_v17  ;;  %5479 = vmatprep.mubr.msk.f32.mxu1 %vm6788_vm0, %v7310_v14 }
0x1285   :  { %6209 = vmatprep.subr.bf16.mxu1 %v6786_v3  ;;  %v1921_v13 = vpop.permute.xlu0 %1920 }
0x1286   :  { %v1923_v15 = vsel %vm160_vm3, %v1916_v43, %v1921_v13  ;;  %v7491_v13 = vpack.c.bf16 %v54_v4, %v53_v9  ;;  %v2498_v9 = vld [vmem:[%s8162_s7 + $0x8] sm:$0xff] }
0x1288   :  { %6211 = vmatpush3.bf16.msra.mxu1 %v6919_v21 }
0x1289   :  { %6212 = vmatprep.subr.bf16.mxu1 %v6786_v3 }
0x128c   :  { %6214 = vmatpush3.bf16.msra.mxu1 %v6933_v25 }
0x128d   :  { %6215 = vmatprep.subr.bf16.mxu1 %v6786_v3 }
0x1290   :  { %6217 = vmatpush3.bf16.msra.mxu1 %v6945_v28 }
0x1291   :  { %6230 = vmatprep.subr.bf16.mxu1 %v6786_v3 }
0x1293   :  { %5480 = vmatmul.mubr.msk.f32.vlgmr.msra.gmra.mrb[18].mxu1 %vm77_vm1, %v1923_v15  ;;  %v55_v15 = vld [vmem:[%s8159_s4 + $0x40] sm:$0xff] }
0x1294   :  { %6232 = vmatpush3.bf16.msra.mxu1 %v6873_v8  ;;  %5517 = vmatprep.mubr.msk.f32.mxu1 %vm6788_vm0, %v7310_v14  ;;  %v4581_v8 = vsel %vm2134_vm13, 1.0, %v7310_v14 }
0x1295   :  { %6233 = vmatprep.subr.bf16.mxu1 %v6786_v3 }
0x1298   :  { %6235 = vmatpush3.bf16.msra.mxu1 %v6884_v10 }
0x1299   :  { %6236 = vmatprep.subr.bf16.mxu1 %v6786_v3 }
0x129c   :  { %6238 = vmatpush3.bf16.msra.mxu1 %v6904_v16 }
0x129d   :  { %6239 = vmatprep.subr.bf16.mxu1 %v6786_v3 }
0x12a0   :  { %6241 = vmatpush3.bf16.msra.mxu1 %v6929_v24 }
0x12a1   :  { %6254 = vmatprep.subr.bf16.mxu1 %v6786_v3 }
0x12a3   :  { %5518 = vmatmul.mubr.msk.f32.vlgmr.msra.gmra.mrb[20].mxu1 %vm77_vm1, %v4581_v8  ;;  %v7501_v8 = vpack.c.bf16 %v56_v18, %v55_v15 }
0x12a4   :  { %6256 = vmatpush3.bf16.msra.mxu1 %v7005_v59  ;;  %5555 = vmatprep.mubr.msk.f32.mxu1 %vm6788_vm0, %v7310_v14 }
0x12a5   :  { %6257 = vmatprep.subr.bf16.mxu1 %v6786_v3 }
0x12a8   :  { %6259 = vmatpush3.bf16.msra.mxu1 %v7011_v61  ;;  %v7413_v61 = vld [vmem:[%s8161_s6] ss:$0 sm:$0xff] }
0x12a9   :  { %6260 = vmatprep.subr.bf16.mxu1 %v6786_v3 }
0x12ac   :  { %6262 = vmatpush3.bf16.msra.mxu1 %v7023_v0 }
0x12ad   :  { %6263 = vmatprep.subr.bf16.mxu1 %v6786_v3 }
0x12b0   :  { %6265 = vmatpush3.bf16.msra.mxu1 %v7036_v6 }
0x12b1   :  { %6290 = vmatprep.subr.bf16.mxu1 %v6786_v3 }
0x1356   :  { %v1810_v10 = vpop.f32.mrb[16].mxu1 }
0x1357   :  { %v1811_v16 = vadd.f32 %v7078_v19, %v1810_v10  ;;  %v5443_v24 = vpop.f32.mrb[17].mxu1  ;;  %v57_v10 = vld [vmem:[%s8159_s4 + $0x50] sm:$0xff] }
0x1359   :  { %v4572_v59 = vmul.f32 -1.442695, %v1811_v16 }
0x135b   :  { %6636 = vpow2.f32 %v4572_v59  ;;  %v59_v59 = vld [vmem:[%s8159_s4 + $0x60] sm:$0xff] }
0x135c   :  { %6638 = vtanh.f32 %v1811_v16  ;;  %v58_v16 = vld [vmem:[%s8159_s4 + $0x58] sm:$0xff] }
0x135d   :  { %v7511_v24 = vpack.c.bf16 %v58_v16, %v57_v10  ;;  %v2499_v10 = vld [vmem:[%s8162_s7 + $0x10] sm:$0xff]  ;;  %v2500_v16 = vld [vmem:[%s8162_s7 + $0x18] sm:$0xff] }
0x1365   :  { %v6637_v20 = vpop.eup %6636 }
0x1366   :  { %v1818_v22 = vadd.f32 1.0, %v6637_v20  ;;  %v1993_v23 = vpop.f32.mrb[18].mxu1  ;;  %v6639_v27 = vpop.eup %6638  ;;  %v60_v20 = vld [vmem:[%s8159_s4 + $0x68] sm:$0xff] }
0x1367   :  { %v1994_v0 = vadd.f32 %v7413_v61, %v1993_v23  ;;  %v5481_v6 = vpop.f32.mrb[19].mxu1  ;;  %v61_v23 = vld [vmem:[%s8159_s4 + $0x70] sm:$0xff] }
0x1368   :  { %6640 = vrcp.f32 %v1818_v22  ;;  %v7521_v22 = vpack.c.bf16 %v60_v20, %v59_v59  ;;  %v7585_v20 = vpack.c.bf16 %v2500_v16, %v2499_v10  ;;  %v4596_v16 = vld [vmem:[%s8162_s7 + $0x60] sm:$0xff] }
0x1369   :  { %v4577_v26 = vmul.f32 -1.442695, %v1994_v0 }
0x136b   :  { %6642 = vpow2.f32 %v4577_v26 }
0x136c   :  { %6644 = vtanh.f32 %v1994_v0  ;;  %v62_v0 = vld [vmem:[%s8159_s4 + $0x78] sm:$0xff] }
0x136d   :  { %v7531_v6 = vpack.c.bf16 %v62_v0, %v61_v23  ;;  %v2501_v23 = vld [vmem:[%s8162_s7 + $0x20] sm:$0xff]  ;;  %v2502_v0 = vld [vmem:[%s8162_s7 + $0x28] sm:$0xff] }
0x1372   :  { %v6641_v19 = vpop.eup %6640 }
0x1373   :  { %v1821_v31 = vsel %vm6985_vm7, %v6639_v27, %v6641_v19  ;;  %v6791_v27 = vmov 1.0  }
0x1374   :  { %1824 = vrot.lane.b32.xlu0 %v1821_v31, %s6789_s16  ;;  %v1822_v43 = vmul.f32 %v1821_v31, %v7357_v54 }
0x1375   :  { %v6643_v7 = vpop.eup %6642 }
0x1376   :  { %v2001_v32 = vadd.f32 1.0, %v6643_v7  ;;  %v2206_v33 = vpop.f32.mrb[20].mxu1  ;;  %v6645_v35 = vpop.eup %6644 }
0x1377   :  { %v5519_v34 = vpop.f32.mrb[21].mxu1 }
0x1378   :  { %6646 = vrcp.f32 %v2001_v32 }
0x1382   :  { %v6647_v36 = vpop.eup %6646 }
0x1383   :  { %v2004_v37 = vsel %vm6985_vm7, %v6645_v35, %v6647_v36 }
0x1384   :  { %2007 = vrot.lane.b32.xlu1 %v2004_v37, %s6789_s16  ;;  %v2005_v38 = vmul.f32 %v2004_v37, %v7362_v11 }
0x13e6   :  { %v1825_v39 = vpop.permute.xlu0 %1824 }
0x13e7   :  { %v1827_v40 = vmul.f32 %v1825_v39, %v1821_v31 }
0x13e9   :  { %1829 = vrot.lane.b32.xlu0 %v1827_v40, %s6790_s17 }
0x13f6   :  { %v2008_v41 = vpop.permute.xlu1 %2007 }
0x13f7   :  { %v2010_v42 = vmul.f32 %v2008_v41, %v2004_v37 }
0x13f9   :  { %2012 = vrot.lane.b32.xlu1 %v2010_v42, %s6790_s17 }
0x145b   :  { %v1830_v44 = vpop.permute.xlu0 %1829 }
0x145c   :  { %v7425_v45 = vadd.f32 %v1830_v44, %v1822_v43 }
0x145e   :  { %6648 = vtanh.f32 %v7425_v45 }
0x1468   :  { %v6649_v46 = vpop.eup %6648 }
0x1469   :  { %1835 = vrot.lane.b32.xlu0 %v6649_v46, %s6789_s16 }
0x146b   :  { %v2013_v48 = vpop.permute.xlu1 %2012 }
0x146c   :  { %v7430_v49 = vadd.f32 %v2013_v48, %v2005_v38 }
0x146e   :  { %6650 = vtanh.f32 %v7430_v49 }
0x1478   :  { %v6651_v50 = vpop.eup %6650 }
0x1479   :  { %2018 = vrot.lane.b32.xlu1 %v6651_v50, %s6789_s16 }
0x14db   :  { %v1836_v51 = vpop.permute.xlu0 %1835 }
0x14dc   :  { %v1838_v52 = vmul.f32 %v1836_v51, %v1821_v31  ;;  %v7543_v31 = vld [vmem:[%s8161_s6 + $0x1] ss:$0 sm:$0xff] }
0x14de   :  { %2027 = vrot.lane.b32.xlu1 %v1838_v52, %s6789_s16 }
0x14e2   :  { %2422 = vperm.xlu1 %6547, %v2420_v53  }
0x14eb   :  { %v2019_v54 = vpop.permute.xlu1 %2018 }
0x14ec   :  { %v2021_v62 = vmul.f32 %v2019_v54, %v2004_v37 }
0x14ee   :  { %2023 = vrot.lane.b32.xlu0 %v2021_v62, %s6790_s17 }
0x14f2   :  { %2210 = vrot.lane.b32.xlu0 %v2021_v62, %s6789_s16 }
0x1550   :  { %v2028_v1 = vpop.permute.xlu1 %2027 }
0x1560   :  { %v2024_v5 = vpop.permute.xlu0 %2023 }
0x1561   :  { %v2030_v11 = vsel %vm160_vm3, %v2024_v5, %v2028_v1  ;;  %v2423_v26 = vpop.permute.xlu1 %2422 }
0x1562   :  { %5499 = vmatmul.mubr.msk.f32.vlgmr.msra.gmra.mrb[20].mxu0 %vm77_vm1, %v2030_v11  ;;  %vm2424_vm14 = vcmp.eq.s32.totalorder %v6951_v30, %v2423_v26  ;;  %v7597_v26 = vpack.c.bf16 %v2502_v0, %v2501_v23  ;;  %v4598_v0 = vld [vmem:[%s8162_s7 + $0x70] sm:$0xff] }
0x1563   :  { %6244 = vmatpush3.bf16.msra.mxu0 %v6906_v17  ;;  %5536 = vmatprep.mubr.msk.f32.mxu0 %vm6788_vm0, %v7310_v14  ;;  %v48_v17 = vld [vmem:[%s8159_s4 + $0x8] sm:$0xff] }
0x1564   :  { %6245 = vmatprep.subr.bf16.mxu0 %v6786_v3  ;;  %v2211_v60 = vpop.permute.xlu0 %2210  ;;  %v7457_v56 = vpack.c.bf16 %v48_v17, %v47_v58 }
0x1565   :  { %v2213_v12 = vsel %vm160_vm3, %v2206_v33, %v2211_v60 }
0x1567   :  { %6247 = vmatpush3.bf16.msra.mxu0 %v6919_v21  ;;  %v49_v21 = vld [vmem:[%s8159_s4 + $0x10] sm:$0xff] }
0x1568   :  { %6248 = vmatprep.subr.bf16.mxu0 %v6786_v3 }
0x156b   :  { %6250 = vmatpush3.bf16.msra.mxu0 %v6933_v25  ;;  %v50_v25 = vld [vmem:[%s8159_s4 + $0x18] sm:$0xff] }
0x156c   :  { %6251 = vmatprep.subr.bf16.mxu0 %v6786_v3  ;;  %v7469_v55 = vpack.c.bf16 %v50_v25, %v49_v21 }
0x156f   :  { %6253 = vmatpush3.bf16.msra.mxu0 %v6945_v28  ;;  %v51_v28 = vld [vmem:[%s8159_s4 + $0x20] sm:$0xff] }
0x1570   :  { %6266 = vmatprep.subr.bf16.mxu0 %v6786_v3  ;;  %v7481_v57 = vpack.c.bf16 %v52_v63, %v51_v28 }
0x1572   :  { %5537 = vmatmul.mubr.msk.f32.vlgmr.msra.gmra.mrb[22].mxu0 %vm77_vm1, %v2213_v12 }
0x1573   :  { %6268 = vmatpush3.bf16.msra.mxu0 %v7457_v56  ;;  %5590 = vmatprep.mubr.msk.f32.mxu0 %vm6788_vm0, %v7310_v14 }
0x1574   :  { %6269 = vmatprep.subr.bf16.mxu0 %v6786_v3 }
0x1577   :  { %6271 = vmatpush3.bf16.msra.mxu0 %v7469_v55 }
0x1578   :  { %6272 = vmatprep.subr.bf16.mxu0 %v6786_v3 }
0x157b   :  { %6274 = vmatpush3.bf16.msra.mxu0 %v7481_v57 }
0x157c   :  { %6275 = vmatprep.subr.bf16.mxu0 %v6786_v3 }
0x157f   :  { %6277 = vmatpush3.bf16.msra.mxu0 %v7491_v13 }
0x1580   :  { %6278 = vmatprep.subr.bf16.mxu0 %v6786_v3 }
0x1583   :  { %6280 = vmatpush3.bf16.msra.mxu0 %v7501_v8 }
0x1584   :  { %6281 = vmatprep.subr.bf16.mxu0 %v6786_v3 }
0x1587   :  { %6283 = vmatpush3.bf16.msra.mxu0 %v7511_v24 }
0x1588   :  { %6284 = vmatprep.subr.bf16.mxu0 %v6786_v3 }
0x158b   :  { %6286 = vmatpush3.bf16.msra.mxu0 %v7521_v22 }
0x158c   :  { %6287 = vmatprep.subr.bf16.mxu0 %v6786_v3 }
0x158f   :  { %6289 = vmatpush3.bf16.msra.mxu0 %v7531_v6 }
0x1590   :  { %6314 = vmatprep.subr.bf16.mxu0 %v6786_v3 }
0x1592   :  { %5591 = vmatmul.mubr.msk.f32.vlgmr.msra.gmra.mrb[24].mxu0 %vm2424_vm14, %v6791_v27 }
0x1593   :  { %5639 = vmatprep.mubr.msk.f32.mxu0 %vm6788_vm0, %v7310_v14 }
0x1635   :  { %v2100_v19 = vpop.f32.mrb[20].mxu0 }
0x1636   :  { %v2101_v7 = vadd.f32 %v7543_v31, %v2100_v19  ;;  %v5500_v32 = vpop.f32.mrb[21].mxu0  ;;  %v2503_v19 = vld [vmem:[%s8162_s7 + $0x30] sm:$0xff] }
0x1638   :  { %v4579_v33 = vmul.f32 -1.442695, %v2101_v7 }
0x163a   :  { %6652 = vpow2.f32 %v4579_v33 }
0x163b   :  { %6654 = vtanh.f32 %v2101_v7  ;;  %v2504_v7 = vld [vmem:[%s8162_s7 + $0x38] sm:$0xff] }
0x163c   :  { %v7607_v32 = vpack.c.bf16 %v2504_v7, %v2503_v19  ;;  %v4599_v19 = vld [vmem:[%s8162_s7 + $0x78] sm:$0xff] }
0x1644   :  { %v6653_v34 = vpop.eup %6652 }
0x1645   :  { %v2108_v35 = vadd.f32 1.0, %v6653_v34  ;;  %v2283_v36 = vpop.f32.mrb[22].mxu0  ;;  %v6655_v41 = vpop.eup %6654 }
0x1646   :  { %v2284_v37 = vadd.f32 %v7413_v61, %v2283_v36  ;;  %v5538_v39 = vpop.f32.mrb[23].mxu0 }
0x1647   :  { %6656 = vrcp.f32 %v2108_v35 }
0x1648   :  { %v4584_v40 = vmul.f32 -1.442695, %v2284_v37 }
0x164a   :  { %6658 = vpow2.f32 %v4584_v40  ;;  %v7620_v40 = vld [vmem:[%s8163_s8] ss:$0 sm:$0xff] }
0x164b   :  { %6660 = vtanh.f32 %v2284_v37 }
0x1651   :  { %v6657_v42 = vpop.eup %6656 }
0x1652   :  { %v2111_v43 = vsel %vm6985_vm7, %v6655_v41, %v6657_v42 }
0x1653   :  { %2114 = vrot.lane.b32.xlu0 %v2111_v43, %s6789_s16  ;;  %v2112_v1 = vmul.f32 %v2111_v43, %v7425_v45 }
0x1654   :  { %v6659_v44 = vpop.eup %6658 }
0x1655   :  { %v2291_v46 = vadd.f32 1.0, %v6659_v44  ;;  %v6661_v38 = vpop.eup %6660 }
0x1657   :  { %6662 = vrcp.f32 %v2291_v46 }
0x1661   :  { %v6663_v48 = vpop.eup %6662 }
0x1662   :  { %v2294_v61 = vsel %vm6985_vm7, %v6661_v38, %v6663_v48 }
0x1663   :  { %2297 = vrot.lane.b32.xlu1 %v2294_v61, %s6789_s16  ;;  %v2295_v17 = vmul.f32 %v2294_v61, %v7430_v49  ;;  %v2497_v49 = vld [vmem:[%s8162_s7] sm:$0xff] }
0x1664   :  { %v7574_v4 = vpack.c.bf16 %v2498_v9, %v2497_v49  ;;  %v4593_v9 = vld [vmem:[%s8162_s7 + $0x48] sm:$0xff] }
0x1665   :  { %v2493_v50 = vpop.f32.mrb[24].mxu0 }
0x1666   :  { %v5592_v51 = vpop.f32.mrb[25].mxu0 }
0x16c5   :  { %v2115_v52 = vpop.permute.xlu0 %2114 }
0x16c6   :  { %v2117_v53 = vmul.f32 %v2115_v52, %v2111_v43 }
0x16c8   :  { %2119 = vrot.lane.b32.xlu0 %v2117_v53, %s6790_s17 }
0x16d5   :  { %v2298_v54 = vpop.permute.xlu1 %2297 }
0x16d6   :  { %v2300_v62 = vmul.f32 %v2298_v54, %v2294_v61 }
0x16d8   :  { %2302 = vrot.lane.b32.xlu1 %v2300_v62, %s6790_s17 }
0x173a   :  { %v2120_v5 = vpop.permute.xlu0 %2119 }
0x173b   :  { %v7556_v11 = vadd.f32 %v2120_v5, %v2112_v1 }
0x173d   :  { %6664 = vtanh.f32 %v7556_v11 }
0x1747   :  { %v6665_v58 = vpop.eup %6664 }
0x1748   :  { %2125 = vrot.lane.b32.xlu0 %v6665_v58, %s6789_s16 }
0x174a   :  { %v2303_v60 = vpop.permute.xlu1 %2302 }
0x174b   :  { %v7561_v21 = vadd.f32 %v2303_v60, %v2295_v17 }
0x174d   :  { %6666 = vtanh.f32 %v7561_v21 }
0x1757   :  { %v6667_v25 = vpop.eup %6666 }
0x1758   :  { %2308 = vrot.lane.b32.xlu1 %v6667_v25, %s6789_s16 }
0x17ba   :  { %v2126_v12 = vpop.permute.xlu0 %2125 }
0x17bb   :  { %v2128_v45 = vmul.f32 %v2126_v12, %v2111_v43 }
0x17bd   :  { %2317 = vrot.lane.b32.xlu1 %v2128_v45, %s6789_s16 }
0x17ca   :  { %v2309_v28 = vpop.permute.xlu1 %2308 }
0x17cb   :  { %v2311_v63 = vmul.f32 %v2309_v28, %v2294_v61 }
0x17cd   :  { %2313 = vrot.lane.b32.xlu0 %v2311_v63, %s6790_s17 }
0x17d1   :  { %2506 = vrot.lane.b32.xlu0 %v2311_v63, %s6789_s16 }
0x182f   :  { %v2318_v15 = vpop.permute.xlu1 %2317 }
0x183f   :  { %v2314_v18 = vpop.permute.xlu0 %2313 }
0x1840   :  { %v2320_v59 = vsel %vm160_vm3, %v2314_v18, %v2318_v15  ;;  %v4595_v18 = vld [vmem:[%s8162_s7 + $0x58] sm:$0xff] }
0x1841   :  { %5556 = vmatmul.mubr.msk.f32.vlgmr.msra.gmra.mrb[22].mxu1 %vm77_vm1, %v2320_v59  ;;  %v4597_v59 = vld [vmem:[%s8162_s7 + $0x68] sm:$0xff] }
0x1842   :  { %6292 = vmatpush3.bf16.msra.mxu1 %v7574_v4  ;;  %5609 = vmatprep.mubr.msk.f32.mxu1 %vm6788_vm0, %v7310_v14  ;;  %v7666_v23 = vpack.c.bf16 %v4597_v59, %v4596_v16 }
0x1843   :  { %6293 = vmatprep.subr.bf16.mxu1 %v6786_v3  ;;  %v2507_v33 = vpop.permute.xlu0 %2506 }
0x1844   :  { %v2509_v34 = vsel %vm160_vm3, %v2493_v50, %v2507_v33  ;;  %v7676_v33 = vpack.c.bf16 %v4599_v19, %v4598_v0 }
0x1846   :  { %6295 = vmatpush3.bf16.msra.mxu1 %v7585_v20 }
0x1847   :  { %6296 = vmatprep.subr.bf16.mxu1 %v6786_v3 }
0x184a   :  { %6298 = vmatpush3.bf16.msra.mxu1 %v7597_v26 }
0x184b   :  { %6299 = vmatprep.subr.bf16.mxu1 %v6786_v3 }
0x184e   :  { %6301 = vmatpush3.bf16.msra.mxu1 %v7607_v32 }
0x184f   :  { %6302 = vmatprep.subr.bf16.mxu1 %v6786_v3 }
0x1851   :  { %5610 = vmatmul.mubr.msk.f32.vlgmr.msra.gmra.mrb[24].mxu1 %vm77_vm1, %v2509_v34 }
0x1852   :  { %5628 = vmatprep.mubr.msk.f32.mxu1 %vm6788_vm0, %v7310_v14 }
0x1914   :  { %v2390_v35 = vpop.f32.mrb[22].mxu1 }
0x1915   :  { %v2391_v36 = vadd.f32 %v7543_v31, %v2390_v35  ;;  %v5557_v37 = vpop.f32.mrb[23].mxu1 }
0x1917   :  { %v4586_v39 = vmul.f32 -1.442695, %v2391_v36 }
0x1919   :  { %6668 = vpow2.f32 %v4586_v39 }
0x191a   :  { %6670 = vtanh.f32 %v2391_v36 }
0x1923   :  { %v6669_v41 = vpop.eup %6668 }
0x1924   :  { %v2398_v42 = vadd.f32 1.0, %v6669_v41  ;;  %v2585_v43 = vpop.f32.mrb[24].mxu1  ;;  %v6671_v48 = vpop.eup %6670 }
0x1925   :  { %v2586_v44 = vadd.f32 %v7620_v40, %v2585_v43  ;;  %v5611_v46 = vpop.f32.mrb[25].mxu1 }
0x1926   :  { %6672 = vrcp.f32 %v2398_v42  ;;  %v7709_v42 = vld [vmem:[%s8163_s8 + $0x1] ss:$0 sm:$0xff] }
0x1927   :  { %v4591_v38 = vmul.f32 -1.442695, %v2586_v44 }
0x1929   :  { %6674 = vpow2.f32 %v4591_v38 }
0x192a   :  { %6676 = vtanh.f32 %v2586_v44 }
0x1930   :  { %v6673_v31 = vpop.eup %6672 }
0x1931   :  { %v2401_v61 = vsel %vm6985_vm7, %v6671_v48, %v6673_v31 }
0x1932   :  { %2404 = vrot.lane.b32.xlu1 %v2401_v61, %s6789_s16  ;;  %v2402_v17 = vmul.f32 %v2401_v61, %v7556_v11  ;;  %v4592_v11 = vld [vmem:[%s8162_s7 + $0x40] sm:$0xff] }
0x1933   :  { %v6675_v50 = vpop.eup %6674  ;;  %v7650_v15 = vpack.c.bf16 %v4593_v9, %v4592_v11  ;;  %v7759_v9 = vld [vmem:[%s8165_s10] ss:$0 sm:$0xff] }
0x1934   :  { %v2593_v51 = vadd.f32 1.0, %v6675_v50  ;;  %v6677_v52 = vpop.eup %6676 }
0x1935   :  { %6304 = vmatpush3.bf16.msra.mxu1 %v7650_v15 }
0x1936   :  { %6678 = vrcp.f32 %v2593_v51  ;;  %6305 = vmatprep.subr.bf16.mxu1 %v6786_v3 }
0x1940   :  { %v6679_v53 = vpop.eup %6678 }
0x1941   :  { %v2596_v54 = vsel %vm6985_vm7, %v6677_v52, %v6679_v53 }
0x1942   :  { %2599 = vrot.lane.b32.xlu0 %v2596_v54, %s6789_s16  ;;  %v2597_v45 = vmul.f32 %v2596_v54, %v7561_v21  ;;  %v4594_v21 = vld [vmem:[%s8162_s7 + $0x50] sm:$0xff] }
0x1943   :  { %v7656_v10 = vpack.c.bf16 %v4595_v18, %v4594_v21 }
0x1945   :  { %6307 = vmatpush3.bf16.msra.mxu1 %v7656_v10 }
0x1946   :  { %6308 = vmatprep.subr.bf16.mxu1 %v6786_v3 }
0x1949   :  { %6310 = vmatpush3.bf16.msra.mxu1 %v7666_v23 }
0x194a   :  { %6311 = vmatprep.subr.bf16.mxu1 %v6786_v3 }
0x194d   :  { %6313 = vmatpush3.bf16.msra.mxu1 %v7676_v33 }
0x194e   :  { %6320 = vmatprep.subr.bf16.mxu1 %v6786_v3 }
0x19a4   :  { %v2405_v62 = vpop.permute.xlu1 %2404 }
0x19a5   :  { %v2407_v1 = vmul.f32 %v2405_v62, %v2401_v61 }
0x19a7   :  { %2409 = vrot.lane.b32.xlu1 %v2407_v1, %s6790_s17 }
0x19b4   :  { %v2600_v5 = vpop.permute.xlu0 %2599 }
0x19b5   :  { %v2602_v58 = vmul.f32 %v2600_v5, %v2596_v54  ;;  %v63_v5 = vld [vmem:[%s8164_s9] sm:$0xff] }
0x19b7   :  { %2604 = vrot.lane.b32.xlu0 %v2602_v58, %s6790_s17  ;;  %v64_v58 = vld [vmem:[%s8164_s9 + $0x8] sm:$0xff] }
0x1a19   :  { %v2410_v60 = vpop.permute.xlu1 %2409 }
0x1a1a   :  { %v7632_v25 = vadd.f32 %v2410_v60, %v2402_v17  ;;  %v65_v17 = vld [vmem:[%s8164_s9 + $0x10] sm:$0xff]  ;;  %v7729_v60 = vpack.c.bf16 %v64_v58, %v63_v5  ;;  %v7787_v58 = vld [vmem:[#allocation2] sm:$0xff] }
0x1a1c   :  { %6680 = vtanh.f32 %v7632_v25  ;;  %6316 = vmatpush3.bf16.msra.mxu0 %v7729_v60 }
0x1a1d   :  { %6317 = vmatprep.subr.bf16.mxu0 %v6786_v3 }
0x1a26   :  { %v6681_v12 = vpop.eup %6680 }
0x1a27   :  { %2415 = vrot.lane.b32.xlu1 %v6681_v12, %s6789_s16 }
0x1a29   :  { %v2605_v28 = vpop.permute.xlu0 %2604 }
0x1a2a   :  { %v7637_v63 = vadd.f32 %v2605_v28, %v2597_v45 }
0x1a2c   :  { %6682 = vtanh.f32 %v7637_v63 }
0x1a36   :  { %v6683_v49 = vpop.eup %6682 }
0x1a37   :  { %2610 = vrot.lane.b32.xlu0 %v6683_v49, %s6789_s16 }
0x1a99   :  { %v2416_v7 = vpop.permute.xlu1 %2415 }
0x1a9a   :  { %v2418_v34 = vmul.f32 %v2416_v7, %v2401_v61 }
0x1a9c   :  { %2630 = vrot.lane.b32.xlu0 %v2418_v34, %s6789_s16 }
0x1aa9   :  { %v2611_v35 = vpop.permute.xlu0 %2610 }
0x1aaa   :  { %v7682_v36 = vmul.f32 %v2611_v35, %v2596_v54 }
0x1aac   :  { %2626 = vrot.lane.b32.xlu1 %v7682_v36, %s6790_s17 }
0x1b0e   :  { %v2631_v37 = vpop.permute.xlu0 %2630 }
0x1b1e   :  { %v2627_v39 = vpop.permute.xlu1 %2626 }
0x1b1f   :  { %v2633_v41 = vsel %vm160_vm3, %v2627_v39, %v2631_v37 }
0x1b20   :  { %5629 = vmatmul.mubr.msk.f32.vlgmr.msra.gmra.mrb[26].mxu1 %vm77_vm1, %v2633_v41  ;;  %v4606_v41 = vld [vmem:[%s8157_s2 + $0x1] sm:$0x1] }
0x1b21   :  { %6322 = vmatpush3.bf16.msra.mxu1 %v7457_v56  ;;  %5674 = vmatprep.mubr.msk.f32.mxu1 %vm6788_vm0, %v7310_v14  ;;  %vm2841_vm4 = vcmp.ne.s32.totalorder %v4606_v41, 0 }
0x1b22   :  { %6323 = vmatprep.subr.bf16.mxu1 %v6786_v3 }
0x1b25   :  { %6325 = vmatpush3.bf16.msra.mxu1 %v7469_v55 }
0x1b26   :  { %6326 = vmatprep.subr.bf16.mxu1 %v6786_v3 }
0x1b29   :  { %6328 = vmatpush3.bf16.msra.mxu1 %v7481_v57 }
0x1b2a   :  { %6329 = vmatprep.subr.bf16.mxu1 %v6786_v3 }
0x1b2d   :  { %6331 = vmatpush3.bf16.msra.mxu1 %v7491_v13 }
0x1b2e   :  { %6332 = vmatprep.subr.bf16.mxu1 %v6786_v3 }
0x1b31   :  { %6334 = vmatpush3.bf16.msra.mxu1 %v7501_v8 }
0x1b32   :  { %6335 = vmatprep.subr.bf16.mxu1 %v6786_v3 }
0x1b35   :  { %6337 = vmatpush3.bf16.msra.mxu1 %v7511_v24 }
0x1b36   :  { %6338 = vmatprep.subr.bf16.mxu1 %v6786_v3 }
0x1b39   :  { %6340 = vmatpush3.bf16.msra.mxu1 %v7521_v22 }
0x1b3a   :  { %6341 = vmatprep.subr.bf16.mxu1 %v6786_v3 }
0x1b3d   :  { %6343 = vmatpush3.bf16.msra.mxu1 %v7531_v6 }
0x1b3e   :  { %6368 = vmatprep.subr.bf16.mxu1 %v6786_v3 }
0x1bf3   :  { %v2709_v43 = vpop.f32.mrb[26].mxu1 }
0x1bf4   :  { %v2710_v44 = vadd.f32 %v7709_v42, %v2709_v43  ;;  %v5630_v46 = vpop.f32.mrb[27].mxu1  ;;  %v2846_v43 = vshrl.u32 %v68_v29, 7 }
0x1bf5   :  { %v2844_v46 = vsel %vm2841_vm4, 1, %v6785_v2 }
0x1bf6   :  { %v4603_v38 = vmul.f32 -1.442695, %v2710_v44 }
0x1bf8   :  { %6684 = vpow2.f32 %v4603_v38 }
0x1bf9   :  { %6686 = vtanh.f32 %v2710_v44  ;;  %v7769_v44 = vsub.s32 0, %v2846_v43 }
0x1c02   :  { %v6685_v48 = vpop.eup %6684 }
0x1c03   :  { %v2717_v31 = vadd.f32 1.0, %v6685_v48  ;;  %v6687_v61 = vpop.eup %6686  ;;  %v2848_v48 = vrot.slane %v2844_v46, %v7769_v44 }
0x1c05   :  { %6688 = vrcp.f32 %v2717_v31  ;;  %vm2849_vm5 = vcmp.eq.s32.totalorder %v2848_v48, 1 }
0x1c0f   :  { %v6689_v50 = vpop.eup %6688 }
0x1c10   :  { %v2720_v51 = vsel %vm6985_vm7, %v6687_v61, %v6689_v50 }
0x1c11   :  { %2723 = vrot.lane.b32.xlu1 %v2720_v51, %s6789_s16  ;;  %v2721_v54 = vmul.f32 %v2720_v51, %v7632_v25  ;;  %v66_v25 = vld [vmem:[%s8164_s9 + $0x18] sm:$0xff] }
0x1c12   :  { %v7735_v12 = vpack.c.bf16 %v66_v25, %v65_v17 }
0x1c14   :  { %6319 = vmatpush3.bf16.msra.mxu0 %v7735_v12 }
0x1c15   :  { %6344 = vmatprep.subr.bf16.mxu0 %v6786_v3 }
0x1c83   :  { %v2724_v52 = vpop.permute.xlu1 %2723 }
0x1c84   :  { %v2726_v53 = vmul.f32 %v2724_v52, %v2720_v51 }
0x1c86   :  { %2728 = vrot.lane.b32.xlu0 %v2726_v53, %s6790_s17 }
0x1cf8   :  { %v2729_v62 = vpop.permute.xlu0 %2728 }
0x1cf9   :  { %v7717_v1 = vadd.f32 %v2729_v62, %v2721_v54 }
0x1cfb   :  { %6690 = vtanh.f32 %v7717_v1 }
0x1d05   :  { %v6691_v45 = vpop.eup %6690 }
0x1d06   :  { %2734 = vrot.lane.b32.xlu1 %v6691_v45, %s6789_s16 }
0x1d78   :  { %v2735_v28 = vpop.permute.xlu1 %2734 }
0x1d79   :  { %v7741_v49 = vmul.f32 %v2735_v28, %v2720_v51 }
0x1d7b   :  { %2745 = vrot.lane.b32.xlu0 %v7741_v49, %s6790_s17 }
0x1ded   :  { %v2746_v11 = vpop.permute.xlu0 %2745 }
0x1dee   :  { %5640 = vmatmul.mubr.msk.f32.vlgmr.msra.gmra.mrb[26].mxu0 %vm160_vm3, %v2746_v11 }
0x1def   :  { %6346 = vmatpush3.bf16.msra.mxu0 %v7574_v4  ;;  %5693 = vmatprep.mubr.msk.f32.mxu0 %vm6788_vm0, %v7310_v14 }
0x1df0   :  { %6347 = vmatprep.subr.bf16.mxu0 %v6786_v3 }
0x1df3   :  { %6349 = vmatpush3.bf16.msra.mxu0 %v7585_v20 }
0x1df4   :  { %6350 = vmatprep.subr.bf16.mxu0 %v6786_v3 }
0x1df7   :  { %6352 = vmatpush3.bf16.msra.mxu0 %v7597_v26 }
0x1df8   :  { %6353 = vmatprep.subr.bf16.mxu0 %v6786_v3 }
0x1dfb   :  { %6355 = vmatpush3.bf16.msra.mxu0 %v7607_v32 }
0x1dfc   :  { %6356 = vmatprep.subr.bf16.mxu0 %v6786_v3 }
0x1ec1   :  { %v2815_v21 = vpop.f32.mrb[26].mxu0 }
0x1ec2   :  { %v2816_v18 = vadd.f32 %v7759_v9, %v2815_v21  ;;  %v5641_v16 = vpop.f32.mrb[27].mxu0 }
0x1ec4   :  { %2820 = vst [vmem:[#allocation2 + $0x8] sm:$0xff] %v2816_v18  ;;  %2821 = vmax.xlane.f32.xlu1 %v2816_v18 }
0x1f51   :  { %v2822_v59 = vpop.xlane.xlu1 %2821 }
0x1f52   :  { %vm2823_vm15 = vcmp.eq.f32.partialorder %v2816_v18, %v2822_v59 }
0x1f53   :  { %v2824_v0 = vsel %vm2823_vm15, %v6951_v30, 128 }
0x1f54   :  { %v2826_v19 = vshra.s32 %v2824_v0, 16  ;;  %v2825_v34 = vand.u32 65535, %v2824_v0 }
0x1f56   :  { %v2828_v7 = vcvt.s32.f32 %v2826_v19  ;;  %v2827_v37 = vcvt.s32.f32 %v2825_v34 }
0x1f58   :  { %2829 = vmin.xlane.f32.xlu0 %v2828_v7 }
0x1fe5   :  { %v2830_v35 = vpop.xlane.xlu0 %2829 }
0x1fe6   :  { %vm2831_vm2 = vcmp.eq.f32.partialorder %v2828_v7, %v2830_v35  ;;  %v2836_v38 = vcvt.f32.s32 %v2830_v35 }
0x1fe7   :  { %v2832_v39 = vsel %vm2831_vm2, %v2827_v37, inf }
0x1fe8   :  { %2833 = vmin.xlane.f32.xlu0 %v2832_v39  ;;  %v2837_v61 = vshll.u32 %v2836_v38, 16 }
0x1ffe   :  { %2936 = vrot.lane.b32.xlu0 %v7682_v36, %s6789_s16  ;;  %v4607_v36 = vld [vmem:[%s8156_s1 + $0x8] sm:$0xff] }
0x2075   :  { %v2834_v31 = vpop.xlane.xlu0 %2833 }
0x2076   :  { %v2835_v50 = vcvt.f32.s32 %v2834_v31 }
0x2078   :  { %v2838_v51 = vadd.s32 %v2837_v61, %v2835_v50 }
0x2079   :  { %v2937_v53 = vpop.permute.xlu0 %2936 }
0x207a   :  { %v2850_v52 = vsel %vm2849_vm5, %v4607_v36, %v2838_v51 }
0x207b   :  { %2852 = vperm.xlu1 %6547, %v2850_v52  }
0x20fa   :  { %v2853_v29 = vpop.permute.xlu1 %2852 }
0x20fb   :  { %vm2854_vm6 = vcmp.eq.s32.totalorder %v6951_v30, %v2853_v29 }
0x20fc   :  { %5675 = vmatmul.mubr.msk.f32.vlgmr.msra.gmra.mrb[28].mxu1 %vm2854_vm6, %v6791_v27 }
0x20fd   :  { %6370 = vmatpush3.bf16.msra.mxu1 %v7729_v60  ;;  %5723 = vmatprep.mubr.msk.f32.mxu1 %vm6788_vm0, %v7310_v14 }
0x20fe   :  { %6371 = vmatprep.subr.bf16.mxu1 %v6786_v3 }
0x2101   :  { %6373 = vmatpush3.bf16.msra.mxu1 %v7735_v12 }
0x2102   :  { %6398 = vmatprep.subr.bf16.mxu1 %v6786_v3 }
0x21cf   :  { %v2923_v54 = vpop.f32.mrb[28].mxu1 }
0x21d0   :  { %v2939_v62 = vsel %vm160_vm3, %v2923_v54, %v2937_v53  ;;  %v5676_v5 = vpop.f32.mrb[29].mxu1 }
0x21d1   :  { %5694 = vmatmul.mubr.msk.f32.vlgmr.msra.gmra.mrb[28].mxu0 %vm77_vm1, %v2939_v62 }
0x21d2   :  { %6358 = vmatpush3.bf16.msra.mxu0 %v7650_v15  ;;  %5712 = vmatprep.mubr.msk.f32.mxu0 %vm6788_vm0, %v7787_v58 }
0x21d3   :  { %6359 = vmatprep.subr.bf16.mxu0 %v6786_v3 }
0x21d6   :  { %6361 = vmatpush3.bf16.msra.mxu0 %v7656_v10 }
0x21d7   :  { %6362 = vmatprep.subr.bf16.mxu0 %v6786_v3 }
0x21da   :  { %6364 = vmatpush3.bf16.msra.mxu0 %v7666_v23 }
0x21db   :  { %6365 = vmatprep.subr.bf16.mxu0 %v6786_v3 }
0x21de   :  { %6367 = vmatpush3.bf16.msra.mxu0 %v7676_v33 }
0x21df   :  { %6374 = vmatprep.subr.bf16.mxu0 %v6786_v3 }
0x22a4   :  { %v3015_v14 = vpop.f32.mrb[28].mxu0 }
0x22a5   :  { %v3016_v17 = vadd.f32 %v7620_v40, %v3015_v14  ;;  %v5695_v25 = vpop.f32.mrb[29].mxu0 }
0x22a7   :  { %v4612_v45 = vmul.f32 -1.442695, %v3016_v17 }
0x22a9   :  { %6692 = vpow2.f32 %v4612_v45 }
0x22aa   :  { %6694 = vtanh.f32 %v3016_v17 }
0x22b3   :  { %v6693_v28 = vpop.eup %6692 }
0x22b4   :  { %v3023_v11 = vadd.f32 1.0, %v6693_v28  ;;  %v6695_v21 = vpop.eup %6694 }
0x22b6   :  { %6696 = vrcp.f32 %v3023_v11 }
0x22c0   :  { %v6697_v18 = vpop.eup %6696 }
0x22c1   :  { %v3026_v16 = vsel %vm6985_vm7, %v6695_v21, %v6697_v18 }
0x22c2   :  { %3029 = vrot.lane.b32.xlu1 %v3026_v16, %s6789_s16  ;;  %v3027_v19 = vmul.f32 %v3026_v16, %v7637_v63 }
0x2334   :  { %v3030_v59 = vpop.permute.xlu1 %3029 }
0x2335   :  { %v3032_v0 = vmul.f32 %v3030_v59, %v3026_v16 }
0x2337   :  { %3034 = vrot.lane.b32.xlu1 %v3032_v0, %s6790_s17 }
0x23a9   :  { %v3035_v7 = vpop.permute.xlu1 %3034 }
0x23aa   :  { %v7804_v34 = vadd.f32 %v3035_v7, %v3027_v19 }
0x23ac   :  { %6698 = vtanh.f32 %v7804_v34 }
0x23b6   :  { %v6699_v35 = vpop.eup %6698 }
0x23b7   :  { %3040 = vrot.lane.b32.xlu0 %v6699_v35, %s6789_s16  ;;  %v4626_v35 = vld [vmem:[%s8157_s2 + $0x2] sm:$0x1] }
0x23b8   :  { %vm3262_vm10 = vcmp.ne.s32.totalorder %v4626_v35, 0 }
0x23bb   :  { %3057 = vrot.lane.b32.xlu0 %v7741_v49, %s6789_s16 }
0x2429   :  { %v3041_v37 = vpop.permute.xlu0 %3040 }
0x242a   :  { %v7810_v39 = vmul.f32 %v3041_v37, %v3026_v16  ;;  %v3265_v37 = vsel %vm3262_vm10, 1, %v6785_v2 }
0x242c   :  { %3054 = vrot.lane.b32.xlu1 %v7810_v39, %s6790_s17 }
0x242d   :  { %v3058_v41 = vpop.permute.xlu0 %3057 }
0x249e   :  { %v3055_v43 = vpop.permute.xlu1 %3054 }
0x249f   :  { %v3060_v63 = vsel %vm160_vm3, %v3055_v43, %v3058_v41  ;;  %v3269_v43 = vrot.slane %v3265_v37, %v7769_v44 }
0x24a0   :  { %5713 = vmatmul.mubr.msk.f32.vlgmr.msra.gmra.mrb[30].mxu0 %vm77_vm1, %v3060_v63 }
0x24a1   :  { %6376 = vmatpush3.bf16.msra.mxu0 %v7457_v56  ;;  %5758 = vmatprep.mubr.msk.f32.mxu0 %vm6788_vm0, %v7787_v58  ;;  %vm3270_vm11 = vcmp.eq.s32.totalorder %v3269_v43, 1 }
0x24a2   :  { %6377 = vmatprep.subr.bf16.mxu0 %v6786_v3 }
0x24a5   :  { %6379 = vmatpush3.bf16.msra.mxu0 %v7469_v55 }
0x24a6   :  { %6380 = vmatprep.subr.bf16.mxu0 %v6786_v3 }
0x24a9   :  { %6382 = vmatpush3.bf16.msra.mxu0 %v7481_v57 }
0x24aa   :  { %6383 = vmatprep.subr.bf16.mxu0 %v6786_v3 }
0x24ad   :  { %6385 = vmatpush3.bf16.msra.mxu0 %v7491_v13 }
0x24ae   :  { %6386 = vmatprep.subr.bf16.mxu0 %v6786_v3 }
0x24b1   :  { %6388 = vmatpush3.bf16.msra.mxu0 %v7501_v8 }
0x24b2   :  { %6389 = vmatprep.subr.bf16.mxu0 %v6786_v3 }
0x24b5   :  { %6391 = vmatpush3.bf16.msra.mxu0 %v7511_v24 }
0x24b6   :  { %6392 = vmatprep.subr.bf16.mxu0 %v6786_v3 }
0x24b9   :  { %6394 = vmatpush3.bf16.msra.mxu0 %v7521_v22 }
0x24ba   :  { %6395 = vmatprep.subr.bf16.mxu0 %v6786_v3 }
0x24bd   :  { %6397 = vmatpush3.bf16.msra.mxu0 %v7531_v6 }
0x24be   :  { %6422 = vmatprep.subr.bf16.mxu0 %v6786_v3 }
0x2573   :  { %v3136_v49 = vpop.f32.mrb[30].mxu0 }
0x2574   :  { %v3137_v46 = vadd.f32 %v7709_v42, %v3136_v49  ;;  %v5714_v38 = vpop.f32.mrb[31].mxu0 }
0x2575   :  { %v4627_v38 = vld [vmem:[%s8156_s1 + $0x10] sm:$0xff] }
0x2576   :  { %v4624_v48 = vmul.f32 -1.442695, %v3137_v46 }
0x2578   :  { %6700 = vpow2.f32 %v4624_v48 }
0x2579   :  { %6702 = vtanh.f32 %v3137_v46 }
0x2582   :  { %v6701_v31 = vpop.eup %6700 }
0x2583   :  { %v3144_v61 = vadd.f32 1.0, %v6701_v31  ;;  %v6703_v50 = vpop.eup %6702 }
0x2585   :  { %6704 = vrcp.f32 %v3144_v61 }
0x258f   :  { %v6705_v36 = vpop.eup %6704 }
0x2590   :  { %v3147_v51 = vsel %vm6985_vm7, %v6703_v50, %v6705_v36 }
0x2591   :  { %3150 = vrot.lane.b32.xlu1 %v3147_v51, %s6789_s16  ;;  %v3148_v53 = vmul.f32 %v3147_v51, %v7717_v1 }
0x2603   :  { %v3151_v52 = vpop.permute.xlu1 %3150 }
0x2604   :  { %v3153_v29 = vmul.f32 %v3151_v52, %v3147_v51 }
0x2606   :  { %3155 = vrot.lane.b32.xlu0 %v3153_v29, %s6790_s17 }
0x2678   :  { %v3156_v54 = vpop.permute.xlu0 %3155 }
0x2679   :  { %v7840_v62 = vadd.f32 %v3156_v54, %v3148_v53 }
0x267b   :  { %6706 = vtanh.f32 %v7840_v62 }
0x2685   :  { %v6707_v5 = vpop.eup %6706 }
0x2686   :  { %3161 = vrot.lane.b32.xlu1 %v6707_v5, %s6789_s16 }
0x26f8   :  { %v3162_v14 = vpop.permute.xlu1 %3161 }
0x26f9   :  { %v7844_v17 = vmul.f32 %v3162_v14, %v3147_v51 }
0x26fb   :  { %3166 = vrot.lane.b32.xlu0 %v7844_v17, %s6790_s17 }
0x276d   :  { %v3167_v25 = vpop.permute.xlu0 %3166 }
0x276e   :  { %5724 = vmatmul.mubr.msk.f32.vlgmr.msra.gmra.mrb[30].mxu1 %vm160_vm3, %v3167_v25 }
0x276f   :  { %6400 = vmatpush3.bf16.msra.mxu1 %v7574_v4  ;;  %5777 = vmatprep.mubr.msk.f32.mxu1 %vm6788_vm0, %v7787_v58 }
0x2770   :  { %6401 = vmatprep.subr.bf16.mxu1 %v6786_v3 }
0x2773   :  { %6403 = vmatpush3.bf16.msra.mxu1 %v7585_v20 }
0x2774   :  { %6404 = vmatprep.subr.bf16.mxu1 %v6786_v3 }
0x2777   :  { %6406 = vmatpush3.bf16.msra.mxu1 %v7597_v26 }
0x2778   :  { %6407 = vmatprep.subr.bf16.mxu1 %v6786_v3 }
0x277b   :  { %6409 = vmatpush3.bf16.msra.mxu1 %v7607_v32 }
0x277c   :  { %6410 = vmatprep.subr.bf16.mxu1 %v6786_v3 }
0x2841   :  { %v3236_v1 = vpop.f32.mrb[30].mxu1 }
0x2842   :  { %v3237_v45 = vadd.f32 %v7759_v9, %v3236_v1  ;;  %v5725_v28 = vpop.f32.mrb[31].mxu1 }
0x2844   :  { %3241 = vst [vmem:[#allocation2 + $0x10] sm:$0xff] %v3237_v45  ;;  %3242 = vmax.xlane.f32.xlu1 %v3237_v45 }
0x28d1   :  { %v3243_v11 = vpop.xlane.xlu1 %3242 }
0x28d2   :  { %vm3244_vm8 = vcmp.eq.f32.partialorder %v3237_v45, %v3243_v11 }
0x28d3   :  { %v3245_v21 = vsel %vm3244_vm8, %v6951_v30, 128 }
0x28d4   :  { %v3247_v18 = vshra.s32 %v3245_v21, 16  ;;  %v3246_v59 = vand.u32 65535, %v3245_v21 }
0x28d6   :  { %v3249_v16 = vcvt.s32.f32 %v3247_v18  ;;  %v3248_v0 = vcvt.s32.f32 %v3246_v59 }
0x28d8   :  { %3250 = vmin.xlane.f32.xlu0 %v3249_v16 }
0x2965   :  { %v3251_v19 = vpop.xlane.xlu0 %3250 }
0x2966   :  { %vm3252_vm9 = vcmp.eq.f32.partialorder %v3249_v16, %v3251_v19  ;;  %v3257_v41 = vcvt.f32.s32 %v3251_v19 }
0x2967   :  { %v3253_v7 = vsel %vm3252_vm9, %v3248_v0, inf }
0x2968   :  { %3254 = vmin.xlane.f32.xlu0 %v3253_v7  ;;  %v3258_v49 = vshll.u32 %v3257_v41, 16 }
0x297e   :  { %3357 = vrot.lane.b32.xlu0 %v7810_v39, %s6789_s16 }
0x29f5   :  { %v3255_v63 = vpop.xlane.xlu0 %3254 }
0x29f6   :  { %v3256_v46 = vcvt.f32.s32 %v3255_v63 }
0x29f8   :  { %v3259_v48 = vadd.s32 %v3258_v49, %v3256_v46 }
0x29f9   :  { %v3358_v61 = vpop.permute.xlu0 %3357 }
0x29fa   :  { %v3271_v39 = vsel %vm3270_vm11, %v4627_v38, %v3259_v48 }
0x29fb   :  { %3273 = vperm.xlu1 %6547, %v3271_v39  }
0x2a7a   :  { %v3274_v31 = vpop.permute.xlu1 %3273 }
0x2a7b   :  { %vm3275_vm12 = vcmp.eq.s32.totalorder %v6951_v30, %v3274_v31 }
0x2a7c   :  { %5759 = vmatmul.mubr.msk.f32.vlgmr.msra.gmra.mrb[32].mxu0 %vm3275_vm12, %v6791_v27 }
0x2a7d   :  { %6424 = vmatpush3.bf16.msra.mxu0 %v7729_v60  ;;  %5807 = vmatprep.mubr.msk.f32.mxu0 %vm6788_vm0, %v7787_v58 }
0x2a7e   :  { %6425 = vmatprep.subr.bf16.mxu0 %v6786_v3 }
0x2a81   :  { %6427 = vmatpush3.bf16.msra.mxu0 %v7735_v12 }
0x2a82   :  { %6452 = vmatprep.subr.bf16.mxu0 %v6786_v3 }
0x2b4f   :  { %v3344_v50 = vpop.f32.mrb[32].mxu0 }
0x2b50   :  { %v3360_v36 = vsel %vm160_vm3, %v3344_v50, %v3358_v61  ;;  %v5760_v51 = vpop.f32.mrb[33].mxu0 }
0x2b51   :  { %5778 = vmatmul.mubr.msk.f32.vlgmr.msra.gmra.mrb[32].mxu1 %vm77_vm1, %v3360_v36 }
0x2b52   :  { %6412 = vmatpush3.bf16.msra.mxu1 %v7650_v15  ;;  %5796 = vmatprep.mubr.msk.f32.mxu1 %vm6788_vm0, %v7787_v58 }
0x2b53   :  { %6413 = vmatprep.subr.bf16.mxu1 %v6786_v3 }
0x2b56   :  { %6415 = vmatpush3.bf16.msra.mxu1 %v7656_v10 }
0x2b57   :  { %6416 = vmatprep.subr.bf16.mxu1 %v6786_v3 }
0x2b5a   :  { %6418 = vmatpush3.bf16.msra.mxu1 %v7666_v23 }
0x2b5b   :  { %6419 = vmatprep.subr.bf16.mxu1 %v6786_v3 }
0x2b5e   :  { %6421 = vmatpush3.bf16.msra.mxu1 %v7676_v33 }
0x2b5f   :  { %6428 = vmatprep.subr.bf16.mxu1 %v6786_v3 }
0x2c24   :  { %v3436_v52 = vpop.f32.mrb[32].mxu1 }
0x2c25   :  { %v3437_v29 = vadd.f32 %v7620_v40, %v3436_v52  ;;  %v5779_v53 = vpop.f32.mrb[33].mxu1 }
0x2c27   :  { %v4632_v54 = vmul.f32 -1.442695, %v3437_v29 }
0x2c29   :  { %6708 = vpow2.f32 %v4632_v54 }
0x2c2a   :  { %6710 = vtanh.f32 %v3437_v29 }
0x2c33   :  { %v6709_v5 = vpop.eup %6708 }
0x2c34   :  { %v3444_v14 = vadd.f32 1.0, %v6709_v5  ;;  %v6711_v25 = vpop.eup %6710 }
0x2c36   :  { %6712 = vrcp.f32 %v3444_v14 }
0x2c40   :  { %v6713_v1 = vpop.eup %6712 }
0x2c41   :  { %v3447_v45 = vsel %vm6985_vm7, %v6711_v25, %v6713_v1 }
0x2c42   :  { %3450 = vrot.lane.b32.xlu1 %v3447_v45, %s6789_s16  ;;  %v3448_v21 = vmul.f32 %v3447_v45, %v7804_v34 }
0x2cb4   :  { %v3451_v28 = vpop.permute.xlu1 %3450 }
0x2cb5   :  { %v3453_v11 = vmul.f32 %v3451_v28, %v3447_v45  ;;  %v4646_v28 = vld [vmem:[%s8157_s2 + $0x3] sm:$0x1] }
0x2cb6   :  { %vm3683_vm15 = vcmp.ne.s32.totalorder %v4646_v28, 0 }
0x2cb7   :  { %3455 = vrot.lane.b32.xlu1 %v3453_v11, %s6790_s17  ;;  %v3686_v11 = vsel %vm3683_vm15, 1, %v6785_v2 }
0x2d29   :  { %v3456_v18 = vpop.permute.xlu1 %3455 }
0x2d2a   :  { %v7897_v16 = vadd.f32 %v3456_v18, %v3448_v21  ;;  %v3690_v18 = vrot.slane %v3686_v11, %v7769_v44 }
0x2d2c   :  { %6714 = vtanh.f32 %v7897_v16  ;;  %vm3691_vm2 = vcmp.eq.s32.totalorder %v3690_v18, 1 }
0x2d36   :  { %v6715_v59 = vpop.eup %6714 }
0x2d37   :  { %3461 = vrot.lane.b32.xlu0 %v6715_v59, %s6789_s16 }
0x2d3b   :  { %3478 = vrot.lane.b32.xlu0 %v7844_v17, %s6789_s16 }
0x2da9   :  { %v3462_v0 = vpop.permute.xlu0 %3461 }
0x2daa   :  { %v7903_v19 = vmul.f32 %v3462_v0, %v3447_v45 }
0x2dac   :  { %3475 = vrot.lane.b32.xlu1 %v7903_v19, %s6790_s17 }
0x2dad   :  { %v3479_v7 = vpop.permute.xlu0 %3478 }
0x2e1e   :  { %v3476_v35 = vpop.permute.xlu1 %3475 }
0x2e1f   :  { %v3481_v34 = vsel %vm160_vm3, %v3476_v35, %v3479_v7  ;;  %v4647_v35 = vld [vmem:[%s8156_s1 + $0x18] sm:$0xff] }
0x2e20   :  { %5797 = vmatmul.mubr.msk.f32.vlgmr.msra.gmra.mrb[34].mxu1 %vm77_vm1, %v3481_v34 }
0x2e21   :  { %6430 = vmatpush3.bf16.msra.mxu1 %v7457_v56  ;;  %5842 = vmatprep.mubr.msk.f32.mxu1 %vm6788_vm0, %v7787_v58 }
0x2e22   :  { %6431 = vmatprep.subr.bf16.mxu1 %v6786_v3 }
0x2e25   :  { %6433 = vmatpush3.bf16.msra.mxu1 %v7469_v55 }
0x2e26   :  { %6434 = vmatprep.subr.bf16.mxu1 %v6786_v3 }
0x2e29   :  { %6436 = vmatpush3.bf16.msra.mxu1 %v7481_v57 }
0x2e2a   :  { %6437 = vmatprep.subr.bf16.mxu1 %v6786_v3 }
0x2e2d   :  { %6439 = vmatpush3.bf16.msra.mxu1 %v7491_v13 }
0x2e2e   :  { %6440 = vmatprep.subr.bf16.mxu1 %v6786_v3 }
0x2e31   :  { %6442 = vmatpush3.bf16.msra.mxu1 %v7501_v8 }
0x2e32   :  { %6443 = vmatprep.subr.bf16.mxu1 %v6786_v3 }
0x2e35   :  { %6445 = vmatpush3.bf16.msra.mxu1 %v7511_v24 }
0x2e36   :  { %6446 = vmatprep.subr.bf16.mxu1 %v6786_v3 }
0x2e39   :  { %6448 = vmatpush3.bf16.msra.mxu1 %v7521_v22 }
0x2e3a   :  { %6449 = vmatprep.subr.bf16.mxu1 %v6786_v3 }
0x2e3d   :  { %6451 = vmatpush3.bf16.msra.mxu1 %v7531_v6 }
0x2e3e   :  { %6476 = vmatprep.subr.bf16.mxu1 %v6786_v3 }
0x2ef3   :  { %v3557_v17 = vpop.f32.mrb[34].mxu1 }
0x2ef4   :  { %v3558_v37 = vadd.f32 %v7709_v42, %v3557_v17  ;;  %v5798_v41 = vpop.f32.mrb[35].mxu1 }
0x2ef6   :  { %v4644_v43 = vmul.f32 -1.442695, %v3558_v37 }
0x2ef8   :  { %6716 = vpow2.f32 %v4644_v43 }
0x2ef9   :  { %6718 = vtanh.f32 %v3558_v37 }
0x2f02   :  { %v6717_v63 = vpop.eup %6716 }
0x2f03   :  { %v3565_v49 = vadd.f32 1.0, %v6717_v63  ;;  %v6719_v46 = vpop.eup %6718 }
0x2f05   :  { %6720 = vrcp.f32 %v3565_v49 }
0x2f0f   :  { %v6721_v38 = vpop.eup %6720 }
0x2f10   :  { %v3568_v48 = vsel %vm6985_vm7, %v6719_v46, %v6721_v38 }
0x2f11   :  { %3571 = vrot.lane.b32.xlu1 %v3568_v48, %s6789_s16  ;;  %v3569_v61 = vmul.f32 %v3568_v48, %v7840_v62 }
0x2f83   :  { %v3572_v39 = vpop.permute.xlu1 %3571 }
0x2f84   :  { %v3574_v31 = vmul.f32 %v3572_v39, %v3568_v48 }
0x2f86   :  { %3576 = vrot.lane.b32.xlu0 %v3574_v31, %s6790_s17 }
0x2ff8   :  { %v3577_v50 = vpop.permute.xlu0 %3576 }
0x2ff9   :  { %v7933_v36 = vadd.f32 %v3577_v50, %v3569_v61 }
0x2ffb   :  { %6722 = vtanh.f32 %v7933_v36 }
0x3005   :  { %v6723_v51 = vpop.eup %6722 }
0x3006   :  { %3582 = vrot.lane.b32.xlu1 %v6723_v51, %s6789_s16 }
0x3078   :  { %v3583_v52 = vpop.permute.xlu1 %3582 }
0x3079   :  { %v7937_v29 = vmul.f32 %v3583_v52, %v3568_v48 }
0x307b   :  { %3587 = vrot.lane.b32.xlu0 %v7937_v29, %s6790_s17 }
0x30ed   :  { %v3588_v53 = vpop.permute.xlu0 %3587 }
0x30ee   :  { %5808 = vmatmul.mubr.msk.f32.vlgmr.msra.gmra.mrb[34].mxu0 %vm160_vm3, %v3588_v53 }
0x30ef   :  { %6454 = vmatpush3.bf16.msra.mxu0 %v7574_v4  ;;  %5861 = vmatprep.mubr.msk.f32.mxu0 %vm6788_vm0, %v7787_v58 }
0x30f0   :  { %6455 = vmatprep.subr.bf16.mxu0 %v6786_v3 }
0x30f3   :  { %6457 = vmatpush3.bf16.msra.mxu0 %v7585_v20 }
0x30f4   :  { %6458 = vmatprep.subr.bf16.mxu0 %v6786_v3 }
0x30f7   :  { %6460 = vmatpush3.bf16.msra.mxu0 %v7597_v26 }
0x30f8   :  { %6461 = vmatprep.subr.bf16.mxu0 %v6786_v3 }
0x30fb   :  { %6463 = vmatpush3.bf16.msra.mxu0 %v7607_v32 }
0x30fc   :  { %6464 = vmatprep.subr.bf16.mxu0 %v6786_v3 }
0x31c1   :  { %v3657_v62 = vpop.f32.mrb[34].mxu0 }
0x31c2   :  { %v3658_v4 = vadd.f32 %v7759_v9, %v3657_v62  ;;  %v5809_v54 = vpop.f32.mrb[35].mxu0 }
0x31c4   :  { %3662 = vst [vmem:[#allocation2 + $0x18] sm:$0xff] %v3658_v4  ;;  %3663 = vmax.xlane.f32.xlu1 %v3658_v4 }
0x3251   :  { %v3664_v5 = vpop.xlane.xlu1 %3663 }
0x3252   :  { %vm3665_vm13 = vcmp.eq.f32.partialorder %v3658_v4, %v3664_v5 }
0x3253   :  { %v3666_v20 = vsel %vm3665_vm13, %v6951_v30, 128 }
0x3254   :  { %v3668_v14 = vshra.s32 %v3666_v20, 16  ;;  %v3667_v26 = vand.u32 65535, %v3666_v20 }
0x3256   :  { %v3670_v25 = vcvt.s32.f32 %v3668_v14  ;;  %v3669_v1 = vcvt.s32.f32 %v3667_v26 }
0x3258   :  { %3671 = vmin.xlane.f32.xlu0 %v3670_v25 }
0x32e5   :  { %v3672_v45 = vpop.xlane.xlu0 %3671 }
0x32e6   :  { %vm3673_vm14 = vcmp.eq.f32.partialorder %v3670_v25, %v3672_v45  ;;  %v3678_v21 = vcvt.f32.s32 %v3672_v45 }
0x32e7   :  { %v3674_v32 = vsel %vm3673_vm14, %v3669_v1, inf }
0x32e8   :  { %3675 = vmin.xlane.f32.xlu0 %v3674_v32  ;;  %v3679_v0 = vshll.u32 %v3678_v21, 16 }
0x32fe   :  { %3778 = vrot.lane.b32.xlu0 %v7903_v19, %s6789_s16 }
0x3375   :  { %v3676_v59 = vpop.xlane.xlu0 %3675 }
0x3376   :  { %v3677_v7 = vcvt.f32.s32 %v3676_v59 }
0x3378   :  { %v3680_v34 = vadd.s32 %v3679_v0, %v3677_v7 }
0x3379   :  { %v3779_v37 = vpop.permute.xlu0 %3778 }
0x337a   :  { %v3692_v19 = vsel %vm3691_vm2, %v4647_v35, %v3680_v34 }
0x337b   :  { %3694 = vperm.xlu1 %6547, %v3692_v19  }
0x33fa   :  { %v3695_v17 = vpop.permute.xlu1 %3694 }
0x33fb   :  { %vm3696_vm4 = vcmp.eq.s32.totalorder %v6951_v30, %v3695_v17 }
0x33fc   :  { %5843 = vmatmul.mubr.msk.f32.vlgmr.msra.gmra.mrb[36].mxu1 %vm3696_vm4, %v6791_v27 }
0x33fd   :  { %6478 = vmatpush3.bf16.msra.mxu1 %v7729_v60  ;;  %5891 = vmatprep.mubr.msk.f32.mxu1 %vm6788_vm0, %v7787_v58 }
0x33fe   :  { %6479 = vmatprep.subr.bf16.mxu1 %v6786_v3 }
0x3401   :  { %6481 = vmatpush3.bf16.msra.mxu1 %v7735_v12 }
0x3402   :  { %6506 = vmatprep.subr.bf16.mxu1 %v6786_v3 }
0x34cf   :  { %v3765_v41 = vpop.f32.mrb[36].mxu1 }
0x34d0   :  { %v3781_v43 = vsel %vm160_vm3, %v3765_v41, %v3779_v37  ;;  %v5844_v63 = vpop.f32.mrb[37].mxu1 }
0x34d1   :  { %5862 = vmatmul.mubr.msk.f32.vlgmr.msra.gmra.mrb[36].mxu0 %vm77_vm1, %v3781_v43 }
0x34d2   :  { %6466 = vmatpush3.bf16.msra.mxu0 %v7650_v15  ;;  %5880 = vmatprep.mubr.msk.f32.mxu0 %vm6788_vm0, %v7787_v58 }
0x34d3   :  { %6467 = vmatprep.subr.bf16.mxu0 %v6786_v3 }
0x34d6   :  { %6469 = vmatpush3.bf16.msra.mxu0 %v7656_v10 }
0x34d7   :  { %6470 = vmatprep.subr.bf16.mxu0 %v6786_v3 }
0x34da   :  { %6472 = vmatpush3.bf16.msra.mxu0 %v7666_v23 }
0x34db   :  { %6473 = vmatprep.subr.bf16.mxu0 %v6786_v3 }
0x34de   :  { %6475 = vmatpush3.bf16.msra.mxu0 %v7676_v33 }
0x34df   :  { %6482 = vmatprep.subr.bf16.mxu0 %v6786_v3 }
0x35a4   :  { %v3857_v49 = vpop.f32.mrb[36].mxu0 }
0x35a5   :  { %v3858_v15 = vadd.f32 %v7620_v40, %v3857_v49  ;;  %v5863_v46 = vpop.f32.mrb[37].mxu0 }
0x35a7   :  { %v4652_v38 = vmul.f32 -1.442695, %v3858_v15 }
0x35a9   :  { %6724 = vpow2.f32 %v4652_v38 }
0x35aa   :  { %6726 = vtanh.f32 %v3858_v15  ;;  %v4667_v15 = vld [vmem:[%s8156_s1 + $0x20] sm:$0xff] }
0x35b3   :  { %v6725_v48 = vpop.eup %6724 }
0x35b4   :  { %v3865_v39 = vadd.f32 1.0, %v6725_v48  ;;  %v6727_v10 = vpop.eup %6726  ;;  %v4190_v48 = vld [vmem:[%s8162_s7] sm:$0xff] }
0x35b6   :  { %6728 = vrcp.f32 %v3865_v39 }
0x35c0   :  { %v6729_v31 = vpop.eup %6728 }
0x35c1   :  { %v3868_v23 = vsel %vm6985_vm7, %v6727_v10, %v6729_v31  ;;  %v4193_v10 = vld [vmem:[%s8162_s7 + $0x18] sm:$0xff] }
0x35c2   :  { %3871 = vrot.lane.b32.xlu1 %v3868_v23, %s6789_s16  ;;  %v3869_v40 = vmul.f32 %v3868_v23, %v7897_v16 }
0x3634   :  { %v3872_v33 = vpop.permute.xlu1 %3871 }
0x3635   :  { %v3874_v61 = vmul.f32 %v3872_v33, %v3868_v23  ;;  %v4195_v33 = vld [vmem:[%s8162_s7 + $0x28] sm:$0xff] }
0x3637   :  { %3876 = vrot.lane.b32.xlu1 %v3874_v61, %s6790_s17 }
0x36a9   :  { %v3877_v50 = vpop.permute.xlu1 %3876 }
0x36aa   :  { %v7990_v51 = vadd.f32 %v3877_v50, %v3869_v40  ;;  %v4196_v40 = vld [vmem:[%s8162_s7 + $0x30] sm:$0xff]  ;;  %v4197_v50 = vld [vmem:[%s8162_s7 + $0x38] sm:$0xff] }
0x36ac   :  { %6730 = vtanh.f32 %v7990_v51 }
0x36b6   :  { %v6731_v52 = vpop.eup %6730 }
0x36b7   :  { %3882 = vrot.lane.b32.xlu0 %v6731_v52, %s6789_s16  ;;  %v6516_v52 = vpack.c.bf16 %v4197_v50, %v4196_v40 }
0x36bb   :  { %3899 = vrot.lane.b32.xlu0 %v7937_v29, %s6789_s16 }
0x3729   :  { %v3883_v53 = vpop.permute.xlu0 %3882 }
0x372a   :  { %v7996_v62 = vmul.f32 %v3883_v53, %v3868_v23  ;;  %v4194_v23 = vld [vmem:[%s8162_s7 + $0x20] sm:$0xff] }
0x372b   :  { %v6513_v61 = vpack.c.bf16 %v4195_v33, %v4194_v23 }
0x372c   :  { %3896 = vrot.lane.b32.xlu1 %v7996_v62, %s6790_s17 }
0x372d   :  { %v3900_v4 = vpop.permute.xlu0 %3899 }
0x379e   :  { %v3897_v54 = vpop.permute.xlu1 %3896 }
0x379f   :  { %v3902_v16 = vsel %vm160_vm3, %v3897_v54, %v3900_v4 }
0x37a0   :  { %5881 = vmatmul.mubr.msk.f32.vlgmr.msra.gmra.mrb[38].mxu0 %vm77_vm1, %v3902_v16 }
0x37a1   :  { %6484 = vmatpush3.bf16.msra.mxu0 %v7457_v56  ;;  %5926 = vmatprep.mubr.msk.f32.mxu0 %vm6788_vm0, %v7787_v58 }
0x37a2   :  { %6485 = vmatprep.subr.bf16.mxu0 %v6786_v3 }
0x37a5   :  { %6487 = vmatpush3.bf16.msra.mxu0 %v7469_v55 }
0x37a6   :  { %6488 = vmatprep.subr.bf16.mxu0 %v6786_v3 }
0x37a9   :  { %6490 = vmatpush3.bf16.msra.mxu0 %v7481_v57 }
0x37aa   :  { %6491 = vmatprep.subr.bf16.mxu0 %v6786_v3 }
0x37ad   :  { %6493 = vmatpush3.bf16.msra.mxu0 %v7491_v13 }
0x37ae   :  { %6494 = vmatprep.subr.bf16.mxu0 %v6786_v3 }
0x37b1   :  { %6496 = vmatpush3.bf16.msra.mxu0 %v7501_v8 }
0x37b2   :  { %6497 = vmatprep.subr.bf16.mxu0 %v6786_v3 }
0x37b5   :  { %6499 = vmatpush3.bf16.msra.mxu0 %v7511_v24 }
0x37b6   :  { %6500 = vmatprep.subr.bf16.mxu0 %v6786_v3 }
0x37b9   :  { %6502 = vmatpush3.bf16.msra.mxu0 %v7521_v22 }
0x37ba   :  { %6503 = vmatprep.subr.bf16.mxu0 %v6786_v3 }
0x37bd   :  { %6505 = vmatpush3.bf16.msra.mxu0 %v7531_v6 }
0x37be   :  { %6530 = vmatprep.subr.bf16.mxu0 %v6786_v3 }
0x3873   :  { %v3978_v56 = vpop.f32.mrb[38].mxu0 }
0x3874   :  { %v3979_v55 = vadd.f32 %v7709_v42, %v3978_v56  ;;  %v5882_v57 = vpop.f32.mrb[39].mxu0 }
0x3876   :  { %v4664_v13 = vmul.f32 -1.442695, %v3979_v55 }
0x3878   :  { %6732 = vpow2.f32 %v4664_v13 }
0x3879   :  { %6734 = vtanh.f32 %v3979_v55 }
0x3882   :  { %v6733_v8 = vpop.eup %6732 }
0x3883   :  { %v3986_v29 = vadd.f32 1.0, %v6733_v8  ;;  %v6735_v24 = vpop.eup %6734 }
0x3885   :  { %6736 = vrcp.f32 %v3986_v29 }
0x388f   :  { %v6737_v5 = vpop.eup %6736 }
0x3890   :  { %v3989_v22 = vsel %vm6985_vm7, %v6735_v24, %v6737_v5 }
0x3891   :  { %3992 = vrot.lane.b32.xlu1 %v3989_v22, %s6789_s16  ;;  %v3990_v42 = vmul.f32 %v3989_v22, %v7933_v36 }
0x3903   :  { %v3993_v6 = vpop.permute.xlu1 %3992 }
0x3904   :  { %v3995_v20 = vmul.f32 %v3993_v6, %v3989_v22 }
0x3906   :  { %3997 = vrot.lane.b32.xlu0 %v3995_v20, %s6790_s17  ;;  %v4673_v20 = vld [vmem:[%s8162_s7 + $0x40] sm:$0xff] }
0x3978   :  { %v3998_v14 = vpop.permute.xlu0 %3997 }
0x3979   :  { %v8026_v25 = vadd.f32 %v3998_v14, %v3990_v42  ;;  %v4674_v42 = vld [vmem:[%s8162_s7 + $0x48] sm:$0xff]  ;;  %v4675_v14 = vld [vmem:[%s8162_s7 + $0x50] sm:$0xff] }
0x397b   :  { %6738 = vtanh.f32 %v8026_v25 }
0x3985   :  { %v6739_v26 = vpop.eup %6738 }
0x3986   :  { %4003 = vrot.lane.b32.xlu1 %v6739_v26, %s6789_s16  ;;  %v6519_v26 = vpack.c.bf16 %v4674_v42, %v4673_v20 }
0x39f8   :  { %v4004_v1 = vpop.permute.xlu1 %4003 }
0x39f9   :  { %v8030_v45 = vmul.f32 %v4004_v1, %v3989_v22 }
0x39fb   :  { %4008 = vrot.lane.b32.xlu0 %v8030_v45, %s6790_s17 }
0x3a6d   :  { %v4009_v32 = vpop.permute.xlu0 %4008 }
0x3a6e   :  { %5892 = vmatmul.mubr.msk.f32.vlgmr.msra.gmra.mrb[38].mxu1 %vm160_vm3, %v4009_v32  ;;  %v4677_v32 = vld [vmem:[%s8162_s7 + $0x60] sm:$0xff] }
0x3a6f   :  { %5945 = vmatprep.mubr.msk.f32.mxu1 %vm6788_vm0, %v7787_v58 }
0x3b41   :  { %v4078_v36 = vpop.f32.mrb[38].mxu1 }
0x3b42   :  { %v4079_v28 = vadd.f32 %v7759_v9, %v4078_v36  ;;  %v5893_v11 = vpop.f32.mrb[39].mxu1  ;;  %v4666_v9 = vld [vmem:[%s8157_s2 + $0x4] sm:$0x1]  ;;  %v4678_v36 = vld [vmem:[%s8162_s7 + $0x68] sm:$0xff] }
0x3b43   :  { %vm4104_vm8 = vcmp.ne.s32.totalorder %v4666_v9, 0  ;;  %v4679_v11 = vld [vmem:[%s8162_s7 + $0x70] sm:$0xff]  ;;  %v4682_v9 = vld [vmem:[%s8163_s8 + $0x1] ss:$0 sm:$0xff] }
0x3b44   :  { %4083 = vst [vmem:[#allocation2 + $0x20] sm:$0xff] %v4079_v28  ;;  %4084 = vmax.xlane.f32.xlu1 %v4079_v28  ;;  %v4107_v17 = vsel %vm4104_vm8, 1, %v6785_v2  ;;  %v4191_v2 = vld [vmem:[%s8162_s7 + $0x8] sm:$0xff] }
0x3b45   :  { %v4111_v41 = vrot.slane %v4107_v17, %v7769_v44  ;;  %v4192_v44 = vld [vmem:[%s8162_s7 + $0x10] sm:$0xff]  ;;  %v6507_v39 = vpack.c.bf16 %v4191_v2, %v4190_v48 }
0x3b46   :  { %v6510_v31 = vpack.c.bf16 %v4193_v10, %v4192_v44 }
0x3b47   :  { %vm4112_vm9 = vcmp.eq.s32.totalorder %v4111_v41, 1  ;;  %6508 = vmatpush3.bf16.msra.mxu1 %v6507_v39 }
0x3b48   :  { %6509 = vmatprep.subr.bf16.mxu1 %v6786_v3 }
0x3b4b   :  { %6511 = vmatpush3.bf16.msra.mxu1 %v6510_v31 }
0x3b4c   :  { %6512 = vmatprep.subr.bf16.mxu1 %v6786_v3 }
0x3b4f   :  { %6514 = vmatpush3.bf16.msra.mxu1 %v6513_v61 }
0x3b50   :  { %6515 = vmatprep.subr.bf16.mxu1 %v6786_v3 }
0x3b53   :  { %6517 = vmatpush3.bf16.msra.mxu1 %v6516_v52 }
0x3b54   :  { %6518 = vmatprep.subr.bf16.mxu1 %v6786_v3 }
0x3bd1   :  { %v4085_v21 = vpop.xlane.xlu1 %4084 }
0x3bd2   :  { %vm4086_vm5 = vcmp.eq.f32.partialorder %v4079_v28, %v4085_v21  ;;  %v6525_v28 = vpack.c.bf16 %v4678_v36, %v4677_v32  ;;  %v4680_v21 = vld [vmem:[%s8162_s7 + $0x78] sm:$0xff] }
0x3bd3   :  { %v4087_v18 = vsel %vm4086_vm5, %v6951_v30, 128 }
0x3bd4   :  { %v4089_v59 = vshra.s32 %v4087_v18, 16  ;;  %v4088_v7 = vand.u32 65535, %v4087_v18 }
0x3bd6   :  { %v4091_v0 = vcvt.s32.f32 %v4089_v59  ;;  %v4090_v35 = vcvt.s32.f32 %v4088_v7  ;;  %v6528_v59 = vpack.c.bf16 %v4680_v21, %v4679_v11 }
0x3bd8   :  { %4092 = vmin.xlane.f32.xlu0 %v4091_v0 }
0x3c65   :  { %v4093_v34 = vpop.xlane.xlu0 %4092 }
0x3c66   :  { %vm4094_vm6 = vcmp.eq.f32.partialorder %v4091_v0, %v4093_v34  ;;  %v4099_v37 = vcvt.f32.s32 %v4093_v34 }
0x3c67   :  { %v4095_v19 = vsel %vm4094_vm6, %v4090_v35, inf }
0x3c68   :  { %4096 = vmin.xlane.f32.xlu0 %v4095_v19  ;;  %v4100_v63 = vshll.u32 %v4099_v37, 16 }
0x3c7e   :  { %4199 = vrot.lane.b32.xlu0 %v7996_v62, %s6789_s16 }
0x3cf5   :  { %v4097_v43 = vpop.xlane.xlu0 %4096 }
0x3cf6   :  { %v4098_v49 = vcvt.f32.s32 %v4097_v43 }
0x3cf8   :  { %v4101_v46 = vadd.s32 %v4100_v63, %v4098_v49 }
0x3cf9   :  { %v4200_v62 = vpop.permute.xlu0 %4199 }
0x3cfa   :  { %v4113_v38 = vsel %vm4112_vm9, %v4667_v15, %v4101_v46 }
0x3cfb   :  { %4115 = vperm.xlu1 %6547, %v4113_v38  }
0x3d7a   :  { %v4116_v53 = vpop.permute.xlu1 %4115 }
0x3d7b   :  { %vm4117_vm10 = vcmp.eq.s32.totalorder %v6951_v30, %v4116_v53  ;;  %v4670_v30 = vld [vmem:[%s8163_s8] ss:$0 sm:$0xff]  ;;  %s6792_s8 = smov [#allocation2]  }
0x3d7c   :  { %5927 = vmatmul.mubr.msk.f32.vlgmr.msra.gmra.mrb[40].mxu0 %vm4117_vm10, %v6791_v27  ;;  %s4510_s27 = sshll.u32 %s6792_s8, 4  ;;  %s4511_s27 = int_to_ptr.vmem [resolvable:$true] %s4510_s27 }
0x3d7d   :  { %6532 = vmatpush3.bf16.msra.mxu0 %v7729_v60  ;;  %5975 = vmatprep.mubr.msk.f32.mxu0 %vm6788_vm0, %v7787_v58  ;;  %s6761_s29 = scalar_lea.vmem %s4511_s27, 768  ;;  %p6766_p1 = scmp.lt.s32.totalorder %s4511_s27, %s4511_s27 }
0x3d7e   :  { %6533 = vmatprep.subr.bf16.mxu0 %v6786_v3  ;;  %p6762_p0 = scmp.ne.s32.totalorder %s4511_s27, %s6761_s29  ;;  %p6767_p2 = scmp.lt.s32.totalorder %s6761_s29, %s6761_s29 }
0x3d80   :  { %p6768_p3 = por %p6767_p2, %p6766_p1 }
0x3d81   :  { %6535 = vmatpush3.bf16.msra.mxu0 %v7735_v12 }
0x3d82   :  { %p6769_p4 = pnand %p6768_p3, %p6762_p0 }
0x3e4f   :  { %v4186_v4 = vpop.f32.mrb[40].mxu0 }
0x3e50   :  { %v4202_v54 = vsel %vm160_vm3, %v4186_v4, %v4200_v62  ;;  %v5928_v16 = vpop.f32.mrb[41].mxu0 }
0x3e51   :  { %5946 = vmatmul.mubr.msk.f32.vlgmr.msra.gmra.mrb[40].mxu1 %vm77_vm1, %v4202_v54 }
0x3e52   :  { %5964 = vmatprep.mubr.msk.f32.mxu1 %vm6788_vm0, %v7787_v58  ;;  %6520 = vmatpush3.bf16.msra.mxu1 %v6519_v26 }
0x3e53   :  { %6521 = vmatprep.subr.bf16.mxu1 %v6786_v3 }
0x3f24   :  { %v4278_v27 = vpop.f32.mrb[40].mxu1 }
0x3f25   :  { %v4279_v60 = vadd.f32 %v4670_v30, %v4278_v27  ;;  %v5947_v56 = vpop.f32.mrb[41].mxu1 }
0x3f27   :  { %v4672_v55 = vmul.f32 -1.442695, %v4279_v60 }
0x3f29   :  { %6740 = vpow2.f32 %v4672_v55 }
0x3f2a   :  { %6742 = vtanh.f32 %v4279_v60 }
0x3f33   :  { %v6741_v12 = vpop.eup %6740 }
0x3f34   :  { %v4286_v57 = vadd.f32 1.0, %v6741_v12  ;;  %v6743_v13 = vpop.eup %6742 }
0x3f36   :  { %6744 = vrcp.f32 %v4286_v57 }
0x3f40   :  { %v6745_v8 = vpop.eup %6744 }
0x3f41   :  { %v4289_v29 = vsel %vm6985_vm7, %v6743_v13, %v6745_v8 }
0x3f42   :  { %4292 = vrot.lane.b32.xlu1 %v4289_v29, %s6789_s16  ;;  %v4290_v5 = vmul.f32 %v4289_v29, %v7990_v51  ;;  %v4676_v51 = vld [vmem:[%s8162_s7 + $0x58] sm:$0xff] }
0x3f43   :  { %v6522_v1 = vpack.c.bf16 %v4676_v51, %v4675_v14 }
0x3f45   :  { %6523 = vmatpush3.bf16.msra.mxu1 %v6522_v1 }
0x3f46   :  { %6524 = vmatprep.subr.bf16.mxu1 %v6786_v3 }
0x3f49   :  { %6526 = vmatpush3.bf16.msra.mxu1 %v6525_v28 }
0x3f4a   :  { %6527 = vmatprep.subr.bf16.mxu1 %v6786_v3 }
0x3f4d   :  { %6529 = vmatpush3.bf16.msra.mxu1 %v6528_v59 }
0x3fb4   :  { %v4293_v58 = vpop.permute.xlu1 %4292 }
0x3fb5   :  { %v4295_v24 = vmul.f32 %v4293_v58, %v4289_v29 }
0x3fb7   :  { %4297 = vrot.lane.b32.xlu1 %v4295_v24, %s6790_s17 }
0x4029   :  { %v4298_v22 = vpop.permute.xlu1 %4297 }
0x402a   :  { %v4300_v6 = vadd.f32 %v4298_v22, %v4290_v5 }
0x402c   :  { %6746 = vtanh.f32 %v4300_v6 }
0x4036   :  { %v6747_v18 = vpop.eup %6746 }
0x4037   :  { %4303 = vrot.lane.b32.xlu0 %v6747_v18, %s6789_s16 }
0x403b   :  { %4320 = vrot.lane.b32.xlu0 %v8030_v45, %s6789_s16 }
0x40a9   :  { %v4304_v0 = vpop.permute.xlu0 %4303 }
0x40aa   :  { %v4306_v7 = vmul.f32 %v4304_v0, %v4289_v29 }
0x40ac   :  { %4317 = vrot.lane.b32.xlu1 %v4306_v7, %s6790_s17 }
0x40ad   :  { %v4321_v35 = vpop.permute.xlu0 %4320 }
0x411e   :  { %v4318_v34 = vpop.permute.xlu1 %4317 }
0x411f   :  { %v4323_v19 = vsel %vm160_vm3, %v4318_v34, %v4321_v35 }
0x4120   :  { %5965 = vmatmul.mubr.msk.f32.vlgmr.msra.gmra.mrb[42].mxu1 %vm77_vm1, %v4323_v19 }
0x41f3   :  { %v4399_v17 = vpop.f32.mrb[42].mxu1 }
0x41f4   :  { %v4400_v3 = vadd.f32 %v4682_v9, %v4399_v17  ;;  %v5966_v37 = vpop.f32.mrb[43].mxu1 }
0x41f6   :  { %v4684_v41 = vmul.f32 -1.442695, %v4400_v3 }
0x41f8   :  { %6748 = vpow2.f32 %v4684_v41 }
0x41f9   :  { %6750 = vtanh.f32 %v4400_v3 }
0x4202   :  { %v6749_v45 = vpop.eup %6748 }
0x4203   :  { %v4407_v43 = vadd.f32 1.0, %v6749_v45  ;;  %v6751_v63 = vpop.eup %6750 }
0x4205   :  { %6752 = vrcp.f32 %v4407_v43 }
0x420f   :  { %v6753_v49 = vpop.eup %6752 }
0x4210   :  { %v4410_v15 = vsel %vm6985_vm7, %v6751_v63, %v6753_v49 }
0x4211   :  { %4413 = vrot.lane.b32.xlu1 %v4410_v15, %s6789_s16  ;;  %v4411_v48 = vmul.f32 %v4410_v15, %v8026_v25  ;;  %v6760_v25 = vld [vmem:[%s8165_s10] ss:$0 sm:$0xff] }
0x4283   :  { %v4414_v46 = vpop.permute.xlu1 %4413 }
0x4284   :  { %v4416_v38 = vmul.f32 %v4414_v46, %v4410_v15 }
0x4286   :  { %4418 = vrot.lane.b32.xlu0 %v4416_v38, %s6790_s17 }
0x42f8   :  { %v4419_v2 = vpop.permute.xlu0 %4418 }
0x42f9   :  { %v4421_v44 = vadd.f32 %v4419_v2, %v4411_v48 }
0x42fb   :  { %6754 = vtanh.f32 %v4421_v44 }
0x4305   :  { %v6755_v39 = vpop.eup %6754 }
0x4306   :  { %4424 = vrot.lane.b32.xlu1 %v6755_v39, %s6789_s16 }
0x4378   :  { %v4425_v10 = vpop.permute.xlu1 %4424 }
0x4379   :  { %v4427_v31 = vmul.f32 %v4425_v10, %v4410_v15 }
0x437b   :  { %4429 = vrot.lane.b32.xlu0 %v4427_v31, %s6790_s17 }
0x43ed   :  { %v4430_v47 = vpop.permute.xlu0 %4429 }
0x43ee   :  { %5976 = vmatmul.mubr.msk.f32.vlgmr.msra.gmra.mrb[42].mxu0 %vm160_vm3, %v4430_v47 }
0x44c1   :  { %v4499_v23 = vpop.f32.mrb[42].mxu0 }
0x44c2   :  { %v4500_v33 = vadd.f32 %v6760_v25, %v4499_v23  ;;  %v5977_v61 = vpop.f32.mrb[43].mxu0 }
0x44c4   :  { %4504 = vst [vmem:[#allocation2 + $0x28] sm:$0xff] %v4500_v33 }
0x44c5   :  { %6772 = shalt.err (!%p6769_p4)
}
0x44c6   :  { %s6773_s3 = scalar_lea.hbm %s8166_s11, 768 }
0x44c7   :  { %p6774_p5 = scmp.ne.s32.totalorder %s8166_s11, %s6773_s3  ;;  %p6777_p6 = scmp.lt.u32.totalorder %s6773_s3, %s8166_s11 }
0x44c9   :  { %p6779_p7 = pnand %p6777_p6, %p6774_p5 }
0x44cb   :  { %6782 = shalt.err (!%p6779_p7)
}
0x44cc   :  { %s6793_s5 = smov 128   ;;  %s6794_s14 = smov 8  }
0x44cd   :  { %4516 = dma.vmem_to_hbm [thread:$0]  %s4511_s27, 768, %s8166_s11, [#allocation3], %s6793_s5, %s6793_s5, %s6794_s14  }
0x44ce   :  { %6783 = dma.done.wait [#allocation3], 768  }
0x44cf   :  { %6784 = vsyncadd [#allocation3], 4294966528 }
0x44d0   :  { %4520 = vsyncpa [#allocation3], 1 }

</bundles_post_ra>
